<compile_context>
chip_gen: v5e
topology: v5e:2x2
jax: 0.10.0
libtpu: 0.0.40
codegen_flags: <defaults>
</compile_context>

<pallas_src>
import jax
import jax.numpy as jnp
import numpy as np
from jax.experimental import pallas as pl
from jax.experimental.pallas import tpu as pltpu

# ----- model / demo sizes (module defaults, small sequence) -----
N_INPUTS = 2      # n_inputs
N_HIDDEN1 = 10    # LSTM hidden size (n_hidden1)
N_HIDDEN2 = 10    # development hidden size (n_hidden2), must be even for sp(2n)
N_OUTPUTS = 10    # n_outputs
T = 8             # sequence length
B = 2             # batch

EXPM_TAYLOR_ORDER = 12
EXPM_SQUARINGS = 6


def _eye(n, dtype=jnp.float32):
    """Identity built from 2-D iota (1-D iota is not supported inside Mosaic)."""
    r = jax.lax.broadcasted_iota(jnp.int32, (n, n), 0)
    c = jax.lax.broadcasted_iota(jnp.int32, (n, n), 1)
    return jnp.where(r == c, 1.0, 0.0).astype(dtype)


def _matexp_batched(Ms):
    """Batched matrix exponential of a (K, n, n) stack: scaling-and-squaring Taylor.

    All K exponentials share one serial chain of 12 Taylor + 6 squaring batched
    matmuls (the K blocks of each batched dot are independent and pipeline).
    """
    n = Ms.shape[1]
    A = Ms * (1.0 / (2 ** EXPM_SQUARINGS))
    E = _eye(n, Ms.dtype)[None, :, :] + A
    term = A
    for k in range(2, EXPM_TAYLOR_ORDER + 1):
        term = jnp.einsum('bij,bjk->bik', term, A,
                          preferred_element_type=jnp.float32) * (1.0 / k)
        E = E + term
    for _ in range(EXPM_SQUARINGS):
        E = jnp.einsum('bij,bjk->bik', E, E, preferred_element_type=jnp.float32)
    return E


def _matexp(M):
    """Single (n, n) matrix exponential (pure-JAX reference path)."""
    return _matexp_batched(M[None])[0]


def _lstm_dev_kernel(x_ref, wih_t_ref, whh_t_ref, b_ref, asp_ref,
                     fcw_ref, fcb_ref, o_ref):
    x = x_ref[0]                      # (T, Din)
    wih_t = wih_t_ref[...]            # (Din, 4H)
    whh_t = whh_t_ref[...]            # (H, 4H)
    bias = b_ref[...]                 # (1, 4H)
    asp = asp_ref[...]                # (m, m, H) sp(2n)-projected generators
    fcw = fcw_ref[...]                # (m*m, n_out), rows ordered as row-major flatten(Z)
    fcb = fcb_ref[...]                # (1, n_out)

    Tloc = x.shape[0]
    H = whh_t.shape[0]
    m = asp.shape[0]
    K = Tloc - 1                      # number of path increments / group elements

    # (1) input projection hoisted out of the recurrence: one (T,Din)@(Din,4H) dot.
    xg = jnp.dot(x, wih_t, preferred_element_type=jnp.float32)          # (T, 4H)

    # LSTM recurrence (only h @ whh_t remains on the serial chain).
    h = jnp.zeros((1, H), jnp.float32)
    c = jnp.zeros((1, H), jnp.float32)
    hs = []
    for t in range(Tloc):                                               # static unroll
        gates = (xg[t:t + 1, :]
                 + jnp.dot(h, whh_t, preferred_element_type=jnp.float32)
                 + bias)                                                # (1, 4H) [i,f,g,o]
        i_g = jax.nn.sigmoid(gates[:, 0:H])
        f_g = jax.nn.sigmoid(gates[:, H:2 * H])
        g_g = jnp.tanh(gates[:, 2 * H:3 * H])
        o_g = jax.nn.sigmoid(gates[:, 3 * H:4 * H])
        c = f_g * c + i_g * g_g
        h = o_g * jnp.tanh(c)
        hs.append(h)

    # (2) Lie-algebra projection of every path increment (off the recurrent chain).
    M_list = []
    for t in range(K):
        dX = hs[t + 1] - hs[t]                                          # (1, H)
        M_list.append(jnp.sum(asp * dX[:, None, :], axis=-1))           # (m, m)

    # (3) all K matrix exponentials in one batched Taylor/squaring pass.
    M_stack = jnp.stack(M_list, axis=0)                                 # (K, m, m)
    G_stack = _matexp_batched(M_stack)                                  # (K, m, m)

    # (4) ordered product Z = G_1 @ ... @ G_K via an order-preserving balanced tree
    #     (serial depth ~log2(K) instead of K).
    Gs = [G_stack[t] for t in range(K)]
    while len(Gs) > 1:
        nxt = []
        for i in range(0, len(Gs) - 1, 2):
            nxt.append(jnp.dot(Gs[i], Gs[i + 1],
                               preferred_element_type=jnp.float32))
        if len(Gs) % 2 == 1:
            nxt.append(Gs[-1])
        Gs = nxt
    Z = Gs[0]                                                           # (m, m)

    # (5) fully connected over flatten(Z): row i of Z hits weight rows [i*m,(i+1)*m)
    #     of the dense (m*m, n_out) matrix; the m dots are independent and pipeline.
    acc = fcb
    for i in range(m):
        acc = acc + jnp.dot(Z[i:i + 1, :], fcw[i * m:(i + 1) * m, :],
                            preferred_element_type=jnp.float32)
    o_ref[0] = acc


def lstm_development_forward(x, params):
    wih_t, whh_t, bias, asp, fcw2d, fcb = params
    B_, T_, Din = x.shape
    H = whh_t.shape[0]
    m = asp.shape[0]
    n_out = fcb.shape[1]
    assert T_ >= 2, "development layer needs at least one path increment"

    # TODO(synk): on single-TC chips (v5e/v6e) the whole batch could be folded into one
    # invocation (batched gates / batched expm) to amortize per-grid-step overhead; the
    # grid stays per-sample here so v7x can shard the batch across its 2 TensorCores.
    out = pl.pallas_call(
        _lstm_dev_kernel,
        out_shape=jax.ShapeDtypeStruct((B_, 1, n_out), jnp.float32),
        grid=(B_,),
        in_specs=[
            pl.BlockSpec((1, T_, Din), lambda b: (b, 0, 0)),
            pl.BlockSpec((Din, 4 * H), lambda b: (0, 0)),
            pl.BlockSpec((H, 4 * H), lambda b: (0, 0)),
            pl.BlockSpec((1, 4 * H), lambda b: (0, 0)),
            pl.BlockSpec((m, m, H), lambda b: (0, 0, 0)),
            pl.BlockSpec((m * m, n_out), lambda b: (0, 0)),
            pl.BlockSpec((1, n_out), lambda b: (0, 0)),
        ],
        out_specs=pl.BlockSpec((1, 1, n_out), lambda b: (b, 0, 0)),
        compiler_params=pltpu.CompilerParams(
            dimension_semantics=("parallel",)),
    )(x, wih_t, whh_t, bias, asp, fcw2d, fcb)
    return out.reshape(B_, n_out)


def make_params(key):
    """Deterministic synthetic parameters matching the module's shapes."""
    H, m, Din, n_out = N_HIDDEN1, N_HIDDEN2, N_INPUTS, N_OUTPUTS
    k1, k2, k3, k4, k5, k6, k7 = jax.random.split(key, 7)
    w_ih = 0.3 * jax.random.normal(k1, (4 * H, Din), jnp.float32)   # PyTorch weight_ih_l0
    w_hh = 0.3 * jax.random.normal(k2, (4 * H, H), jnp.float32)     # PyTorch weight_hh_l0
    b_ih = 0.1 * jax.random.normal(k3, (4 * H,), jnp.float32)
    b_hh = 0.1 * jax.random.normal(k4, (4 * H,), jnp.float32)
    a_raw = 0.2 * jax.random.normal(k5, (m, m, H), jnp.float32)     # development generator (channels=1)
    fc_w = 0.1 * jax.random.normal(k6, (n_out, m * m), jnp.float32)
    fc_b = 0.1 * jax.random.normal(k7, (n_out,), jnp.float32)

    # param=sp : project each generator onto the symplectic Lie algebra sp(2n):
    #   A_sp = J @ (A + A^T),  J = [[0, I], [-I, 0]]   (so that A_sp^T J + J A_sp = 0)
    n = m // 2
    eye_n = jnp.eye(n, dtype=jnp.float32)
    J = jnp.block([[jnp.zeros((n, n), jnp.float32), eye_n],
                   [-eye_n, jnp.zeros((n, n), jnp.float32)]])
    sym = a_raw + jnp.transpose(a_raw, (1, 0, 2))
    asp = jnp.einsum('ij,jkd->ikd', J, sym)                         # (m, m, H)

    wih_t = w_ih.T                                                  # (Din, 4H)
    whh_t = w_hh.T                                                  # (H, 4H)
    bias = (b_ih + b_hh)[None, :]                                   # (1, 4H)
    fcw2d = fc_w.T                                                  # (m*m, n_out); row i*m+k <-> Z[i,k]
    fcb = fc_b[None, :]                                             # (1, n_out)
    return wih_t, whh_t, bias, asp, fcw2d, fcb


def reference_forward(x, params):
    """Pure-JAX reference implementing the same math (sequential, per-sample)."""
    wih_t, whh_t, bias, asp, fcw2d, fcb = params
    B_, T_, _ = x.shape
    H = whh_t.shape[0]
    m = asp.shape[0]
    outs = []
    for b in range(B_):
        h = jnp.zeros((1, H), jnp.float32)
        c = jnp.zeros((1, H), jnp.float32)
        Z = jnp.eye(m, dtype=jnp.float32)
        for t in range(T_):
            gates = x[b, t:t + 1, :] @ wih_t + h @ whh_t + bias
            i_g = jax.nn.sigmoid(gates[:, 0:H])
            f_g = jax.nn.sigmoid(gates[:, H:2 * H])
            g_g = jnp.tanh(gates[:, 2 * H:3 * H])
            o_g = jax.nn.sigmoid(gates[:, 3 * H:4 * H])
            c = f_g * c + i_g * g_g
            h_new = o_g * jnp.tanh(c)
            if t > 0:
                dX = h_new - h
                M = jnp.sum(asp * dX[:, None, :], axis=-1)
                Z = Z @ _matexp(M)
            h = h_new
        out_b = Z.reshape(1, m * m) @ fcw2d + fcb
        outs.append(out_b)
    return jnp.concatenate(outs, axis=0)


if __name__ == "__main__":
    key = jax.random.PRNGKey(0)
    kx, kp = jax.random.split(key)
    x = jax.random.normal(kx, (B, T, N_INPUTS), jnp.float32)
    params = make_params(kp)

    out = lstm_development_forward(x, params)
    out = jax.block_until_ready(out)
    assert out.shape == (B, N_OUTPUTS)
    assert bool(jnp.all(jnp.isfinite(out)))

    ref = jax.block_until_ready(reference_forward(x, params))
    np.testing.assert_allclose(np.asarray(out), np.asarray(ref), atol=1e-2, rtol=1e-2)

    # TODO(synk): the `param='unitary'` complex branch (cfloat FC + .abs()) is not
    # exercised for the default param=sp path and is not implemented.
    print("KERNEL_OK")
</pallas_src>

<mosaic_0001>
module attributes {stable_mosaic.version = 11 : i64} {
  func.func @_lstm_dev_kernel(%arg0: i32, %arg1: memref<1x8x2xf32, #tpu.memory_space<vmem>>, %arg2: memref<2x40xf32, #tpu.memory_space<vmem>>, %arg3: memref<10x40xf32, #tpu.memory_space<vmem>>, %arg4: memref<1x40xf32, #tpu.memory_space<vmem>>, %arg5: memref<10x10x10xf32, #tpu.memory_space<vmem>>, %arg6: memref<100x10xf32, #tpu.memory_space<vmem>>, %arg7: memref<1x10xf32, #tpu.memory_space<vmem>>, %arg8: memref<1x1x10xf32, #tpu.memory_space<vmem>>) attributes {dimension_semantics = [#tpu.dimension_semantics<parallel>], iteration_bounds = array<i64: 2>, scalar_prefetch = 0 : i64, scratch_operands = 0 : i64, tpu.core_type = #tpu.core_type<tc>, window_params = [{transform_indices = @transform_0, window_bounds = array<i64: 1, 8, 2>}, {pipeline_mode = #tpu.pipeline_mode<synchronous>, transform_indices = @transform_1, window_bounds = array<i64: 2, 40>}, {pipeline_mode = #tpu.pipeline_mode<synchronous>, transform_indices = @transform_2, window_bounds = array<i64: 10, 40>}, {pipeline_mode = #tpu.pipeline_mode<synchronous>, transform_indices = @transform_3, window_bounds = array<i64: 1, 40>}, {pipeline_mode = #tpu.pipeline_mode<synchronous>, transform_indices = @transform_4, window_bounds = array<i64: 10, 10, 10>}, {pipeline_mode = #tpu.pipeline_mode<synchronous>, transform_indices = @transform_5, window_bounds = array<i64: 100, 10>}, {pipeline_mode = #tpu.pipeline_mode<synchronous>, transform_indices = @transform_6, window_bounds = array<i64: 1, 10>}, {transform_indices = @transform_7, window_bounds = array<i64: 1, 1, 10>}]} {
    %c0 = arith.constant 0 : index
    %c0_0 = arith.constant 0 : index
    %c0_1 = arith.constant 0 : index
    %0 = vector.load %arg1[%c0, %c0_0, %c0_1] : memref<1x8x2xf32, #tpu.memory_space<vmem>>, vector<1x8x2xf32>
    %1 = vector.shape_cast %0 : vector<1x8x2xf32> to vector<8x2xf32>
    %c0_2 = arith.constant 0 : index
    %c0_3 = arith.constant 0 : index
    %2 = vector.load %arg2[%c0_2, %c0_3] : memref<2x40xf32, #tpu.memory_space<vmem>>, vector<2x40xf32>
    %c0_4 = arith.constant 0 : index
    %c0_5 = arith.constant 0 : index
    %3 = vector.load %arg3[%c0_4, %c0_5] : memref<10x40xf32, #tpu.memory_space<vmem>>, vector<10x40xf32>
    %c0_6 = arith.constant 0 : index
    %c0_7 = arith.constant 0 : index
    %4 = vector.load %arg4[%c0_6, %c0_7] : memref<1x40xf32, #tpu.memory_space<vmem>>, vector<1x40xf32>
    %c0_8 = arith.constant 0 : index
    %c0_9 = arith.constant 0 : index
    %c0_10 = arith.constant 0 : index
    %5 = vector.load %arg5[%c0_8, %c0_9, %c0_10] : memref<10x10x10xf32, #tpu.memory_space<vmem>>, vector<10x10x10xf32>
    %c0_11 = arith.constant 0 : index
    %c0_12 = arith.constant 0 : index
    %6 = vector.load %arg6[%c0_11, %c0_12] : memref<100x10xf32, #tpu.memory_space<vmem>>, vector<100x10xf32>
    %c0_13 = arith.constant 0 : index
    %c0_14 = arith.constant 0 : index
    %7 = vector.load %arg7[%c0_13, %c0_14] : memref<1x10xf32, #tpu.memory_space<vmem>>, vector<1x10xf32>
    %cst = arith.constant dense<0.000000e+00> : vector<8x40xf32>
    %8 = tpu.matmul %1, %2, %cst {dimension_numbers = #tpu.dot_dimension_numbers<[1], [0], [0], [1], [0, 0, 1, 1], [], []>} : vector<8x2xf32>, vector<2x40xf32>, vector<8x40xf32> -> vector<8x40xf32>
    %cst_15 = arith.constant 0.000000e+00 : f32
    %9 = vector.broadcast %cst_15 : f32 to vector<1x10xf32>
    %cst_16 = arith.constant 0.000000e+00 : f32
    %10 = vector.broadcast %cst_16 : f32 to vector<1x10xf32>
    %11 = vector.extract_strided_slice %8 {offsets = [0, 0], sizes = [1, 40], strides = [1, 1]} : vector<8x40xf32> to vector<1x40xf32>
    %cst_17 = arith.constant dense<0.000000e+00> : vector<1x40xf32>
    %12 = tpu.matmul %9, %3, %cst_17 {dimension_numbers = #tpu.dot_dimension_numbers<[1], [0], [0], [1], [0, 0, 1, 1], [], []>} : vector<1x10xf32>, vector<10x40xf32>, vector<1x40xf32> -> vector<1x40xf32>
    %13 = arith.addf %11, %12 : vector<1x40xf32>
    %14 = arith.addf %13, %4 : vector<1x40xf32>
    %15 = vector.extract_strided_slice %14 {offsets = [0, 0], sizes = [1, 10], strides = [1, 1]} : vector<1x40xf32> to vector<1x10xf32>
    %16 = arith.negf %15 : vector<1x10xf32>
    %17 = math.exp %16 : vector<1x10xf32>
    %cst_18 = arith.constant 1.000000e+00 : f32
    %18 = vector.broadcast %cst_18 : f32 to vector<1x10xf32>
    %19 = arith.addf %18, %17 : vector<1x10xf32>
    %20 = arith.divf %18, %19 : vector<1x10xf32>
    %21 = vector.extract_strided_slice %14 {offsets = [0, 10], sizes = [1, 10], strides = [1, 1]} : vector<1x40xf32> to vector<1x10xf32>
    %22 = arith.negf %21 : vector<1x10xf32>
    %23 = math.exp %22 : vector<1x10xf32>
    %cst_19 = arith.constant 1.000000e+00 : f32
    %24 = vector.broadcast %cst_19 : f32 to vector<1x10xf32>
    %25 = arith.addf %24, %23 : vector<1x10xf32>
    %26 = arith.divf %24, %25 : vector<1x10xf32>
    %27 = vector.extract_strided_slice %14 {offsets = [0, 20], sizes = [1, 10], strides = [1, 1]} : vector<1x40xf32> to vector<1x10xf32>
    %28 = math.tanh %27 : vector<1x10xf32>
    %29 = vector.extract_strided_slice %14 {offsets = [0, 30], sizes = [1, 10], strides = [1, 1]} : vector<1x40xf32> to vector<1x10xf32>
    %30 = arith.negf %29 : vector<1x10xf32>
    %31 = math.exp %30 : vector<1x10xf32>
    %cst_20 = arith.constant 1.000000e+00 : f32
    %32 = vector.broadcast %cst_20 : f32 to vector<1x10xf32>
    %33 = arith.addf %32, %31 : vector<1x10xf32>
    %34 = arith.divf %32, %33 : vector<1x10xf32>
    %35 = arith.mulf %26, %10 : vector<1x10xf32>
    %36 = arith.mulf %20, %28 : vector<1x10xf32>
    %37 = arith.addf %35, %36 : vector<1x10xf32>
    %38 = math.tanh %37 : vector<1x10xf32>
    %39 = arith.mulf %34, %38 : vector<1x10xf32>
    %40 = vector.extract_strided_slice %8 {offsets = [1, 0], sizes = [1, 40], strides = [1, 1]} : vector<8x40xf32> to vector<1x40xf32>
    %cst_21 = arith.constant dense<0.000000e+00> : vector<1x40xf32>
    %41 = tpu.matmul %39, %3, %cst_21 {dimension_numbers = #tpu.dot_dimension_numbers<[1], [0], [0], [1], [0, 0, 1, 1], [], []>} : vector<1x10xf32>, vector<10x40xf32>, vector<1x40xf32> -> vector<1x40xf32>
    %42 = arith.addf %40, %41 : vector<1x40xf32>
    %43 = arith.addf %42, %4 : vector<1x40xf32>
    %44 = vector.extract_strided_slice %43 {offsets = [0, 0], sizes = [1, 10], strides = [1, 1]} : vector<1x40xf32> to vector<1x10xf32>
    %45 = arith.negf %44 : vector<1x10xf32>
    %46 = math.exp %45 : vector<1x10xf32>
    %cst_22 = arith.constant 1.000000e+00 : f32
    %47 = vector.broadcast %cst_22 : f32 to vector<1x10xf32>
    %48 = arith.addf %47, %46 : vector<1x10xf32>
    %49 = arith.divf %47, %48 : vector<1x10xf32>
    %50 = vector.extract_strided_slice %43 {offsets = [0, 10], sizes = [1, 10], strides = [1, 1]} : vector<1x40xf32> to vector<1x10xf32>
    %51 = arith.negf %50 : vector<1x10xf32>
    %52 = math.exp %51 : vector<1x10xf32>
    %cst_23 = arith.constant 1.000000e+00 : f32
    %53 = vector.broadcast %cst_23 : f32 to vector<1x10xf32>
    %54 = arith.addf %53, %52 : vector<1x10xf32>
    %55 = arith.divf %53, %54 : vector<1x10xf32>
    %56 = vector.extract_strided_slice %43 {offsets = [0, 20], sizes = [1, 10], strides = [1, 1]} : vector<1x40xf32> to vector<1x10xf32>
    %57 = math.tanh %56 : vector<1x10xf32>
    %58 = vector.extract_strided_slice %43 {offsets = [0, 30], sizes = [1, 10], strides = [1, 1]} : vector<1x40xf32> to vector<1x10xf32>
    %59 = arith.negf %58 : vector<1x10xf32>
    %60 = math.exp %59 : vector<1x10xf32>
    %cst_24 = arith.constant 1.000000e+00 : f32
    %61 = vector.broadcast %cst_24 : f32 to vector<1x10xf32>
    %62 = arith.addf %61, %60 : vector<1x10xf32>
    %63 = arith.divf %61, %62 : vector<1x10xf32>
    %64 = arith.mulf %55, %37 : vector<1x10xf32>
    %65 = arith.mulf %49, %57 : vector<1x10xf32>
    %66 = arith.addf %64, %65 : vector<1x10xf32>
    %67 = math.tanh %66 : vector<1x10xf32>
    %68 = arith.mulf %63, %67 : vector<1x10xf32>
    %69 = vector.extract_strided_slice %8 {offsets = [2, 0], sizes = [1, 40], strides = [1, 1]} : vector<8x40xf32> to vector<1x40xf32>
    %cst_25 = arith.constant dense<0.000000e+00> : vector<1x40xf32>
    %70 = tpu.matmul %68, %3, %cst_25 {dimension_numbers = #tpu.dot_dimension_numbers<[1], [0], [0], [1], [0, 0, 1, 1], [], []>} : vector<1x10xf32>, vector<10x40xf32>, vector<1x40xf32> -> vector<1x40xf32>
    %71 = arith.addf %69, %70 : vector<1x40xf32>
    %72 = arith.addf %71, %4 : vector<1x40xf32>
    %73 = vector.extract_strided_slice %72 {offsets = [0, 0], sizes = [1, 10], strides = [1, 1]} : vector<1x40xf32> to vector<1x10xf32>
    %74 = arith.negf %73 : vector<1x10xf32>
    %75 = math.exp %74 : vector<1x10xf32>
    %cst_26 = arith.constant 1.000000e+00 : f32
    %76 = vector.broadcast %cst_26 : f32 to vector<1x10xf32>
    %77 = arith.addf %76, %75 : vector<1x10xf32>
    %78 = arith.divf %76, %77 : vector<1x10xf32>
    %79 = vector.extract_strided_slice %72 {offsets = [0, 10], sizes = [1, 10], strides = [1, 1]} : vector<1x40xf32> to vector<1x10xf32>
    %80 = arith.negf %79 : vector<1x10xf32>
    %81 = math.exp %80 : vector<1x10xf32>
    %cst_27 = arith.constant 1.000000e+00 : f32
    %82 = vector.broadcast %cst_27 : f32 to vector<1x10xf32>
    %83 = arith.addf %82, %81 : vector<1x10xf32>
    %84 = arith.divf %82, %83 : vector<1x10xf32>
    %85 = vector.extract_strided_slice %72 {offsets = [0, 20], sizes = [1, 10], strides = [1, 1]} : vector<1x40xf32> to vector<1x10xf32>
    %86 = math.tanh %85 : vector<1x10xf32>
    %87 = vector.extract_strided_slice %72 {offsets = [0, 30], sizes = [1, 10], strides = [1, 1]} : vector<1x40xf32> to vector<1x10xf32>
    %88 = arith.negf %87 : vector<1x10xf32>
    %89 = math.exp %88 : vector<1x10xf32>
    %cst_28 = arith.constant 1.000000e+00 : f32
    %90 = vector.broadcast %cst_28 : f32 to vector<1x10xf32>
    %91 = arith.addf %90, %89 : vector<1x10xf32>
    %92 = arith.divf %90, %91 : vector<1x10xf32>
    %93 = arith.mulf %84, %66 : vector<1x10xf32>
    %94 = arith.mulf %78, %86 : vector<1x10xf32>
    %95 = arith.addf %93, %94 : vector<1x10xf32>
    %96 = math.tanh %95 : vector<1x10xf32>
    %97 = arith.mulf %92, %96 : vector<1x10xf32>
    %98 = vector.extract_strided_slice %8 {offsets = [3, 0], sizes = [1, 40], strides = [1, 1]} : vector<8x40xf32> to vector<1x40xf32>
    %cst_29 = arith.constant dense<0.000000e+00> : vector<1x40xf32>
    %99 = tpu.matmul %97, %3, %cst_29 {dimension_numbers = #tpu.dot_dimension_numbers<[1], [0], [0], [1], [0, 0, 1, 1], [], []>} : vector<1x10xf32>, vector<10x40xf32>, vector<1x40xf32> -> vector<1x40xf32>
    %100 = arith.addf %98, %99 : vector<1x40xf32>
    %101 = arith.addf %100, %4 : vector<1x40xf32>
    %102 = vector.extract_strided_slice %101 {offsets = [0, 0], sizes = [1, 10], strides = [1, 1]} : vector<1x40xf32> to vector<1x10xf32>
    %103 = arith.negf %102 : vector<1x10xf32>
    %104 = math.exp %103 : vector<1x10xf32>
    %cst_30 = arith.constant 1.000000e+00 : f32
    %105 = vector.broadcast %cst_30 : f32 to vector<1x10xf32>
    %106 = arith.addf %105, %104 : vector<1x10xf32>
    %107 = arith.divf %105, %106 : vector<1x10xf32>
    %108 = vector.extract_strided_slice %101 {offsets = [0, 10], sizes = [1, 10], strides = [1, 1]} : vector<1x40xf32> to vector<1x10xf32>
    %109 = arith.negf %108 : vector<1x10xf32>
    %110 = math.exp %109 : vector<1x10xf32>
    %cst_31 = arith.constant 1.000000e+00 : f32
    %111 = vector.broadcast %cst_31 : f32 to vector<1x10xf32>
    %112 = arith.addf %111, %110 : vector<1x10xf32>
    %113 = arith.divf %111, %112 : vector<1x10xf32>
    %114 = vector.extract_strided_slice %101 {offsets = [0, 20], sizes = [1, 10], strides = [1, 1]} : vector<1x40xf32> to vector<1x10xf32>
    %115 = math.tanh %114 : vector<1x10xf32>
    %116 = vector.extract_strided_slice %101 {offsets = [0, 30], sizes = [1, 10], strides = [1, 1]} : vector<1x40xf32> to vector<1x10xf32>
    %117 = arith.negf %116 : vector<1x10xf32>
    %118 = math.exp %117 : vector<1x10xf32>
    %cst_32 = arith.constant 1.000000e+00 : f32
    %119 = vector.broadcast %cst_32 : f32 to vector<1x10xf32>
    %120 = arith.addf %119, %118 : vector<1x10xf32>
    %121 = arith.divf %119, %120 : vector<1x10xf32>
    %122 = arith.mulf %113, %95 : vector<1x10xf32>
    %123 = arith.mulf %107, %115 : vector<1x10xf32>
    %124 = arith.addf %122, %123 : vector<1x10xf32>
    %125 = math.tanh %124 : vector<1x10xf32>
    %126 = arith.mulf %121, %125 : vector<1x10xf32>
    %127 = vector.extract_strided_slice %8 {offsets = [4, 0], sizes = [1, 40], strides = [1, 1]} : vector<8x40xf32> to vector<1x40xf32>
    %cst_33 = arith.constant dense<0.000000e+00> : vector<1x40xf32>
    %128 = tpu.matmul %126, %3, %cst_33 {dimension_numbers = #tpu.dot_dimension_numbers<[1], [0], [0], [1], [0, 0, 1, 1], [], []>} : vector<1x10xf32>, vector<10x40xf32>, vector<1x40xf32> -> vector<1x40xf32>
    %129 = arith.addf %127, %128 : vector<1x40xf32>
    %130 = arith.addf %129, %4 : vector<1x40xf32>
    %131 = vector.extract_strided_slice %130 {offsets = [0, 0], sizes = [1, 10], strides = [1, 1]} : vector<1x40xf32> to vector<1x10xf32>
    %132 = arith.negf %131 : vector<1x10xf32>
    %133 = math.exp %132 : vector<1x10xf32>
    %cst_34 = arith.constant 1.000000e+00 : f32
    %134 = vector.broadcast %cst_34 : f32 to vector<1x10xf32>
    %135 = arith.addf %134, %133 : vector<1x10xf32>
    %136 = arith.divf %134, %135 : vector<1x10xf32>
    %137 = vector.extract_strided_slice %130 {offsets = [0, 10], sizes = [1, 10], strides = [1, 1]} : vector<1x40xf32> to vector<1x10xf32>
    %138 = arith.negf %137 : vector<1x10xf32>
    %139 = math.exp %138 : vector<1x10xf32>
    %cst_35 = arith.constant 1.000000e+00 : f32
    %140 = vector.broadcast %cst_35 : f32 to vector<1x10xf32>
    %141 = arith.addf %140, %139 : vector<1x10xf32>
    %142 = arith.divf %140, %141 : vector<1x10xf32>
    %143 = vector.extract_strided_slice %130 {offsets = [0, 20], sizes = [1, 10], strides = [1, 1]} : vector<1x40xf32> to vector<1x10xf32>
    %144 = math.tanh %143 : vector<1x10xf32>
    %145 = vector.extract_strided_slice %130 {offsets = [0, 30], sizes = [1, 10], strides = [1, 1]} : vector<1x40xf32> to vector<1x10xf32>
    %146 = arith.negf %145 : vector<1x10xf32>
    %147 = math.exp %146 : vector<1x10xf32>
    %cst_36 = arith.constant 1.000000e+00 : f32
    %148 = vector.broadcast %cst_36 : f32 to vector<1x10xf32>
    %149 = arith.addf %148, %147 : vector<1x10xf32>
    %150 = arith.divf %148, %149 : vector<1x10xf32>
    %151 = arith.mulf %142, %124 : vector<1x10xf32>
    %152 = arith.mulf %136, %144 : vector<1x10xf32>
    %153 = arith.addf %151, %152 : vector<1x10xf32>
    %154 = math.tanh %153 : vector<1x10xf32>
    %155 = arith.mulf %150, %154 : vector<1x10xf32>
    %156 = vector.extract_strided_slice %8 {offsets = [5, 0], sizes = [1, 40], strides = [1, 1]} : vector<8x40xf32> to vector<1x40xf32>
    %cst_37 = arith.constant dense<0.000000e+00> : vector<1x40xf32>
    %157 = tpu.matmul %155, %3, %cst_37 {dimension_numbers = #tpu.dot_dimension_numbers<[1], [0], [0], [1], [0, 0, 1, 1], [], []>} : vector<1x10xf32>, vector<10x40xf32>, vector<1x40xf32> -> vector<1x40xf32>
    %158 = arith.addf %156, %157 : vector<1x40xf32>
    %159 = arith.addf %158, %4 : vector<1x40xf32>
    %160 = vector.extract_strided_slice %159 {offsets = [0, 0], sizes = [1, 10], strides = [1, 1]} : vector<1x40xf32> to vector<1x10xf32>
    %161 = arith.negf %160 : vector<1x10xf32>
    %162 = math.exp %161 : vector<1x10xf32>
    %cst_38 = arith.constant 1.000000e+00 : f32
    %163 = vector.broadcast %cst_38 : f32 to vector<1x10xf32>
    %164 = arith.addf %163, %162 : vector<1x10xf32>
    %165 = arith.divf %163, %164 : vector<1x10xf32>
    %166 = vector.extract_strided_slice %159 {offsets = [0, 10], sizes = [1, 10], strides = [1, 1]} : vector<1x40xf32> to vector<1x10xf32>
    %167 = arith.negf %166 : vector<1x10xf32>
    %168 = math.exp %167 : vector<1x10xf32>
    %cst_39 = arith.constant 1.000000e+00 : f32
    %169 = vector.broadcast %cst_39 : f32 to vector<1x10xf32>
    %170 = arith.addf %169, %168 : vector<1x10xf32>
    %171 = arith.divf %169, %170 : vector<1x10xf32>
    %172 = vector.extract_strided_slice %159 {offsets = [0, 20], sizes = [1, 10], strides = [1, 1]} : vector<1x40xf32> to vector<1x10xf32>
    %173 = math.tanh %172 : vector<1x10xf32>
    %174 = vector.extract_strided_slice %159 {offsets = [0, 30], sizes = [1, 10], strides = [1, 1]} : vector<1x40xf32> to vector<1x10xf32>
    %175 = arith.negf %174 : vector<1x10xf32>
    %176 = math.exp %175 : vector<1x10xf32>
    %cst_40 = arith.constant 1.000000e+00 : f32
    %177 = vector.broadcast %cst_40 : f32 to vector<1x10xf32>
    %178 = arith.addf %177, %176 : vector<1x10xf32>
    %179 = arith.divf %177, %178 : vector<1x10xf32>
    %180 = arith.mulf %171, %153 : vector<1x10xf32>
    %181 = arith.mulf %165, %173 : vector<1x10xf32>
    %182 = arith.addf %180, %181 : vector<1x10xf32>
    %183 = math.tanh %182 : vector<1x10xf32>
    %184 = arith.mulf %179, %183 : vector<1x10xf32>
    %185 = vector.extract_strided_slice %8 {offsets = [6, 0], sizes = [1, 40], strides = [1, 1]} : vector<8x40xf32> to vector<1x40xf32>
    %cst_41 = arith.constant dense<0.000000e+00> : vector<1x40xf32>
    %186 = tpu.matmul %184, %3, %cst_41 {dimension_numbers = #tpu.dot_dimension_numbers<[1], [0], [0], [1], [0, 0, 1, 1], [], []>} : vector<1x10xf32>, vector<10x40xf32>, vector<1x40xf32> -> vector<1x40xf32>
    %187 = arith.addf %185, %186 : vector<1x40xf32>
    %188 = arith.addf %187, %4 : vector<1x40xf32>
    %189 = vector.extract_strided_slice %188 {offsets = [0, 0], sizes = [1, 10], strides = [1, 1]} : vector<1x40xf32> to vector<1x10xf32>
    %190 = arith.negf %189 : vector<1x10xf32>
    %191 = math.exp %190 : vector<1x10xf32>
    %cst_42 = arith.constant 1.000000e+00 : f32
    %192 = vector.broadcast %cst_42 : f32 to vector<1x10xf32>
    %193 = arith.addf %192, %191 : vector<1x10xf32>
    %194 = arith.divf %192, %193 : vector<1x10xf32>
    %195 = vector.extract_strided_slice %188 {offsets = [0, 10], sizes = [1, 10], strides = [1, 1]} : vector<1x40xf32> to vector<1x10xf32>
    %196 = arith.negf %195 : vector<1x10xf32>
    %197 = math.exp %196 : vector<1x10xf32>
    %cst_43 = arith.constant 1.000000e+00 : f32
    %198 = vector.broadcast %cst_43 : f32 to vector<1x10xf32>
    %199 = arith.addf %198, %197 : vector<1x10xf32>
    %200 = arith.divf %198, %199 : vector<1x10xf32>
    %201 = vector.extract_strided_slice %188 {offsets = [0, 20], sizes = [1, 10], strides = [1, 1]} : vector<1x40xf32> to vector<1x10xf32>
    %202 = math.tanh %201 : vector<1x10xf32>
    %203 = vector.extract_strided_slice %188 {offsets = [0, 30], sizes = [1, 10], strides = [1, 1]} : vector<1x40xf32> to vector<1x10xf32>
    %204 = arith.negf %203 : vector<1x10xf32>
    %205 = math.exp %204 : vector<1x10xf32>
    %cst_44 = arith.constant 1.000000e+00 : f32
    %206 = vector.broadcast %cst_44 : f32 to vector<1x10xf32>
    %207 = arith.addf %206, %205 : vector<1x10xf32>
    %208 = arith.divf %206, %207 : vector<1x10xf32>
    %209 = arith.mulf %200, %182 : vector<1x10xf32>
    %210 = arith.mulf %194, %202 : vector<1x10xf32>
    %211 = arith.addf %209, %210 : vector<1x10xf32>
    %212 = math.tanh %211 : vector<1x10xf32>
    %213 = arith.mulf %208, %212 : vector<1x10xf32>
    %214 = vector.extract_strided_slice %8 {offsets = [7, 0], sizes = [1, 40], strides = [1, 1]} : vector<8x40xf32> to vector<1x40xf32>
    %cst_45 = arith.constant dense<0.000000e+00> : vector<1x40xf32>
    %215 = tpu.matmul %213, %3, %cst_45 {dimension_numbers = #tpu.dot_dimension_numbers<[1], [0], [0], [1], [0, 0, 1, 1], [], []>} : vector<1x10xf32>, vector<10x40xf32>, vector<1x40xf32> -> vector<1x40xf32>
    %216 = arith.addf %214, %215 : vector<1x40xf32>
    %217 = arith.addf %216, %4 : vector<1x40xf32>
    %218 = vector.extract_strided_slice %217 {offsets = [0, 0], sizes = [1, 10], strides = [1, 1]} : vector<1x40xf32> to vector<1x10xf32>
    %219 = arith.negf %218 : vector<1x10xf32>
    %220 = math.exp %219 : vector<1x10xf32>
    %cst_46 = arith.constant 1.000000e+00 : f32
    %221 = vector.broadcast %cst_46 : f32 to vector<1x10xf32>
    %222 = arith.addf %221, %220 : vector<1x10xf32>
    %223 = arith.divf %221, %222 : vector<1x10xf32>
    %224 = vector.extract_strided_slice %217 {offsets = [0, 10], sizes = [1, 10], strides = [1, 1]} : vector<1x40xf32> to vector<1x10xf32>
    %225 = arith.negf %224 : vector<1x10xf32>
    %226 = math.exp %225 : vector<1x10xf32>
    %cst_47 = arith.constant 1.000000e+00 : f32
    %227 = vector.broadcast %cst_47 : f32 to vector<1x10xf32>
    %228 = arith.addf %227, %226 : vector<1x10xf32>
    %229 = arith.divf %227, %228 : vector<1x10xf32>
    %230 = vector.extract_strided_slice %217 {offsets = [0, 20], sizes = [1, 10], strides = [1, 1]} : vector<1x40xf32> to vector<1x10xf32>
    %231 = math.tanh %230 : vector<1x10xf32>
    %232 = vector.extract_strided_slice %217 {offsets = [0, 30], sizes = [1, 10], strides = [1, 1]} : vector<1x40xf32> to vector<1x10xf32>
    %233 = arith.negf %232 : vector<1x10xf32>
    %234 = math.exp %233 : vector<1x10xf32>
    %cst_48 = arith.constant 1.000000e+00 : f32
    %235 = vector.broadcast %cst_48 : f32 to vector<1x10xf32>
    %236 = arith.addf %235, %234 : vector<1x10xf32>
    %237 = arith.divf %235, %236 : vector<1x10xf32>
    %238 = arith.mulf %229, %211 : vector<1x10xf32>
    %239 = arith.mulf %223, %231 : vector<1x10xf32>
    %240 = arith.addf %238, %239 : vector<1x10xf32>
    %241 = math.tanh %240 : vector<1x10xf32>
    %242 = arith.mulf %237, %241 : vector<1x10xf32>
    %243 = arith.subf %68, %39 : vector<1x10xf32>
    %244 = vector.shape_cast %243 : vector<1x10xf32> to vector<1x1x10xf32>
    %245 = vector.broadcast %244 : vector<1x1x10xf32> to vector<10x10x10xf32>
    %246 = arith.mulf %5, %245 : vector<10x10x10xf32>
    %cst_49 = arith.constant dense<0.000000e+00> : vector<10x10xf32>
    %247 = vector.multi_reduction <add>, %246, %cst_49 [2] : vector<10x10x10xf32> to vector<10x10xf32>
    %248 = arith.subf %97, %68 : vector<1x10xf32>
    %249 = vector.shape_cast %248 : vector<1x10xf32> to vector<1x1x10xf32>
    %250 = vector.broadcast %249 : vector<1x1x10xf32> to vector<10x10x10xf32>
    %251 = arith.mulf %5, %250 : vector<10x10x10xf32>
    %cst_50 = arith.constant dense<0.000000e+00> : vector<10x10xf32>
    %252 = vector.multi_reduction <add>, %251, %cst_50 [2] : vector<10x10x10xf32> to vector<10x10xf32>
    %253 = arith.subf %126, %97 : vector<1x10xf32>
    %254 = vector.shape_cast %253 : vector<1x10xf32> to vector<1x1x10xf32>
    %255 = vector.broadcast %254 : vector<1x1x10xf32> to vector<10x10x10xf32>
    %256 = arith.mulf %5, %255 : vector<10x10x10xf32>
    %cst_51 = arith.constant dense<0.000000e+00> : vector<10x10xf32>
    %257 = vector.multi_reduction <add>, %256, %cst_51 [2] : vector<10x10x10xf32> to vector<10x10xf32>
    %258 = arith.subf %155, %126 : vector<1x10xf32>
    %259 = vector.shape_cast %258 : vector<1x10xf32> to vector<1x1x10xf32>
    %260 = vector.broadcast %259 : vector<1x1x10xf32> to vector<10x10x10xf32>
    %261 = arith.mulf %5, %260 : vector<10x10x10xf32>
    %cst_52 = arith.constant dense<0.000000e+00> : vector<10x10xf32>
    %262 = vector.multi_reduction <add>, %261, %cst_52 [2] : vector<10x10x10xf32> to vector<10x10xf32>
    %263 = arith.subf %184, %155 : vector<1x10xf32>
    %264 = vector.shape_cast %263 : vector<1x10xf32> to vector<1x1x10xf32>
    %265 = vector.broadcast %264 : vector<1x1x10xf32> to vector<10x10x10xf32>
    %266 = arith.mulf %5, %265 : vector<10x10x10xf32>
    %cst_53 = arith.constant dense<0.000000e+00> : vector<10x10xf32>
    %267 = vector.multi_reduction <add>, %266, %cst_53 [2] : vector<10x10x10xf32> to vector<10x10xf32>
    %268 = arith.subf %213, %184 : vector<1x10xf32>
    %269 = vector.shape_cast %268 : vector<1x10xf32> to vector<1x1x10xf32>
    %270 = vector.broadcast %269 : vector<1x1x10xf32> to vector<10x10x10xf32>
    %271 = arith.mulf %5, %270 : vector<10x10x10xf32>
    %cst_54 = arith.constant dense<0.000000e+00> : vector<10x10xf32>
    %272 = vector.multi_reduction <add>, %271, %cst_54 [2] : vector<10x10x10xf32> to vector<10x10xf32>
    %273 = arith.subf %242, %213 : vector<1x10xf32>
    %274 = vector.shape_cast %273 : vector<1x10xf32> to vector<1x1x10xf32>
    %275 = vector.broadcast %274 : vector<1x1x10xf32> to vector<10x10x10xf32>
    %276 = arith.mulf %5, %275 : vector<10x10x10xf32>
    %cst_55 = arith.constant dense<0.000000e+00> : vector<10x10xf32>
    %277 = vector.multi_reduction <add>, %276, %cst_55 [2] : vector<10x10x10xf32> to vector<10x10xf32>
    %278 = vector.shape_cast %247 : vector<10x10xf32> to vector<1x10x10xf32>
    %279 = vector.shape_cast %252 : vector<10x10xf32> to vector<1x10x10xf32>
    %280 = vector.shape_cast %257 : vector<10x10xf32> to vector<1x10x10xf32>
    %281 = vector.shape_cast %262 : vector<10x10xf32> to vector<1x10x10xf32>
    %282 = vector.shape_cast %267 : vector<10x10xf32> to vector<1x10x10xf32>
    %283 = vector.shape_cast %272 : vector<10x10xf32> to vector<1x10x10xf32>
    %284 = vector.shape_cast %277 : vector<10x10xf32> to vector<1x10x10xf32>
    %285 = tpu.concatenate %278, %279, %280, %281, %282, %283, %284 in 0 : vector<1x10x10xf32>, vector<1x10x10xf32>, vector<1x10x10xf32>, vector<1x10x10xf32>, vector<1x10x10xf32>, vector<1x10x10xf32>, vector<1x10x10xf32> -> vector<7x10x10xf32>
    %cst_56 = arith.constant 1.562500e-02 : f32
    %286 = vector.broadcast %cst_56 : f32 to vector<7x10x10xf32>
    %287 = arith.mulf %285, %286 : vector<7x10x10xf32>
    %288 = tpu.iota {dimensions = array<i32: 0>} : vector<10x10xi32>
    %289 = tpu.iota {dimensions = array<i32: 1>} : vector<10x10xi32>
    %290 = arith.cmpi eq, %288, %289 : vector<10x10xi32>
    %cst_57 = arith.constant 1.000000e+00 : f32
    %cst_58 = arith.constant 0.000000e+00 : f32
    %291 = vector.broadcast %cst_57 : f32 to vector<10x10xf32>
    %292 = vector.broadcast %cst_58 : f32 to vector<10x10xf32>
    %293 = arith.select %290, %291, %292 : vector<10x10xi1>, vector<10x10xf32>
    %294 = vector.shape_cast %293 : vector<10x10xf32> to vector<1x10x10xf32>
    %295 = vector.broadcast %294 : vector<1x10x10xf32> to vector<7x10x10xf32>
    %296 = arith.addf %295, %287 : vector<7x10x10xf32>
    "tpu.trace_start"() <{level = 10 : i32, message = "bij,bjk->bik"}> : () -> ()
    %cst_59 = arith.constant dense<0.000000e+00> : vector<7x10x10xf32>
    %297 = tpu.matmul %287, %287, %cst_59 {dimension_numbers = #tpu.dot_dimension_numbers<[2], [1], [1], [2], [0, 0, 0, 1, 1, 2], [0], [0]>} : vector<7x10x10xf32>, vector<7x10x10xf32>, vector<7x10x10xf32> -> vector<7x10x10xf32>
    "tpu.trace_stop"() : () -> ()
    %cst_60 = arith.constant 5.000000e-01 : f32
    %298 = vector.broadcast %cst_60 : f32 to vector<7x10x10xf32>
    %299 = arith.mulf %297, %298 : vector<7x10x10xf32>
    %300 = arith.addf %296, %299 : vector<7x10x10xf32>
    "tpu.trace_start"() <{level = 10 : i32, message = "bij,bjk->bik"}> : () -> ()
    %cst_61 = arith.constant dense<0.000000e+00> : vector<7x10x10xf32>
    %301 = tpu.matmul %299, %287, %cst_61 {dimension_numbers = #tpu.dot_dimension_numbers<[2], [1], [1], [2], [0, 0, 0, 1, 1, 2], [0], [0]>} : vector<7x10x10xf32>, vector<7x10x10xf32>, vector<7x10x10xf32> -> vector<7x10x10xf32>
    "tpu.trace_stop"() : () -> ()
    %cst_62 = arith.constant 0.333333343 : f32
    %302 = vector.broadcast %cst_62 : f32 to vector<7x10x10xf32>
    %303 = arith.mulf %301, %302 : vector<7x10x10xf32>
    %304 = arith.addf %300, %303 : vector<7x10x10xf32>
    "tpu.trace_start"() <{level = 10 : i32, message = "bij,bjk->bik"}> : () -> ()
    %cst_63 = arith.constant dense<0.000000e+00> : vector<7x10x10xf32>
    %305 = tpu.matmul %303, %287, %cst_63 {dimension_numbers = #tpu.dot_dimension_numbers<[2], [1], [1], [2], [0, 0, 0, 1, 1, 2], [0], [0]>} : vector<7x10x10xf32>, vector<7x10x10xf32>, vector<7x10x10xf32> -> vector<7x10x10xf32>
    "tpu.trace_stop"() : () -> ()
    %cst_64 = arith.constant 2.500000e-01 : f32
    %306 = vector.broadcast %cst_64 : f32 to vector<7x10x10xf32>
    %307 = arith.mulf %305, %306 : vector<7x10x10xf32>
    %308 = arith.addf %304, %307 : vector<7x10x10xf32>
    "tpu.trace_start"() <{level = 10 : i32, message = "bij,bjk->bik"}> : () -> ()
    %cst_65 = arith.constant dense<0.000000e+00> : vector<7x10x10xf32>
    %309 = tpu.matmul %307, %287, %cst_65 {dimension_numbers = #tpu.dot_dimension_numbers<[2], [1], [1], [2], [0, 0, 0, 1, 1, 2], [0], [0]>} : vector<7x10x10xf32>, vector<7x10x10xf32>, vector<7x10x10xf32> -> vector<7x10x10xf32>
    "tpu.trace_stop"() : () -> ()
    %cst_66 = arith.constant 2.000000e-01 : f32
    %310 = vector.broadcast %cst_66 : f32 to vector<7x10x10xf32>
    %311 = arith.mulf %309, %310 : vector<7x10x10xf32>
    %312 = arith.addf %308, %311 : vector<7x10x10xf32>
    "tpu.trace_start"() <{level = 10 : i32, message = "bij,bjk->bik"}> : () -> ()
    %cst_67 = arith.constant dense<0.000000e+00> : vector<7x10x10xf32>
    %313 = tpu.matmul %311, %287, %cst_67 {dimension_numbers = #tpu.dot_dimension_numbers<[2], [1], [1], [2], [0, 0, 0, 1, 1, 2], [0], [0]>} : vector<7x10x10xf32>, vector<7x10x10xf32>, vector<7x10x10xf32> -> vector<7x10x10xf32>
    "tpu.trace_stop"() : () -> ()
    %cst_68 = arith.constant 0.166666672 : f32
    %314 = vector.broadcast %cst_68 : f32 to vector<7x10x10xf32>
    %315 = arith.mulf %313, %314 : vector<7x10x10xf32>
    %316 = arith.addf %312, %315 : vector<7x10x10xf32>
    "tpu.trace_start"() <{level = 10 : i32, message = "bij,bjk->bik"}> : () -> ()
    %cst_69 = arith.constant dense<0.000000e+00> : vector<7x10x10xf32>
    %317 = tpu.matmul %315, %287, %cst_69 {dimension_numbers = #tpu.dot_dimension_numbers<[2], [1], [1], [2], [0, 0, 0, 1, 1, 2], [0], [0]>} : vector<7x10x10xf32>, vector<7x10x10xf32>, vector<7x10x10xf32> -> vector<7x10x10xf32>
    "tpu.trace_stop"() : () -> ()
    %cst_70 = arith.constant 0.142857149 : f32
    %318 = vector.broadcast %cst_70 : f32 to vector<7x10x10xf32>
    %319 = arith.mulf %317, %318 : vector<7x10x10xf32>
    %320 = arith.addf %316, %319 : vector<7x10x10xf32>
    "tpu.trace_start"() <{level = 10 : i32, message = "bij,bjk->bik"}> : () -> ()
    %cst_71 = arith.constant dense<0.000000e+00> : vector<7x10x10xf32>
    %321 = tpu.matmul %319, %287, %cst_71 {dimension_numbers = #tpu.dot_dimension_numbers<[2], [1], [1], [2], [0, 0, 0, 1, 1, 2], [0], [0]>} : vector<7x10x10xf32>, vector<7x10x10xf32>, vector<7x10x10xf32> -> vector<7x10x10xf32>
    "tpu.trace_stop"() : () -> ()
    %cst_72 = arith.constant 1.250000e-01 : f32
    %322 = vector.broadcast %cst_72 : f32 to vector<7x10x10xf32>
    %323 = arith.mulf %321, %322 : vector<7x10x10xf32>
    %324 = arith.addf %320, %323 : vector<7x10x10xf32>
    "tpu.trace_start"() <{level = 10 : i32, message = "bij,bjk->bik"}> : () -> ()
    %cst_73 = arith.constant dense<0.000000e+00> : vector<7x10x10xf32>
    %325 = tpu.matmul %323, %287, %cst_73 {dimension_numbers = #tpu.dot_dimension_numbers<[2], [1], [1], [2], [0, 0, 0, 1, 1, 2], [0], [0]>} : vector<7x10x10xf32>, vector<7x10x10xf32>, vector<7x10x10xf32> -> vector<7x10x10xf32>
    "tpu.trace_stop"() : () -> ()
    %cst_74 = arith.constant 0.111111112 : f32
    %326 = vector.broadcast %cst_74 : f32 to vector<7x10x10xf32>
    %327 = arith.mulf %325, %326 : vector<7x10x10xf32>
    %328 = arith.addf %324, %327 : vector<7x10x10xf32>
    "tpu.trace_start"() <{level = 10 : i32, message = "bij,bjk->bik"}> : () -> ()
    %cst_75 = arith.constant dense<0.000000e+00> : vector<7x10x10xf32>
    %329 = tpu.matmul %327, %287, %cst_75 {dimension_numbers = #tpu.dot_dimension_numbers<[2], [1], [1], [2], [0, 0, 0, 1, 1, 2], [0], [0]>} : vector<7x10x10xf32>, vector<7x10x10xf32>, vector<7x10x10xf32> -> vector<7x10x10xf32>
    "tpu.trace_stop"() : () -> ()
    %cst_76 = arith.constant 1.000000e-01 : f32
    %330 = vector.broadcast %cst_76 : f32 to vector<7x10x10xf32>
    %331 = arith.mulf %329, %330 : vector<7x10x10xf32>
    %332 = arith.addf %328, %331 : vector<7x10x10xf32>
    "tpu.trace_start"() <{level = 10 : i32, message = "bij,bjk->bik"}> : () -> ()
    %cst_77 = arith.constant dense<0.000000e+00> : vector<7x10x10xf32>
    %333 = tpu.matmul %331, %287, %cst_77 {dimension_numbers = #tpu.dot_dimension_numbers<[2], [1], [1], [2], [0, 0, 0, 1, 1, 2], [0], [0]>} : vector<7x10x10xf32>, vector<7x10x10xf32>, vector<7x10x10xf32> -> vector<7x10x10xf32>
    "tpu.trace_stop"() : () -> ()
    %cst_78 = arith.constant 0.0909090936 : f32
    %334 = vector.broadcast %cst_78 : f32 to vector<7x10x10xf32>
    %335 = arith.mulf %333, %334 : vector<7x10x10xf32>
    %336 = arith.addf %332, %335 : vector<7x10x10xf32>
    "tpu.trace_start"() <{level = 10 : i32, message = "bij,bjk->bik"}> : () -> ()
    %cst_79 = arith.constant dense<0.000000e+00> : vector<7x10x10xf32>
    %337 = tpu.matmul %335, %287, %cst_79 {dimension_numbers = #tpu.dot_dimension_numbers<[2], [1], [1], [2], [0, 0, 0, 1, 1, 2], [0], [0]>} : vector<7x10x10xf32>, vector<7x10x10xf32>, vector<7x10x10xf32> -> vector<7x10x10xf32>
    "tpu.trace_stop"() : () -> ()
    %cst_80 = arith.constant 0.0833333358 : f32
    %338 = vector.broadcast %cst_80 : f32 to vector<7x10x10xf32>
    %339 = arith.mulf %337, %338 : vector<7x10x10xf32>
    %340 = arith.addf %336, %339 : vector<7x10x10xf32>
    "tpu.trace_start"() <{level = 10 : i32, message = "bij,bjk->bik"}> : () -> ()
    %cst_81 = arith.constant dense<0.000000e+00> : vector<7x10x10xf32>
    %341 = tpu.matmul %340, %340, %cst_81 {dimension_numbers = #tpu.dot_dimension_numbers<[2], [1], [1], [2], [0, 0, 0, 1, 1, 2], [0], [0]>} : vector<7x10x10xf32>, vector<7x10x10xf32>, vector<7x10x10xf32> -> vector<7x10x10xf32>
    %cst_82 = arith.constant dense<0.000000e+00> : vector<7x10x10xf32>
    %342 = tpu.matmul %341, %341, %cst_82 {dimension_numbers = #tpu.dot_dimension_numbers<[2], [1], [1], [2], [0, 0, 0, 1, 1, 2], [0], [0]>} : vector<7x10x10xf32>, vector<7x10x10xf32>, vector<7x10x10xf32> -> vector<7x10x10xf32>
    %cst_83 = arith.constant dense<0.000000e+00> : vector<7x10x10xf32>
    %343 = tpu.matmul %342, %342, %cst_83 {dimension_numbers = #tpu.dot_dimension_numbers<[2], [1], [1], [2], [0, 0, 0, 1, 1, 2], [0], [0]>} : vector<7x10x10xf32>, vector<7x10x10xf32>, vector<7x10x10xf32> -> vector<7x10x10xf32>
    %cst_84 = arith.constant dense<0.000000e+00> : vector<7x10x10xf32>
    %344 = tpu.matmul %343, %343, %cst_84 {dimension_numbers = #tpu.dot_dimension_numbers<[2], [1], [1], [2], [0, 0, 0, 1, 1, 2], [0], [0]>} : vector<7x10x10xf32>, vector<7x10x10xf32>, vector<7x10x10xf32> -> vector<7x10x10xf32>
    %cst_85 = arith.constant dense<0.000000e+00> : vector<7x10x10xf32>
    %345 = tpu.matmul %344, %344, %cst_85 {dimension_numbers = #tpu.dot_dimension_numbers<[2], [1], [1], [2], [0, 0, 0, 1, 1, 2], [0], [0]>} : vector<7x10x10xf32>, vector<7x10x10xf32>, vector<7x10x10xf32> -> vector<7x10x10xf32>
    %cst_86 = arith.constant dense<0.000000e+00> : vector<7x10x10xf32>
    %346 = tpu.matmul %345, %345, %cst_86 {dimension_numbers = #tpu.dot_dimension_numbers<[2], [1], [1], [2], [0, 0, 0, 1, 1, 2], [0], [0]>} : vector<7x10x10xf32>, vector<7x10x10xf32>, vector<7x10x10xf32> -> vector<7x10x10xf32>
    "tpu.trace_stop"() : () -> ()
    %347 = vector.extract_strided_slice %346 {offsets = [0, 0, 0], sizes = [1, 10, 10], strides = [1, 1, 1]} : vector<7x10x10xf32> to vector<1x10x10xf32>
    %348 = vector.shape_cast %347 : vector<1x10x10xf32> to vector<10x10xf32>
    %349 = vector.extract_strided_slice %346 {offsets = [1, 0, 0], sizes = [1, 10, 10], strides = [1, 1, 1]} : vector<7x10x10xf32> to vector<1x10x10xf32>
    %350 = vector.shape_cast %349 : vector<1x10x10xf32> to vector<10x10xf32>
    %351 = vector.extract_strided_slice %346 {offsets = [2, 0, 0], sizes = [1, 10, 10], strides = [1, 1, 1]} : vector<7x10x10xf32> to vector<1x10x10xf32>
    %352 = vector.shape_cast %351 : vector<1x10x10xf32> to vector<10x10xf32>
    %353 = vector.extract_strided_slice %346 {offsets = [3, 0, 0], sizes = [1, 10, 10], strides = [1, 1, 1]} : vector<7x10x10xf32> to vector<1x10x10xf32>
    %354 = vector.shape_cast %353 : vector<1x10x10xf32> to vector<10x10xf32>
    %355 = vector.extract_strided_slice %346 {offsets = [4, 0, 0], sizes = [1, 10, 10], strides = [1, 1, 1]} : vector<7x10x10xf32> to vector<1x10x10xf32>
    %356 = vector.shape_cast %355 : vector<1x10x10xf32> to vector<10x10xf32>
    %357 = vector.extract_strided_slice %346 {offsets = [5, 0, 0], sizes = [1, 10, 10], strides = [1, 1, 1]} : vector<7x10x10xf32> to vector<1x10x10xf32>
    %358 = vector.shape_cast %357 : vector<1x10x10xf32> to vector<10x10xf32>
    %359 = vector.extract_strided_slice %346 {offsets = [6, 0, 0], sizes = [1, 10, 10], strides = [1, 1, 1]} : vector<7x10x10xf32> to vector<1x10x10xf32>
    %360 = vector.shape_cast %359 : vector<1x10x10xf32> to vector<10x10xf32>
    %cst_87 = arith.constant dense<0.000000e+00> : vector<10x10xf32>
    %361 = tpu.matmul %348, %350, %cst_87 {dimension_numbers = #tpu.dot_dimension_numbers<[1], [0], [0], [1], [0, 0, 1, 1], [], []>} : vector<10x10xf32>, vector<10x10xf32>, vector<10x10xf32> -> vector<10x10xf32>
    %cst_88 = arith.constant dense<0.000000e+00> : vector<10x10xf32>
    %362 = tpu.matmul %352, %354, %cst_88 {dimension_numbers = #tpu.dot_dimension_numbers<[1], [0], [0], [1], [0, 0, 1, 1], [], []>} : vector<10x10xf32>, vector<10x10xf32>, vector<10x10xf32> -> vector<10x10xf32>
    %cst_89 = arith.constant dense<0.000000e+00> : vector<10x10xf32>
    %363 = tpu.matmul %356, %358, %cst_89 {dimension_numbers = #tpu.dot_dimension_numbers<[1], [0], [0], [1], [0, 0, 1, 1], [], []>} : vector<10x10xf32>, vector<10x10xf32>, vector<10x10xf32> -> vector<10x10xf32>
    %cst_90 = arith.constant dense<0.000000e+00> : vector<10x10xf32>
    %364 = tpu.matmul %361, %362, %cst_90 {dimension_numbers = #tpu.dot_dimension_numbers<[1], [0], [0], [1], [0, 0, 1, 1], [], []>} : vector<10x10xf32>, vector<10x10xf32>, vector<10x10xf32> -> vector<10x10xf32>
    %cst_91 = arith.constant dense<0.000000e+00> : vector<10x10xf32>
    %365 = tpu.matmul %363, %360, %cst_91 {dimension_numbers = #tpu.dot_dimension_numbers<[1], [0], [0], [1], [0, 0, 1, 1], [], []>} : vector<10x10xf32>, vector<10x10xf32>, vector<10x10xf32> -> vector<10x10xf32>
    %cst_92 = arith.constant dense<0.000000e+00> : vector<10x10xf32>
    %366 = tpu.matmul %364, %365, %cst_92 {dimension_numbers = #tpu.dot_dimension_numbers<[1], [0], [0], [1], [0, 0, 1, 1], [], []>} : vector<10x10xf32>, vector<10x10xf32>, vector<10x10xf32> -> vector<10x10xf32>
    %367 = vector.extract_strided_slice %366 {offsets = [0, 0], sizes = [1, 10], strides = [1, 1]} : vector<10x10xf32> to vector<1x10xf32>
    %368 = vector.extract_strided_slice %6 {offsets = [0, 0], sizes = [10, 10], strides = [1, 1]} : vector<100x10xf32> to vector<10x10xf32>
    %cst_93 = arith.constant dense<0.000000e+00> : vector<1x10xf32>
    %369 = tpu.matmul %367, %368, %cst_93 {dimension_numbers = #tpu.dot_dimension_numbers<[1], [0], [0], [1], [0, 0, 1, 1], [], []>} : vector<1x10xf32>, vector<10x10xf32>, vector<1x10xf32> -> vector<1x10xf32>
    %370 = arith.addf %7, %369 : vector<1x10xf32>
    %371 = vector.extract_strided_slice %366 {offsets = [1, 0], sizes = [1, 10], strides = [1, 1]} : vector<10x10xf32> to vector<1x10xf32>
    %372 = vector.extract_strided_slice %6 {offsets = [10, 0], sizes = [10, 10], strides = [1, 1]} : vector<100x10xf32> to vector<10x10xf32>
    %cst_94 = arith.constant dense<0.000000e+00> : vector<1x10xf32>
    %373 = tpu.matmul %371, %372, %cst_94 {dimension_numbers = #tpu.dot_dimension_numbers<[1], [0], [0], [1], [0, 0, 1, 1], [], []>} : vector<1x10xf32>, vector<10x10xf32>, vector<1x10xf32> -> vector<1x10xf32>
    %374 = arith.addf %370, %373 : vector<1x10xf32>
    %375 = vector.extract_strided_slice %366 {offsets = [2, 0], sizes = [1, 10], strides = [1, 1]} : vector<10x10xf32> to vector<1x10xf32>
    %376 = vector.extract_strided_slice %6 {offsets = [20, 0], sizes = [10, 10], strides = [1, 1]} : vector<100x10xf32> to vector<10x10xf32>
    %cst_95 = arith.constant dense<0.000000e+00> : vector<1x10xf32>
    %377 = tpu.matmul %375, %376, %cst_95 {dimension_numbers = #tpu.dot_dimension_numbers<[1], [0], [0], [1], [0, 0, 1, 1], [], []>} : vector<1x10xf32>, vector<10x10xf32>, vector<1x10xf32> -> vector<1x10xf32>
    %378 = arith.addf %374, %377 : vector<1x10xf32>
    %379 = vector.extract_strided_slice %366 {offsets = [3, 0], sizes = [1, 10], strides = [1, 1]} : vector<10x10xf32> to vector<1x10xf32>
    %380 = vector.extract_strided_slice %6 {offsets = [30, 0], sizes = [10, 10], strides = [1, 1]} : vector<100x10xf32> to vector<10x10xf32>
    %cst_96 = arith.constant dense<0.000000e+00> : vector<1x10xf32>
    %381 = tpu.matmul %379, %380, %cst_96 {dimension_numbers = #tpu.dot_dimension_numbers<[1], [0], [0], [1], [0, 0, 1, 1], [], []>} : vector<1x10xf32>, vector<10x10xf32>, vector<1x10xf32> -> vector<1x10xf32>
    %382 = arith.addf %378, %381 : vector<1x10xf32>
    %383 = vector.extract_strided_slice %366 {offsets = [4, 0], sizes = [1, 10], strides = [1, 1]} : vector<10x10xf32> to vector<1x10xf32>
    %384 = vector.extract_strided_slice %6 {offsets = [40, 0], sizes = [10, 10], strides = [1, 1]} : vector<100x10xf32> to vector<10x10xf32>
    %cst_97 = arith.constant dense<0.000000e+00> : vector<1x10xf32>
    %385 = tpu.matmul %383, %384, %cst_97 {dimension_numbers = #tpu.dot_dimension_numbers<[1], [0], [0], [1], [0, 0, 1, 1], [], []>} : vector<1x10xf32>, vector<10x10xf32>, vector<1x10xf32> -> vector<1x10xf32>
    %386 = arith.addf %382, %385 : vector<1x10xf32>
    %387 = vector.extract_strided_slice %366 {offsets = [5, 0], sizes = [1, 10], strides = [1, 1]} : vector<10x10xf32> to vector<1x10xf32>
    %388 = vector.extract_strided_slice %6 {offsets = [50, 0], sizes = [10, 10], strides = [1, 1]} : vector<100x10xf32> to vector<10x10xf32>
    %cst_98 = arith.constant dense<0.000000e+00> : vector<1x10xf32>
    %389 = tpu.matmul %387, %388, %cst_98 {dimension_numbers = #tpu.dot_dimension_numbers<[1], [0], [0], [1], [0, 0, 1, 1], [], []>} : vector<1x10xf32>, vector<10x10xf32>, vector<1x10xf32> -> vector<1x10xf32>
    %390 = arith.addf %386, %389 : vector<1x10xf32>
    %391 = vector.extract_strided_slice %366 {offsets = [6, 0], sizes = [1, 10], strides = [1, 1]} : vector<10x10xf32> to vector<1x10xf32>
    %392 = vector.extract_strided_slice %6 {offsets = [60, 0], sizes = [10, 10], strides = [1, 1]} : vector<100x10xf32> to vector<10x10xf32>
    %cst_99 = arith.constant dense<0.000000e+00> : vector<1x10xf32>
    %393 = tpu.matmul %391, %392, %cst_99 {dimension_numbers = #tpu.dot_dimension_numbers<[1], [0], [0], [1], [0, 0, 1, 1], [], []>} : vector<1x10xf32>, vector<10x10xf32>, vector<1x10xf32> -> vector<1x10xf32>
    %394 = arith.addf %390, %393 : vector<1x10xf32>
    %395 = vector.extract_strided_slice %366 {offsets = [7, 0], sizes = [1, 10], strides = [1, 1]} : vector<10x10xf32> to vector<1x10xf32>
    %396 = vector.extract_strided_slice %6 {offsets = [70, 0], sizes = [10, 10], strides = [1, 1]} : vector<100x10xf32> to vector<10x10xf32>
    %cst_100 = arith.constant dense<0.000000e+00> : vector<1x10xf32>
    %397 = tpu.matmul %395, %396, %cst_100 {dimension_numbers = #tpu.dot_dimension_numbers<[1], [0], [0], [1], [0, 0, 1, 1], [], []>} : vector<1x10xf32>, vector<10x10xf32>, vector<1x10xf32> -> vector<1x10xf32>
    %398 = arith.addf %394, %397 : vector<1x10xf32>
    %399 = vector.extract_strided_slice %366 {offsets = [8, 0], sizes = [1, 10], strides = [1, 1]} : vector<10x10xf32> to vector<1x10xf32>
    %400 = vector.extract_strided_slice %6 {offsets = [80, 0], sizes = [10, 10], strides = [1, 1]} : vector<100x10xf32> to vector<10x10xf32>
    %cst_101 = arith.constant dense<0.000000e+00> : vector<1x10xf32>
    %401 = tpu.matmul %399, %400, %cst_101 {dimension_numbers = #tpu.dot_dimension_numbers<[1], [0], [0], [1], [0, 0, 1, 1], [], []>} : vector<1x10xf32>, vector<10x10xf32>, vector<1x10xf32> -> vector<1x10xf32>
    %402 = arith.addf %398, %401 : vector<1x10xf32>
    %403 = vector.extract_strided_slice %366 {offsets = [9, 0], sizes = [1, 10], strides = [1, 1]} : vector<10x10xf32> to vector<1x10xf32>
    %404 = vector.extract_strided_slice %6 {offsets = [90, 0], sizes = [10, 10], strides = [1, 1]} : vector<100x10xf32> to vector<10x10xf32>
    %cst_102 = arith.constant dense<0.000000e+00> : vector<1x10xf32>
    %405 = tpu.matmul %403, %404, %cst_102 {dimension_numbers = #tpu.dot_dimension_numbers<[1], [0], [0], [1], [0, 0, 1, 1], [], []>} : vector<1x10xf32>, vector<10x10xf32>, vector<1x10xf32> -> vector<1x10xf32>
    %406 = arith.addf %402, %405 : vector<1x10xf32>
    %c0_103 = arith.constant 0 : index
    %c0_104 = arith.constant 0 : index
    %c0_105 = arith.constant 0 : index
    %407 = vector.load %arg8[%c0_103, %c0_104, %c0_105] : memref<1x1x10xf32, #tpu.memory_space<vmem>>, vector<1x1x10xf32>
    %408 = vector.shape_cast %407 : vector<1x1x10xf32> to vector<1x10xf32>
    %409 = vector.shape_cast %406 : vector<1x10xf32> to vector<1x1x10xf32>
    tpu.vector_store %arg8[%c0_103, %c0_104, %c0_105], %409 {strides = array<i32>} : memref<1x1x10xf32, #tpu.memory_space<vmem>>, vector<1x1x10xf32>,
    return
  }
  func.func @transform_0(%arg0: i32) -> (i32, i32, i32) {
    %c0_i32 = arith.constant 0 : i32
    %c0_i32_0 = arith.constant 0 : i32
    %c0_i32_1 = arith.constant 0 : i32
    return %arg0, %c0_i32, %c0_i32_0 : i32, i32, i32
  }
  func.func @transform_1(%arg0: i32) -> (i32, i32) {
    %c0_i32 = arith.constant 0 : i32
    %c0_i32_0 = arith.constant 0 : i32
    %c0_i32_1 = arith.constant 0 : i32
    return %c0_i32, %c0_i32_0 : i32, i32
  }
  func.func @transform_2(%arg0: i32) -> (i32, i32) {
    %c0_i32 = arith.constant 0 : i32
    %c0_i32_0 = arith.constant 0 : i32
    %c0_i32_1 = arith.constant 0 : i32
    return %c0_i32, %c0_i32_0 : i32, i32
  }
  func.func @transform_3(%arg0: i32) -> (i32, i32) {
    %c0_i32 = arith.constant 0 : i32
    %c0_i32_0 = arith.constant 0 : i32
    %c0_i32_1 = arith.constant 0 : i32
    return %c0_i32, %c0_i32_0 : i32, i32
  }
  func.func @transform_4(%arg0: i32) -> (i32, i32, i32) {
    %c0_i32 = arith.constant 0 : i32
    %c0_i32_0 = arith.constant 0 : i32
    %c0_i32_1 = arith.constant 0 : i32
    %c0_i32_2 = arith.constant 0 : i32
    return %c0_i32, %c0_i32_0, %c0_i32_1 : i32, i32, i32
  }
  func.func @transform_5(%arg0: i32) -> (i32, i32) {
    %c0_i32 = arith.constant 0 : i32
    %c0_i32_0 = arith.constant 0 : i32
    %c0_i32_1 = arith.constant 0 : i32
    return %c0_i32, %c0_i32_0 : i32, i32
  }
  func.func @transform_6(%arg0: i32) -> (i32, i32) {
    %c0_i32 = arith.constant 0 : i32
    %c0_i32_0 = arith.constant 0 : i32
    %c0_i32_1 = arith.constant 0 : i32
    return %c0_i32, %c0_i32_0 : i32, i32
  }
  func.func @transform_7(%arg0: i32) -> (i32, i32, i32) {
    %c0_i32 = arith.constant 0 : i32
    %c0_i32_0 = arith.constant 0 : i32
    %c0_i32_1 = arith.constant 0 : i32
    return %arg0, %c0_i32, %c0_i32_0 : i32, i32, i32
  }
}

</mosaic_0001>

<bundles_post_ra>
// kernel: tpu_custom_call.1
= control target key start
LH: loop header
LB: loop body
LE: loop exit
PB: predicated region body
PF: predicated region fallthrough
CT: control target
= control target key end

     0   :  { %12 = vsyncpa [#allocation3], 0  ;;  %s10163_s0 = inlined_call_operand.vmem [shape: f32[2,8,2], index: 0, kind: input, shape index: {}]   ;;  %s10164_s1 = inlined_call_operand.vmem [shape: f32[2,40], index: 1, kind: input, shape index: {}]   ;;  %s10165_s2 = inlined_call_operand.vmem [shape: f32[10,40], index: 2, kind: input, shape index: {}]   ;;  %s10166_s3 = inlined_call_operand.vmem [shape: f32[1,40], index: 3, kind: input, shape index: {}]   ;;  %s10167_s4 = inlined_call_operand.hbm [shape: f32[10,10,10], index: 4, kind: input, shape index: {}]   ;;  %s10168_s5 = inlined_call_operand.vmem [shape: f32[100,10], index: 5, kind: input, shape index: {}]   ;;  %s10169_s6 = inlined_call_operand.vmem [shape: f32[1,10], index: 6, kind: input, shape index: {}]   ;;  %s10170_s7 = inlined_call_operand.hbm [shape: f32[2,1,10], index: 7, kind: output, shape index: {}]  }
   0x1   :  { %13 = vsyncpa [#allocation4], 0 }
   0x2   :  { %15 = vsyncpa [#allocation4 + $0x1], 0  ;;  %s7691_s24 = smov 0   ;;  %s7693_s25 = smov 0  }
   0x3   :  { %s7695_s26 = smov 0   ;;  %s7697_s27 = smov 0  }
   0x4 LB: > { %s7712_s28 = sadd.s32 4294967295, %s7640_s27   ;;  %s6968_s29 = sadd.s32 4294967294, %s7640_s27   ;;  %s7640_s27 = sphi %s7697_s27, %s10290_s27   ;;  %s7636_s26 = sphi %s7695_s26, %s10289_s26   ;;  %s7632_s25 = sphi %s7693_s25, %s10288_s25   ;;  %s7628_s24 = sphi %s7691_s24, %s10287_s24  }
   0x5   : > { %s7716_s30 = sadd.s32 1, %s7640_s27   ;;  %s180_s8 = sadd.s32 1, %s7636_s26 }
   0x6   : > { %s177_s9 = ssub.s32 %s7640_s27, %s7716_s30  ;;  %p190_p0 = scmp.ne.s32.totalorder %s7636_s26, %s7632_s25 }
   0x7   : > { %p178_p1 = scmp.eq.s32.totalorder %s177_s9, 0  ;;  %p191_p2 = scmp.eq.s32.totalorder %s7712_s28, 1 }
   0x8   : > { %p196_p3 = scmp.ne.s32.totalorder %s7632_s25, %s7628_s24  ;;  %p197_p4 = scmp.eq.s32.totalorder %s6968_s29, 1 }
   0x9   : > { %s7727_s10 = scalar_select %p178_p1, %s7636_s26, %s180_s8  }
   0xa   : > { %p7729_p5 = por %p191_p2, %p190_p0  ;;  %p7733_p6 = por %p197_p4, %p196_p3 }
   0xb   : > { %p6969_p7 = scmp.ge.s32.totalorder %s7640_s27, 1  ;;  %p204_p8 = scmp.lt.s32.totalorder %s7640_s27, 3 }
   0xc   : > { %p7411_p9 = scmp.eq.s32.totalorder %s7712_s28, 0  ;;  %s224_s15 = sshll.u32 %s10167_s4, 4  ;;  %s225_s15 = int_to_ptr.hbm [resolvable:$true] %s224_s15 }
   0xd   : > { %p205_p10 = pnand %p6969_p7, %p204_p8  ;;  %s7642_s16 = smov [#allocation2]  }
   0xe   : > { %s226_s17 = sshll.u32 %s7642_s16, 4  ;;  %s7643_s18 = smov 128   ;;  %s227_s17 = int_to_ptr.vmem [resolvable:$true] %s226_s17 }
   0xf   : > { %p7403_p11 = pneg %p205_p10  ;;  %s7644_s19 = smov 8  }
  0x10   : > { %255 = sbr.rel (%p205_p10) target bundleno = 7760 (0x1e50), region = 48 }
  0x11   : > { %p7404_p12 = pnand %p7411_p9, %p7403_p11 }
  0x13   : > { %7406 = dma.hbm_to_vmem [thread:$0]  (!%p7404_p12), %s225_s15, 2560, %s227_s17, [#allocation3], %s7643_s18, %s7643_s18, %s7644_s19  }
  0x15   : > { %7619 = dma.done.wait (%p7411_p9), [#allocation3], 2560  }
  0x16   : > { %7621 = vsyncadd (%p7411_p9), [#allocation3], 4294964736  ;;  %p286_p13 = scmp.lt.s32.totalorder %s7712_s28, 1  ;;  %v1679_v0 = vlaneseq  ;;  %vm333_vm1 = vcmask 1041408   ;;  %v7645_v4 = vmov 0.0   ;;  %vm329_vm2 = vcmask 15360   ;;  %s6897_s16 = scalar_lea.hbm %s10170_s7, %s7712_s28 }
  0x17   : > { %v293_v6 = vld [vmem:[%s10165_s2 + $0x8] sm:$0x3]  ;;  %v291_v7 = vld [vmem:[%s10164_s1] sm:$0x3]  ;;  %s7646_s19 = smov 108   ;;  %s7649_s22 = smov 98  }
  0x18   : > { %s287_s20 = scalar_select %p286_p13, %s7712_s28, 1  ;;  %v1680_v1 = vshrl.u32 %v1679_v0, 7  ;;  %v7751_v2 = vand.u32 127, %v1679_v0  ;;  %v292_v8 = vld [vmem:[%s10165_s2] sm:$0xff]  ;;  %6977 = vmatpush.msk.msra.mxu1 %vm333_vm1, %v293_v6  ;;  %6975 = vmatpush.msk.msra.mxu0 %vm333_vm1, %v291_v7  ;;  %vm357_vm8 = vcmask 80896  }
  0x19   : > { %6979 = vmatpush.msk.msra.mxu2 %vm333_vm1, %v293_v6  ;;  %6982 = vmatpush.msk.msra.mxu3 %vm333_vm1, %v293_v6  ;;  %v294_v12 = vld [vmem:[%s10166_s3] sm:$0x1]  ;;  %s284_s13 = sand.u32 1, %s7632_s25  }
  0x1a   : > { %s6974_s21 = sshll.u32 %s287_s20, 3  ;;  %v1681_v3 = vadd.s32 8, %v1680_v1  ;;  %vm1684_vm0 = vcmp.eq.s32.totalorder %v1680_v1, %v7751_v2  ;;  %379 = vmatpush.msra.mxu1 %v292_v8  ;;  %6985 = vmatpush.msk.msrb.mxu0 %vm333_vm1, %v293_v6  ;;  %s7647_s20 = smov 10   ;;  %v7794_v40 = vld [vmem:[%s10166_s3] ss:$0 sm:$0xff] }
  0x1b   : > { %s289_s29 = scalar_lea.vmem %s10163_s0, %s6974_s21  ;;  %v7757_v5 = vsel %vm1684_vm0, 1.0, %v7645_v4  ;;  %380 = vmatmul.f32.vlgmr.msra.gmra.mxu1 %v7645_v4  ;;  %443 = vmatpush.msra.mxu2 %v292_v8  ;;  %s7648_s21 = smov 20  }
  0x1c   : > { %10195 = vst [vmem:[#allocation8_spill] sm:$0xff] %v7757_v5  ;;  %vm1685_vm3 = vcmp.eq.s32.totalorder %v1681_v3, %v7751_v2  ;;  %v290_v10 = vld [vmem:[%s289_s29] sm:$0xff]  ;;  %517 = vmatpush.msra.mxu3 %v292_v8  ;;  %6988 = vmatpush.msk.msrb.mxu1 %vm333_vm1, %v293_v6  ;;  %s285_s17 = scalar_lea.vmem [#allocation5], %s284_s13  ;;  %s7594_s29 = scalar_lea.hbm %s10170_s7, 2 }
  0x1d   : > { %v7769_v9 = vsel %vm1685_vm3, 1.0, %v7645_v4  ;;  %6976 = vmatmul.msk.f32.vlgmr.msra.gmra.mxu0 %vm329_vm2, %v290_v10  ;;  %6991 = vmatpush.msk.msrb.mxu2 %vm333_vm1, %v293_v6  ;;  %s6899_s18 = sshll.u32 %s285_s17, 4  ;;  %s6900_s18 = int_to_ptr.vmem [resolvable:$true] %s6899_s18 }
  0x1e   : > { %10196 = vst [vmem:[#allocation9_spill] sm:$0xff] %v7769_v9  ;;  %588 = vmatpush.msrb.mxu0 %v292_v8  ;;  %6994 = vmatpush.msk.msrb.mxu3 %vm333_vm1, %v293_v6 }
  0x1f   : > { %659 = vmatpush.msrb.mxu1 %v292_v8  ;;  %730 = vmatpush.msrb.mxu2 %v292_v8 }
  0x20   : > { %801 = vmatpush.msrb.mxu3 %v292_v8  ;;  %6997 = vmatpush.msk.msra.mxu0 %vm333_vm1, %v293_v6 }
  0x22   : > { %872 = vmatpush.msra.mxu0 %v292_v8 }
  0x98   : > { %v381_v13 = vpop.f32.mrf.mxu1 }
  0x9a   : > { %v7780_v11 = vpop.f32.mrf.mxu0 }
  0x9b   : > { %v384_v14 = vadd.f32 %v381_v13, %v7780_v11 }
  0x9d   : > { %v385_v15 = vadd.f32 %v384_v14, %v294_v12 }
  0x9f   : > { %7459 = vtanh.f32 %v385_v15  ;;  %v6978_v17 = vmul.f32 -1.442695, %v385_v15 }
  0xa1   : > { %7461 = vpow2.f32 %v6978_v17 }
  0xa5   : > { %v7460_v16 = vpop.eup %7459 }
  0xa6   : > { %408 = vrot.lane.b32.xlu0 %v7460_v16, %s7646_s19 }
  0xa7   : > { %v7462_v18 = vpop.eup %7461 }
  0xa8   : > { %v389_v19 = vadd.f32 1.0, %v7462_v18 }
  0xaa   : > { %7463 = vrcp.f32 %v389_v19  ;;  %v401_v25 = vand.u32 2147483648, %v389_v19  ;;  %vm395_vm5 = vweird.f32 %v389_v19  ;;  %v399_v26 = vand.u32 2147483647, %v389_v19 }
  0xac   : > { %v402_v28 = vor.u32 1.1754944e-38, %v401_v25  ;;  %vm400_vm7 = vcmp.eq.f32.partialorder %v399_v26, 8.507059e+37 }
  0xb0   : > { %v7464_v20 = vpop.eup %7463 }
  0xb1   : > { %v391_v21 = vmul.f32 %v7464_v20, %v389_v19  ;;  %vm396_vm4 = vweird.f32 %v7464_v20 }
  0xb2   : > { %vm397_vm6 = vmor %vm395_vm5, %vm396_vm4 }
  0xb3   : > { %v392_v22 = vsub.f32 1.0, %v391_v21 }
  0xb5   : > { %v393_v23 = vmul.f32 %v7464_v20, %v392_v22 }
  0xb7   : > { %v394_v24 = vadd.f32 %v7464_v20, %v393_v23 }
  0xb9   : > { %v398_v27 = vsel %vm397_vm6, %v7464_v20, %v394_v24 }
  0xba   : > { %v403_v30 = vsel %vm400_vm7, %v402_v28, %v398_v27 }
  0xbb   : > { %v406_v32 = vmul.f32 0.0, %v403_v30 }
 0x118   : > { %v409_v29 = vpop.permute.xlu0 %408 }
 0x119   : > { %v411_v31 = vmul.f32 %v409_v29, %v403_v30 }
 0x11b   : > { %413 = vrot.lane.b32.xlu0 %v411_v31, %s7647_s20 }
 0x18d   : > { %v414_v33 = vpop.permute.xlu0 %413 }
 0x18e   : > { %v416_v34 = vadd.f32 %v414_v33, %v406_v32 }
 0x190   : > { %7465 = vtanh.f32 %v416_v34  ;;  %v477_v60 = vrot.slane %v416_v34, 7 }
 0x196   : > { %v7466_v35 = vpop.eup %7465 }
 0x197   : > { %419 = vrot.lane.b32.xlu1 %v7466_v35, %s7648_s21 }
 0x209   : > { %v420_v36 = vpop.permute.xlu1 %419 }
 0x20a   : > { %v422_v37 = vmul.f32 %v420_v36, %v403_v30 }
 0x20c   : > { %424 = vrot.lane.b32.xlu1 %v422_v37, %s7649_s22  ;;  %v922_v3 = vrot.slane %v422_v37, 7 }
 0x27e   : > { %v425_v38 = vpop.permute.xlu1 %424 }
 0x27f   : > { %6980 = vmatmul.msk.f32.vlgmr.msra.gmra.mxu2 %vm357_vm8, %v425_v38 }
 0x302   : > { %v445_v39 = vpop.f32.mrf.mxu2 }
 0x303   : > { %v449_v41 = vrot.slane %v445_v39, 7 }
 0x305   : > { %v451_v42 = vadd.f32 %v449_v41, %v7780_v11 }
 0x307   : > { %v455_v43 = vadd.f32 %v7794_v40, %v451_v42 }
 0x309   : > { %7467 = vtanh.f32 %v455_v43  ;;  %v6981_v45 = vmul.f32 -1.442695, %v455_v43 }
 0x30b   : > { %7469 = vpow2.f32 %v6981_v45 }
 0x30f   : > { %v7468_v44 = vpop.eup %7467 }
 0x310   : > { %481 = vrot.lane.b32.xlu2 %v7468_v44, %s7646_s19 }
 0x311   : > { %v7470_v46 = vpop.eup %7469 }
 0x312   : > { %v459_v47 = vadd.f32 1.0, %v7470_v46 }
 0x314   : > { %7471 = vrcp.f32 %v459_v47  ;;  %v471_v53 = vand.u32 2147483648, %v459_v47  ;;  %vm465_vm10 = vweird.f32 %v459_v47  ;;  %v469_v54 = vand.u32 2147483647, %v459_v47 }
 0x316   : > { %v472_v56 = vor.u32 1.1754944e-38, %v471_v53  ;;  %vm470_vm12 = vcmp.eq.f32.partialorder %v469_v54, 8.507059e+37 }
 0x31a   : > { %v7472_v48 = vpop.eup %7471 }
 0x31b   : > { %v461_v49 = vmul.f32 %v7472_v48, %v459_v47  ;;  %vm466_vm9 = vweird.f32 %v7472_v48 }
 0x31c   : > { %vm467_vm11 = vmor %vm465_vm10, %vm466_vm9 }
 0x31d   : > { %v462_v50 = vsub.f32 1.0, %v461_v49 }
 0x31f   : > { %v463_v51 = vmul.f32 %v7472_v48, %v462_v50 }
 0x321   : > { %v464_v52 = vadd.f32 %v7472_v48, %v463_v51 }
 0x323   : > { %v468_v55 = vsel %vm467_vm11, %v7472_v48, %v464_v52  ;;  %vm953_vm11 = vcmask 74752  }
 0x324   : > { %v473_v58 = vsel %vm470_vm12, %v472_v56, %v468_v55 }
 0x325   : > { %v479_v61 = vmul.f32 %v477_v60, %v473_v58 }
 0x36a   : > { %v482_v57 = vpop.permute.xlu2 %481 }
 0x36b   : > { %v484_v59 = vmul.f32 %v482_v57, %v473_v58 }
 0x36d   : > { %486 = vrot.lane.b32.xlu2 %v484_v59, %s7647_s20 }
 0x3c7   : > { %v487_v62 = vpop.permute.xlu2 %486 }
 0x3c8   : > { %v489_v63 = vadd.f32 %v487_v62, %v479_v61 }
 0x3ca   : > { %7473 = vtanh.f32 %v489_v63  ;;  %v548_v31 = vrot.slane %v489_v63, 7 }
 0x3d0   : > { %v7474_v0 = vpop.eup %7473 }
 0x3d1   : > { %492 = vrot.lane.b32.xlu0 %v7474_v0, %s7648_s21 }
 0x443   : > { %v493_v1 = vpop.permute.xlu0 %492 }
 0x444   : > { %v495_v4 = vmul.f32 %v493_v1, %v473_v58 }
 0x446   : > { %v497_v6 = vrot.slane %v495_v4, 1  ;;  %v7801_v7 = vsub.f32 %v495_v4, %v922_v3  ;;  %v1011_v37 = vrot.slane %v495_v4, 7 }
 0x448   : > { %498 = vrot.lane.b32.xlu1 %v497_v6, %s7649_s22 }
 0x4ba   : > { %v499_v8 = vpop.permute.xlu1 %498 }
 0x4bb   : > { %6983 = vmatmul.msk.f32.vlgmr.msra.gmra.mxu3 %vm357_vm8, %v499_v8 }
 0x53e   : > { %v519_v10 = vpop.f32.mrf.mxu3 }
 0x53f   : > { %v523_v12 = vrot.slane %v519_v10, 6 }
 0x541   : > { %v525_v13 = vadd.f32 %v523_v12, %v7780_v11 }
 0x543   : > { %v526_v14 = vadd.f32 %v7794_v40, %v525_v13 }
 0x545   : > { %7475 = vtanh.f32 %v526_v14  ;;  %v6984_v16 = vmul.f32 -1.442695, %v526_v14 }
 0x547   : > { %7477 = vpow2.f32 %v6984_v16 }
 0x54b   : > { %v7476_v15 = vpop.eup %7475 }
 0x54c   : > { %552 = vrot.lane.b32.xlu2 %v7476_v15, %s7646_s19 }
 0x54d   : > { %v7478_v17 = vpop.eup %7477 }
 0x54e   : > { %v530_v18 = vadd.f32 1.0, %v7478_v17 }
 0x550   : > { %7479 = vrcp.f32 %v530_v18  ;;  %v542_v24 = vand.u32 2147483648, %v530_v18  ;;  %vm536_vm14 = vweird.f32 %v530_v18  ;;  %v540_v25 = vand.u32 2147483647, %v530_v18 }
 0x552   : > { %v543_v27 = vor.u32 1.1754944e-38, %v542_v24  ;;  %vm541_vm0 = vcmp.eq.f32.partialorder %v540_v25, 8.507059e+37 }
 0x556   : > { %v7480_v19 = vpop.eup %7479 }
 0x557   : > { %v532_v20 = vmul.f32 %v7480_v19, %v530_v18  ;;  %vm537_vm13 = vweird.f32 %v7480_v19 }
 0x558   : > { %vm538_vm15 = vmor %vm536_vm14, %vm537_vm13 }
 0x559   : > { %v533_v21 = vsub.f32 1.0, %v532_v20  ;;  %v925_v20 = vperm.slane %v7801_v7, 1 }
 0x55b   : > { %v534_v22 = vmul.f32 %v7480_v19, %v533_v21 }
 0x55d   : > { %v535_v23 = vadd.f32 %v7480_v19, %v534_v22 }
 0x55f   : > { %v539_v26 = vsel %vm538_vm15, %v7480_v19, %v535_v23 }
 0x560   : > { %v544_v29 = vsel %vm541_vm0, %v543_v27, %v539_v26  ;;  %vm2251_vm0 = vcmask 130112  }
 0x561   : > { %v550_v32 = vmul.f32 %v548_v31, %v544_v29 }
 0x5a6   : > { %v553_v28 = vpop.permute.xlu2 %552 }
 0x5a7   : > { %v555_v30 = vmul.f32 %v553_v28, %v544_v29 }
 0x5a9   : > { %557 = vrot.lane.b32.xlu0 %v555_v30, %s7647_s20 }
 0x61b   : > { %v558_v33 = vpop.permute.xlu0 %557 }
 0x61c   : > { %v560_v34 = vadd.f32 %v558_v33, %v550_v32 }
 0x61e   : > { %7481 = vtanh.f32 %v560_v34  ;;  %v619_v63 = vrot.slane %v560_v34, 7 }
 0x624   : > { %v7482_v35 = vpop.eup %7481 }
 0x625   : > { %563 = vrot.lane.b32.xlu1 %v7482_v35, %s7648_s21 }
 0x697   : > { %v564_v36 = vpop.permute.xlu1 %563 }
 0x698   : > { %v566_v38 = vmul.f32 %v564_v36, %v544_v29 }
 0x69a   : > { %v568_v39 = vrot.slane %v566_v38, 2  ;;  %v7810_v41 = vsub.f32 %v566_v38, %v1011_v37  ;;  %v1099_v8 = vrot.slane %v566_v38, 7 }
 0x69c   : > { %569 = vrot.lane.b32.xlu2 %v568_v39, %s7649_s22  ;;  %v1014_v35 = vperm.slane %v7810_v41, 2 }
 0x6f6   : > { %v570_v42 = vpop.permute.xlu2 %569 }
 0x6f7   : > { %6986 = vmatmul.msk.f32.vlgmr.msrb.gmra.mxu0 %vm357_vm8, %v570_v42 }
 0x774   : > { %v590_v43 = vpop.f32.mrf.mxu0 }
 0x775   : > { %v594_v44 = vrot.slane %v590_v43, 5  ;;  %v7842_v43 = vld [vmem:[#allocation2 + $0x10] sm:$0xff] }
 0x777   : > { %v596_v45 = vadd.f32 %v594_v44, %v7780_v11 }
 0x779   : > { %v597_v46 = vadd.f32 %v7794_v40, %v596_v45 }
 0x77b   : > { %7483 = vtanh.f32 %v597_v46  ;;  %v6987_v48 = vmul.f32 -1.442695, %v597_v46  ;;  %v7848_v46 = vld [vmem:[#allocation2 + $0x18] sm:$0x3] }
 0x77d   : > { %7485 = vpow2.f32 %v6987_v48 }
 0x781   : > { %v7484_v47 = vpop.eup %7483 }
 0x782   : > { %623 = vrot.lane.b32.xlu0 %v7484_v47, %s7646_s19 }
 0x783   : > { %v7486_v49 = vpop.eup %7485 }
 0x784   : > { %v601_v50 = vadd.f32 1.0, %v7486_v49 }
 0x786   : > { %7487 = vrcp.f32 %v601_v50  ;;  %v613_v56 = vand.u32 2147483648, %v601_v50  ;;  %vm607_vm3 = vweird.f32 %v601_v50  ;;  %v611_v57 = vand.u32 2147483647, %v601_v50 }
 0x788   : > { %v614_v59 = vor.u32 1.1754944e-38, %v613_v56  ;;  %vm612_vm5 = vcmp.eq.f32.partialorder %v611_v57, 8.507059e+37  ;;  %v7864_v56 = vld [vmem:[#allocation2 + $0x80] sm:$0xff] }
 0x78c   : > { %v7488_v51 = vpop.eup %7487 }
 0x78d   : > { %v603_v52 = vmul.f32 %v7488_v51, %v601_v50  ;;  %vm608_vm2 = vweird.f32 %v7488_v51  ;;  %v7854_v50 = vld [vmem:[#allocation2 + $0x30] sm:$0xff] }
 0x78e   : > { %vm609_vm4 = vmor %vm607_vm3, %vm608_vm2  ;;  %vm2460_vm2 = vcmask 1041409   ;;  %vm2462_vm3 = vcmask 1042434  }
 0x78f   : > { %v604_v53 = vsub.f32 1.0, %v603_v52 }
 0x791   : > { %v605_v54 = vmul.f32 %v7488_v51, %v604_v53  ;;  %v7859_v53 = vld [vmem:[#allocation2 + $0x48] sm:$0x3] }
 0x793   : > { %v606_v55 = vadd.f32 %v7488_v51, %v605_v54 }
 0x795   : > { %v610_v58 = vsel %vm609_vm4, %v7488_v51, %v606_v55  ;;  %vm2464_vm4 = vcmask 1043459  }
 0x796   : > { %v615_v61 = vsel %vm612_vm5, %v614_v59, %v610_v58  ;;  %v7869_v59 = vld [vmem:[#allocation2 + $0x98] sm:$0x3]  ;;  %vm2466_vm5 = vcmask 1044484  }
 0x797   : > { %v621_v0 = vmul.f32 %v619_v63, %v615_v61  ;;  %v7876_v63 = vld [vmem:[#allocation2] sm:$0xff] }
 0x7f4   : > { %v624_v60 = vpop.permute.xlu0 %623 }
 0x7f5   : > { %v626_v62 = vmul.f32 %v624_v60, %v615_v61 }
 0x7f7   : > { %628 = vrot.lane.b32.xlu1 %v626_v62, %s7647_s20  ;;  %v7874_v62 = vld [vmem:[#allocation2 + $0x70] sm:$0xff] }
 0x869   : > { %v629_v1 = vpop.permute.xlu1 %628 }
 0x86a   : > { %v631_v3 = vadd.f32 %v629_v1, %v621_v0 }
 0x86c   : > { %7489 = vtanh.f32 %v631_v3  ;;  %v690_v36 = vrot.slane %v631_v3, 7 }
 0x872   : > { %v7490_v4 = vpop.eup %7489 }
 0x873   : > { %634 = vrot.lane.b32.xlu2 %v7490_v4, %s7648_s21 }
 0x8cd   : > { %v635_v6 = vpop.permute.xlu2 %634 }
 0x8ce   : > { %v7819_v10 = vmul.f32 %v635_v6, %v615_v61 }
 0x8d0   : > { %v639_v12 = vrot.slane %v7819_v10, 3  ;;  %v1101_v13 = vsub.f32 %v7819_v10, %v1099_v8  ;;  %v7886_v8 = vld [vmem:[#allocation2 + $0x20] sm:$0xff] }
 0x8d2   : > { %640 = vrot.lane.b32.xlu0 %v639_v12, %s7649_s22  ;;  %v1102_v48 = vperm.slane %v1101_v13, 3 }
 0x944   : > { %v641_v14 = vpop.permute.xlu0 %640 }
 0x945   : > { %6989 = vmatmul.msk.f32.vlgmr.msrb.gmra.mxu1 %vm357_vm8, %v641_v14 }
 0x9c2   : > { %v661_v15 = vpop.f32.mrf.mxu1 }
 0x9c3   : > { %v665_v16 = vrot.slane %v661_v15, 4 }
 0x9c5   : > { %v667_v17 = vadd.f32 %v665_v16, %v7780_v11  ;;  %v7894_v16 = vld [vmem:[#allocation2 + $0x38] sm:$0x3] }
 0x9c7   : > { %v668_v18 = vadd.f32 %v7794_v40, %v667_v17 }
 0x9c9   : > { %7491 = vtanh.f32 %v668_v18  ;;  %v6990_v21 = vmul.f32 -1.442695, %v668_v18 }
 0x9cb   : > { %7493 = vpow2.f32 %v6990_v21  ;;  %v7902_v21 = vld [vmem:[#allocation2 + $0x50] sm:$0xff] }
 0x9cf   : > { %v7492_v19 = vpop.eup %7491 }
 0x9d0   : > { %694 = vrot.lane.b32.xlu1 %v7492_v19, %s7646_s19 }
 0x9d1   : > { %v7494_v22 = vpop.eup %7493 }
 0x9d2   : > { %v672_v23 = vadd.f32 1.0, %v7494_v22 }
 0x9d4   : > { %7495 = vrcp.f32 %v672_v23  ;;  %v684_v29 = vand.u32 2147483648, %v672_v23  ;;  %vm678_vm7 = vweird.f32 %v672_v23  ;;  %v682_v30 = vand.u32 2147483647, %v672_v23 }
 0x9d6   : > { %v685_v32 = vor.u32 1.1754944e-38, %v684_v29  ;;  %vm683_vm10 = vcmp.eq.f32.partialorder %v682_v30, 8.507059e+37 }
 0x9d8   : > { %927 = vrot.lane.b32.xlu1 %v925_v20, %s7649_s22 }
 0x9da   : > { %v7496_v24 = vpop.eup %7495 }
 0x9db   : > { %v674_v25 = vmul.f32 %v7496_v24, %v672_v23  ;;  %vm679_vm6 = vweird.f32 %v7496_v24 }
 0x9dc   : > { %vm680_vm9 = vmor %vm678_vm7, %vm679_vm6  ;;  %vm2468_vm6 = vcmask 1045509   ;;  %vm2470_vm7 = vcmask 1046534  }
 0x9dd   : > { %v675_v26 = vsub.f32 1.0, %v674_v25 }
 0x9df   : > { %v676_v27 = vmul.f32 %v7496_v24, %v675_v26  ;;  %v7910_v26 = vld [vmem:[#allocation2 + $0x88] sm:$0x3] }
 0x9e1   : > { %v677_v28 = vadd.f32 %v7496_v24, %v676_v27 }
 0x9e3   : > { %v681_v31 = vsel %vm680_vm9, %v7496_v24, %v677_v28  ;;  %vm2472_vm9 = vcmask 1047559  }
 0x9e4   : > { %v7830_v33 = vsel %vm683_vm10, %v685_v32, %v681_v31  ;;  %v7918_v31 = vld [vmem:[#allocation2 + $0x60] sm:$0xff] }
 0x9e5   : > { %v692_v37 = vmul.f32 %v690_v36, %v7830_v33  ;;  %v7926_v36 = vld [vmem:[#allocation2 + $0x78] sm:$0x3] }
 0xa42   : > { %v695_v7 = vpop.permute.xlu1 %694 }
 0xa43   : > { %v697_v34 = vmul.f32 %v695_v7, %v7830_v33 }
 0xa45   : > { %699 = vrot.lane.b32.xlu2 %v697_v34, %s7647_s20 }
 0xa4a   : > { %v7884_v6 = vpop.permute.xlu1 %927 }
 0xa4b   : > { %v930_v13 = vmul.f32 %v7884_v6, %v7876_v63  ;;  %v933_v18 = vmul.f32 %v7884_v6, %v7848_v46  ;;  %v934_v23 = vmul.f32 %v7884_v6, %v7886_v8  ;;  %v939_v28 = vmul.f32 %v7884_v6, %v7859_v53 }
 0xa4c   : > { %v946_v7 = vmul.f32 %v7884_v6, %v7864_v56 }
 0xa4d   : > { %1016 = vrot.lane.b32.xlu2 %v1014_v35, %s7649_s22  ;;  %v950_v15 = vsel %vm357_vm8, %v930_v13, 0.0  ;;  %v960_v20 = vsel %vm953_vm11, %v933_v18, 0.0  ;;  %v963_v25 = vsel %vm357_vm8, %v934_v23, 0.0  ;;  %v978_v30 = vsel %vm953_vm11, %v939_v28, 0.0 }
 0xa4e   : > { %v999_v35 = vsel %vm357_vm8, %v946_v7, 0.0  ;;  %v940_v13 = vmul.f32 %v7884_v6, %v7902_v21  ;;  %v947_v18 = vmul.f32 %v7884_v6, %v7910_v26 }
 0xa9f   : > { %v700_v38 = vpop.permute.xlu2 %699 }
 0xaa0   : > { %v7837_v39 = vadd.f32 %v700_v38, %v692_v37  ;;  %v949_v38 = vmul.f32 %v7884_v6, %v7869_v59 }
 0xaa2   : > { %7497 = vtanh.f32 %v7837_v39 }
 0xaa7   : > { %v7840_v42 = vpop.permute.xlu2 %1016 }
 0xaa8   : > { %v7498_v44 = vpop.eup %7497  ;;  %v1021_v45 = vmul.f32 %v7840_v42, %v7842_v43  ;;  %v1022_v47 = vmul.f32 %v7840_v42, %v7848_v46  ;;  %v1025_v51 = vmul.f32 %v7840_v42, %v7854_v50  ;;  %v1028_v54 = vmul.f32 %v7840_v42, %v7859_v53 }
 0xaa9   : > { %705 = vrot.lane.b32.xlu0 %v7498_v44, %s7648_s21  ;;  %v1035_v57 = vmul.f32 %v7840_v42, %v7864_v56  ;;  %v1038_v60 = vmul.f32 %v7840_v42, %v7869_v59  ;;  %v1033_v0 = vmul.f32 %v7840_v42, %v7874_v62  ;;  %v1019_v1 = vmul.f32 %v7840_v42, %v7876_v63 }
 0xaaa   : > { %v1045_v41 = vsel %vm357_vm8, %v1021_v45, 0.0  ;;  %v1048_v49 = vsel %vm953_vm11, %v1022_v47, 0.0  ;;  %v1057_v52 = vsel %vm357_vm8, %v1025_v51, 0.0  ;;  %v1066_v55 = vsel %vm953_vm11, %v1028_v54, 0.0 }
 0xaab   : > { %1046 = vadd.xlane.f32.xlu2 %v1045_v41  ;;  %v1087_v58 = vsel %vm357_vm8, %v1035_v57, 0.0  ;;  %v1096_v61 = vsel %vm953_vm11, %v1038_v60, 0.0  ;;  %v1081_v3 = vsel %vm357_vm8, %v1033_v0, 0.0  ;;  %v1039_v4 = vsel %vm357_vm8, %v1019_v1, 0.0  ;;  %v7934_v41 = vld [vmem:[#allocation2 + $0x8] sm:$0x3] }
 0xaac   : > { %v1023_v12 = vmul.f32 %v7840_v42, %v7886_v8  ;;  %v1026_v17 = vmul.f32 %v7840_v42, %v7894_v16  ;;  %v1029_v22 = vmul.f32 %v7840_v42, %v7902_v21  ;;  %v1036_v27 = vmul.f32 %v7840_v42, %v7910_v26 }
 0xaad   : > { %v1031_v32 = vmul.f32 %v7840_v42, %v7918_v31  ;;  %v1034_v37 = vmul.f32 %v7840_v42, %v7926_v36  ;;  %v1008_v45 = vsel %vm953_vm11, %v949_v38, 0.0  ;;  %v931_v47 = vmul.f32 %v7884_v6, %v7934_v41 }
 0xaae   : > { %v1051_v14 = vsel %vm357_vm8, %v1023_v12, 0.0  ;;  %v1060_v19 = vsel %vm953_vm11, %v1026_v17, 0.0  ;;  %v1069_v24 = vsel %vm357_vm8, %v1029_v22, 0.0  ;;  %v1090_v29 = vsel %vm953_vm11, %v1036_v27, 0.0  ;;  %v7973_v22 = vld [vmem:[#allocation2 + $0x68] sm:$0x3] }
 0xaaf   : > { %v1075_v34 = vsel %vm357_vm8, %v1031_v32, 0.0  ;;  %v1084_v44 = vsel %vm953_vm11, %v1034_v37, 0.0  ;;  %v1020_v27 = vmul.f32 %v7840_v42, %v7934_v41 }
 0xab1   : > { %1104 = vrot.lane.b32.xlu0 %v1102_v48, %s7649_s22  ;;  %v942_v48 = vmul.f32 %v7884_v6, %v7918_v31 }
 0xab3   : > { %1049 = vadd.xlane.f32.xlu2 %v1048_v49  ;;  %v954_v49 = vsel %vm953_vm11, %v931_v47, 0.0  ;;  %v987_v51 = vsel %vm357_vm8, %v942_v48, 0.0 }
 0xabb   : > { %1058 = vadd.xlane.f32.xlu2 %v1057_v52  ;;  %v7942_v52 = vld [vmem:[#allocation2 + $0x28] sm:$0x3] }
 0xabc   : > { %v935_v54 = vmul.f32 %v7884_v6, %v7942_v52 }
 0xabe   : > { %v966_v57 = vsel %vm953_vm11, %v935_v54, 0.0 }
 0xac3   : > { %1067 = vadd.xlane.f32.xlu2 %v1066_v55  ;;  %v945_v55 = vmul.f32 %v7884_v6, %v7926_v36 }
 0xacb   : > { %1088 = vadd.xlane.f32.xlu2 %v1087_v58  ;;  %v996_v58 = vsel %vm953_vm11, %v945_v55, 0.0 }
 0xad3   : > { %1097 = vadd.xlane.f32.xlu2 %v1096_v61 }
 0xadb   : > { %1082 = vadd.xlane.f32.xlu2 %v1081_v3  ;;  %1040 = vadd.xlane.f32.xlu0 %v1039_v4  ;;  %v936_v3 = vmul.f32 %v7884_v6, %v7854_v50 }
 0xadd   : > { %v969_v4 = vsel %vm357_vm8, %v936_v3, 0.0 }
 0xae3   : > { %1052 = vadd.xlane.f32.xlu0 %v1051_v14  ;;  %951 = vadd.xlane.f32.xlu2 %v950_v15  ;;  %v1187_v14 = vrot.slane %v7819_v10, 7  ;;  %v943_v10 = vmul.f32 %v7884_v6, %v7973_v22 }
 0xaeb   : > { %1061 = vadd.xlane.f32.xlu0 %v1060_v19  ;;  %961 = vadd.xlane.f32.xlu2 %v960_v20  ;;  %v1002_v20 = vsel %vm953_vm11, %v947_v18, 0.0 }
 0xaf3   : > { %1070 = vadd.xlane.f32.xlu0 %v1069_v24  ;;  %964 = vadd.xlane.f32.xlu2 %v963_v25  ;;  %v990_v24 = vsel %vm953_vm11, %v943_v10, 0.0 }
 0xafb   : > { %1091 = vadd.xlane.f32.xlu0 %v1090_v29  ;;  %979 = vadd.xlane.f32.xlu2 %v978_v30  ;;  %v1042_v29 = vsel %vm953_vm11, %v1020_v27, 0.0  ;;  %v1024_v30 = vmul.f32 %v7840_v42, %v7942_v52 }
 0xafd   : > { %v1054_v7 = vsel %vm953_vm11, %v1024_v30, 0.0 }
 0xb03   : > { %1076 = vadd.xlane.f32.xlu0 %v1075_v34  ;;  %1000 = vadd.xlane.f32.xlu2 %v999_v35  ;;  %v7992_v34 = vld [vmem:[#allocation2 + $0x40] sm:$0xff] }
 0xb04   : > { %v1027_v35 = vmul.f32 %v7840_v42, %v7992_v34 }
 0xb06   : > { %v1063_v38 = vsel %vm357_vm8, %v1027_v35, 0.0 }
 0xb0b   : > { %1085 = vadd.xlane.f32.xlu0 %v1084_v44  ;;  %1009 = vadd.xlane.f32.xlu2 %v1008_v45  ;;  %v7999_v44 = vld [vmem:[#allocation2 + $0x58] sm:$0x3] }
 0xb0c   : > { %v1030_v45 = vmul.f32 %v7840_v42, %v7999_v44 }
 0xb0e   : > { %v1072_v48 = vsel %vm953_vm11, %v1030_v45, 0.0 }
 0xb13   : > { %955 = vadd.xlane.f32.xlu0 %v954_v49  ;;  %988 = vadd.xlane.f32.xlu2 %v987_v51  ;;  %v8006_v49 = vld [vmem:[#allocation2 + $0x90] sm:$0xff] }
 0xb14   : > { %v1037_v51 = vmul.f32 %v7840_v42, %v8006_v49  ;;  %v948_v27 = vmul.f32 %v7884_v6, %v8006_v49 }
 0xb16   : > { %v1093_v55 = vsel %vm357_vm8, %v1037_v51, 0.0  ;;  %v1005_v35 = vsel %vm357_vm8, %v948_v27, 0.0 }
 0xb1b   : > { %v706_v60 = vpop.permute.xlu0 %705  ;;  %967 = vadd.xlane.f32.xlu0 %v966_v57  ;;  %997 = vadd.xlane.f32.xlu2 %v996_v58  ;;  %v1032_v57 = vmul.f32 %v7840_v42, %v7973_v22 }
 0xb1c   : > { %v7951_v61 = vmul.f32 %v706_v60, %v7830_v33  ;;  %v981_v33 = vsel %vm357_vm8, %v940_v13, 0.0  ;;  %v937_v13 = vmul.f32 %v7884_v6, %v7894_v16 }
 0xb1d   : > { %v1078_v60 = vsel %vm953_vm11, %v1032_v57, 0.0 }
 0xb1e   : > { %v7953_v0 = vpop.xlane.xlu2 %1046  ;;  %v710_v1 = vrot.slane %v7951_v61, 4  ;;  %v1189_v15 = vsub.f32 %v7951_v61, %v1187_v14  ;;  %v972_v42 = vsel %vm953_vm11, %v937_v13, 0.0  ;;  %v938_v14 = vmul.f32 %v7884_v6, %v7992_v34 }
 0xb20   : > { %711 = vrot.lane.b32.xlu1 %v710_v1, %s7649_s22  ;;  %v1190_v19 = vperm.slane %v1189_v15, 4  ;;  %v932_v1 = vmul.f32 %v7884_v6, %v7842_v43  ;;  %v975_v18 = vsel %vm357_vm8, %v938_v14, 0.0 }
 0xb23   : > { %970 = vadd.xlane.f32.xlu0 %v969_v4  ;;  %v957_v4 = vsel %vm357_vm8, %v932_v1, 0.0 }
 0xb26   : > { %v7960_v12 = vpop.xlane.xlu2 %1049 }
 0xb2b   : > { %982 = vadd.xlane.f32.xlu0 %v981_v33 }
 0xb2e   : > { %v7967_v17 = vpop.xlane.xlu2 %1058 }
 0xb33   : > { %1003 = vadd.xlane.f32.xlu0 %v1002_v20  ;;  %1192 = vrot.lane.b32.xlu2 %v1190_v19, %s7649_s22  ;;  %v941_v19 = vmul.f32 %v7884_v6, %v7999_v44 }
 0xb35   : > { %v984_v10 = vsel %vm953_vm11, %v941_v19, 0.0 }
 0xb36   : > { %v7975_v23 = vpop.xlane.xlu2 %1067 }
 0xb3b   : > { %991 = vadd.xlane.f32.xlu0 %v990_v24 }
 0xb3e   : > { %v7980_v25 = vpop.xlane.xlu2 %1088 }
 0xb46   : > { %v7984_v28 = vpop.xlane.xlu2 %1097 }
 0xb4a   : > { %1043 = vadd.xlane.f32.xlu1 %v1042_v29 }
 0xb4e   : > { %v7989_v32 = vpop.xlane.xlu2 %1082 }
 0xb52   : > { %1055 = vadd.xlane.f32.xlu1 %v1054_v7 }
 0xb56   : > { %v7996_v37 = vpop.xlane.xlu2 %951 }
 0xb5a   : > { %1064 = vadd.xlane.f32.xlu1 %v1063_v38 }
 0xb5e   : > { %v8003_v47 = vpop.xlane.xlu2 %961 }
 0xb62   : > { %1073 = vadd.xlane.f32.xlu1 %v1072_v48  ;;  %v944_v48 = vmul.f32 %v7884_v6, %v7874_v62 }
 0xb64   : > { %v993_v57 = vsel %vm357_vm8, %v944_v48, 0.0 }
 0xb66   : > { %v8010_v54 = vpop.xlane.xlu2 %964 }
 0xb67   : > { %10197 = vst [vmem:[#allocation10_spill] sm:$0xff] %v8010_v54 }
 0xb6a   : > { %1094 = vadd.xlane.f32.xlu1 %v1093_v55 }
 0xb6e   : > { %v8015_v58 = vpop.xlane.xlu2 %979 }
 0xb6f   : > { %10198 = vst [vmem:[#allocation11_spill] sm:$0xff] %v8015_v58  ;;  %v761_v58 = vrot.slane %v7837_v39, 7 }
 0xb72   : > { %1079 = vadd.xlane.f32.xlu1 %v1078_v60 }
 0xb76   : > { %v8020_v3 = vpop.xlane.xlu2 %1000 }
 0xb77   : > { %10199 = vst [vmem:[#allocation12_spill] sm:$0xff] %v8020_v3 }
 0xb7a   : > { %958 = vadd.xlane.f32.xlu1 %v957_v4 }
 0xb7e   : > { %v8025_v33 = vpop.xlane.xlu2 %1009 }
 0xb7f   : > { %10200 = vst [vmem:[#allocation13_spill] sm:$0xff] %v8025_v33 }
 0xb82   : > { %973 = vadd.xlane.f32.xlu1 %v972_v42 }
 0xb86   : > { %v8030_v15 = vpop.xlane.xlu2 %988 }
 0xb87   : > { %10201 = vst [vmem:[#allocation14_spill] sm:$0xff] %v8030_v15 }
 0xb8a   : > { %976 = vadd.xlane.f32.xlu1 %v975_v18 }
 0xb8e   : > { %v8035_v20 = vpop.xlane.xlu2 %997 }
 0xb8f   : > { %10202 = vst [vmem:[#allocation15_spill] sm:$0xff] %v8035_v20 }
 0xb92   : > { %985 = vadd.xlane.f32.xlu1 %v984_v10  ;;  %v712_v24 = vpop.permute.xlu1 %711 }
 0xb93   : > { %6992 = vmatmul.msk.f32.vlgmr.msrb.gmra.mxu2 %vm357_vm8, %v712_v24 }
 0xb96   : > { %v8041_v29 = vpop.permute.xlu2 %1192 }
 0xb97   : > { %v1197_v30 = vmul.f32 %v8041_v29, %v7842_v43  ;;  %v1196_v7 = vmul.f32 %v8041_v29, %v7934_v41  ;;  %v1199_v51 = vmul.f32 %v8041_v29, %v7886_v8  ;;  %v1201_v55 = vmul.f32 %v8041_v29, %v7854_v50 }
 0xb98   : > { %v1202_v4 = vmul.f32 %v8041_v29, %v7894_v16  ;;  %v1195_v6 = vmul.f32 %v8041_v29, %v7876_v63  ;;  %v1204_v13 = vmul.f32 %v8041_v29, %v7859_v53  ;;  %v1205_v19 = vmul.f32 %v8041_v29, %v7902_v21 }
 0xb99   : > { %v1221_v38 = vsel %vm357_vm8, %v1197_v30, 0.0  ;;  %v1218_v45 = vsel %vm953_vm11, %v1196_v7, 0.0  ;;  %v1227_v60 = vsel %vm357_vm8, %v1199_v51, 0.0  ;;  %v1233_v1 = vsel %vm357_vm8, %v1201_v55, 0.0 }
 0xb9a   : > { %1006 = vadd.xlane.f32.xlu1 %v1005_v35  ;;  %1222 = vadd.xlane.f32.xlu0 %v1221_v38  ;;  %v1236_v42 = vsel %vm953_vm11, %v1202_v4, 0.0  ;;  %v1215_v14 = vsel %vm357_vm8, %v1195_v6, 0.0  ;;  %v1242_v18 = vsel %vm953_vm11, %v1204_v13, 0.0  ;;  %v1198_v10 = vmul.f32 %v8041_v29, %v7848_v46 }
 0xb9b   : > { %1219 = vadd.xlane.f32.xlu2 %v1218_v45  ;;  %v1211_v24 = vmul.f32 %v8041_v29, %v7864_v56  ;;  %v1245_v27 = vsel %vm357_vm8, %v1205_v19, 0.0  ;;  %v1200_v35 = vmul.f32 %v8041_v29, %v7942_v52  ;;  %v1203_v45 = vmul.f32 %v8041_v29, %v7992_v34 }
 0xb9c   : > { %v1224_v30 = vsel %vm953_vm11, %v1198_v10, 0.0  ;;  %v1206_v51 = vmul.f32 %v8041_v29, %v7999_v44  ;;  %v1207_v13 = vmul.f32 %v8041_v29, %v7918_v31 }
 0xb9d   : > { %v1263_v7 = vsel %vm357_vm8, %v1211_v24, 0.0  ;;  %v1230_v38 = vsel %vm953_vm11, %v1200_v35, 0.0  ;;  %v1239_v48 = vsel %vm357_vm8, %v1203_v45, 0.0 }
 0xb9e   : > { %v1248_v55 = vsel %vm953_vm11, %v1206_v51, 0.0 }
 0xba2   : > { %994 = vadd.xlane.f32.xlu1 %v993_v57  ;;  %1228 = vadd.xlane.f32.xlu0 %v1227_v60  ;;  %v1213_v57 = vmul.f32 %v8041_v29, %v8006_v49 }
 0xba3   : > { %1234 = vadd.xlane.f32.xlu2 %v1233_v1  ;;  %v8089_v1 = vpop.permute.xlu0 %1104 }
 0xba4   : > { %v1269_v60 = vsel %vm357_vm8, %v1213_v57, 0.0  ;;  %v1108_v4 = vmul.f32 %v8089_v1, %v7934_v41  ;;  %v1113_v19 = vmul.f32 %v8089_v1, %v7854_v50  ;;  %v1116_v24 = vmul.f32 %v8089_v1, %v7859_v53 }
 0xba5   : > { %v1126_v35 = vmul.f32 %v8089_v1, %v7869_v59 }
 0xba6   : > { %v1130_v6 = vsel %vm953_vm11, %v1108_v4, 0.0  ;;  %v1145_v10 = vsel %vm357_vm8, %v1113_v19, 0.0  ;;  %v1208_v19 = vmul.f32 %v8041_v29, %v7973_v22 }
 0xbaa   : > { %1237 = vadd.xlane.f32.xlu0 %v1236_v42  ;;  %1216 = vadd.xlane.f32.xlu1 %v1215_v14  ;;  %v1251_v42 = vsel %vm357_vm8, %v1207_v13, 0.0  ;;  %v1112_v14 = vmul.f32 %v8089_v1, %v7942_v52  ;;  %v1109_v13 = vmul.f32 %v8089_v1, %v7842_v43 }
 0xbab   : > { %1243 = vadd.xlane.f32.xlu2 %v1242_v18 }
 0xbac   : > { %v1142_v18 = vsel %vm953_vm11, %v1112_v14, 0.0  ;;  %v1133_v14 = vsel %vm357_vm8, %v1109_v13, 0.0  ;;  %v1117_v13 = vmul.f32 %v8089_v1, %v7902_v21 }
 0xbb2   : > { %1246 = vadd.xlane.f32.xlu0 %v1245_v27  ;;  %1225 = vadd.xlane.f32.xlu1 %v1224_v30  ;;  %v1154_v27 = vsel %vm953_vm11, %v1116_v24, 0.0  ;;  %v1123_v30 = vmul.f32 %v8089_v1, %v7864_v56  ;;  %v1254_v24 = vsel %vm953_vm11, %v1208_v19, 0.0 }
 0xbb3   : > { %1264 = vadd.xlane.f32.xlu2 %v1263_v7 }
 0xbb4   : > { %v1175_v7 = vsel %vm357_vm8, %v1123_v30, 0.0  ;;  %v1209_v30 = vmul.f32 %v8041_v29, %v7874_v62 }
 0xbba   : > { %1231 = vadd.xlane.f32.xlu1 %v1230_v38  ;;  %v1184_v38 = vsel %vm953_vm11, %v1126_v35, 0.0 }
 0xbc2   : > { %1240 = vadd.xlane.f32.xlu1 %v1239_v48 }
 0xbca   : > { %1249 = vadd.xlane.f32.xlu1 %v1248_v55 }
 0xbd2   : > { %1270 = vadd.xlane.f32.xlu1 %v1269_v60  ;;  %v1214_v60 = vmul.f32 %v8041_v29, %v7869_v59 }
 0xbd4   : > { %v1272_v4 = vsel %vm953_vm11, %v1214_v60, 0.0 }
 0xbda   : > { %1131 = vadd.xlane.f32.xlu1 %v1130_v6  ;;  %v8118_v6 = vpop.xlane.xlu0 %1040 }
 0xbe2   : > { %1252 = vadd.xlane.f32.xlu1 %v1251_v42 }
 0xbea   : > { %1143 = vadd.xlane.f32.xlu1 %v1142_v18 }
 0xbf2   : > { %1146 = vadd.xlane.f32.xlu1 %v1145_v10 }
 0xbfa   : > { %1155 = vadd.xlane.f32.xlu1 %v1154_v27 }
 0xc02   : > { %1176 = vadd.xlane.f32.xlu1 %v1175_v7 }
 0xc0a   : > { %1185 = vadd.xlane.f32.xlu1 %v1184_v38  ;;  %v1257_v38 = vsel %vm357_vm8, %v1209_v30, 0.0 }
 0xc0e   : > { %v8125_v18 = vpop.xlane.xlu2 %1219 }
 0xc0f   : > { %10203 = vst [vmem:[#allocation16_spill] sm:$0xff] %v8125_v18  ;;  %v1110_v18 = vmul.f32 %v8089_v1, %v7848_v46 }
 0xc11   : > { %v1136_v15 = vsel %vm953_vm11, %v1110_v18, 0.0 }
 0xc16   : > { %v732_v45 = vpop.f32.mrf.mxu2  ;;  %v8134_v35 = vpop.xlane.xlu2 %1234 }
 0xc17   : > { %v736_v48 = vrot.slane %v732_v45, 3  ;;  %10204 = vst [vmem:[#allocation17_spill] sm:$0xff] %v8134_v35 }
 0xc19   : > { %v738_v51 = vadd.f32 %v736_v48, %v7780_v11  ;;  %v1114_v48 = vmul.f32 %v8089_v1, %v7894_v16 }
 0xc1b   : > { %v739_v55 = vadd.f32 %v7794_v40, %v738_v51  ;;  %v8123_v40 = vpop.xlane.xlu0 %1052  ;;  %v1148_v60 = vsel %vm953_vm11, %v1114_v48, 0.0 }
 0xc1d   : > { %7499 = vtanh.f32 %v739_v55  ;;  %v6993_v42 = vmul.f32 -1.442695, %v739_v55 }
 0xc1f   : > { %7501 = vpow2.f32 %v6993_v42 }
 0xc23   : > { %v7500_v57 = vpop.eup %7499  ;;  %v8132_v7 = vpop.xlane.xlu0 %1061 }
 0xc24   : > { %765 = vrot.lane.b32.xlu2 %v7500_v57, %s7646_s19  ;;  %v8141_v57 = vpop.xlane.xlu2 %1243 }
 0xc25   : > { %v7502_v10 = vpop.eup %7501  ;;  %10205 = vst [vmem:[#allocation18_spill] sm:$0xff] %v8141_v57 }
 0xc26   : > { %v743_v27 = vadd.f32 1.0, %v7502_v10 }
 0xc28   : > { %7503 = vrcp.f32 %v743_v27  ;;  %v755_v48 = vand.u32 2147483648, %v743_v27  ;;  %vm749_vm13 = vweird.f32 %v743_v27 }
 0xc2b   : > { %v8139_v51 = vpop.xlane.xlu0 %1070 }
 0xc2c   : > { %v8149_v10 = vpop.xlane.xlu2 %1264 }
 0xc2d   : > { %10206 = vst [vmem:[#allocation19_spill] sm:$0xff] %v8149_v10  ;;  %v1119_v10 = vmul.f32 %v8089_v1, %v7918_v31 }
 0xc2e   : > { %v7504_v45 = vpop.eup %7503 }
 0xc2f   : > { %v745_v55 = vmul.f32 %v7504_v45, %v743_v27  ;;  %vm750_vm12 = vweird.f32 %v7504_v45 }
 0xc30   : > { %vm751_vm14 = vmor %vm749_vm13, %vm750_vm12 }
 0xc33   : > { %v8147_v19 = vpop.xlane.xlu0 %1091 }
 0xc3b   : > { %v8158_v5 = vpop.xlane.xlu0 %1076 }
 0xc4d   : > { %1273 = vadd.xlane.f32.xlu2 %v1272_v4  ;;  %v746_v4 = vsub.f32 1.0, %v745_v55  ;;  %v753_v55 = vand.u32 2147483647, %v743_v27  ;;  %v1163_v27 = vsel %vm357_vm8, %v1119_v10, 0.0 }
 0xc4f   : > { %v747_v42 = vmul.f32 %v7504_v45, %v746_v4  ;;  %vm754_vm15 = vcmp.eq.f32.partialorder %v753_v55, 8.507059e+37 }
 0xc51   : > { %v748_v30 = vadd.f32 %v7504_v45, %v747_v42 }
 0xc55   : > { %1134 = vadd.xlane.f32.xlu2 %v1133_v14  ;;  %v1157_v14 = vsel %vm357_vm8, %v1117_v13, 0.0  ;;  %v756_v13 = vor.u32 1.1754944e-38, %v755_v48 }
 0xc5d   : > { %1255 = vadd.xlane.f32.xlu2 %v1254_v24  ;;  %v8151_v24 = vpop.xlane.xlu1 %1043 }
 0xc65   : > { %1258 = vadd.xlane.f32.xlu2 %v1257_v38  ;;  %v1124_v38 = vmul.f32 %v8089_v1, %v7910_v26  ;;  %v8163_v57 = vpop.xlane.xlu1 %1055 }
 0xc67   : > { %v1178_v4 = vsel %vm953_vm11, %v1124_v38, 0.0 }
 0xc6d   : > { %1149 = vadd.xlane.f32.xlu2 %v1148_v60  ;;  %v752_v60 = vsel %vm751_vm14, %v7504_v45, %v748_v30  ;;  %v8167_v45 = vpop.xlane.xlu0 %1085  ;;  %v1065_v30 = vpop.xlane.xlu1 %1064 }
 0xc6e   : > { %v8156_v9 = vsel %vm754_vm15, %v756_v13, %v752_v60 }
 0xc75   : > { %1158 = vadd.xlane.f32.xlu2 %v1157_v14  ;;  %v8169_v38 = vpop.xlane.xlu0 %955  ;;  %v1074_v48 = vpop.xlane.xlu1 %1073 }
 0xc76   : > { %10207 = vst [vmem:[#allocation20_spill] sm:$0xff] %v8169_v38  ;;  %v1570_v39 = vmul.f32 0.015625, %v1074_v48 }
 0xc7d   : > { %1179 = vadd.xlane.f32.xlu2 %v1178_v4  ;;  %v8171_v55 = vpop.xlane.xlu0 %967  ;;  %v8173_v60 = vpop.xlane.xlu1 %1094  ;;  %v1212_v4 = vmul.f32 %v8041_v29, %v7910_v26 }
 0xc7e   : > { %v766_v14 = vpop.permute.xlu2 %765  ;;  %10208 = vst [vmem:[#allocation21_spill] sm:$0xff] %v8171_v55 }
 0xc7f   : > { %v768_v42 = vmul.f32 %v766_v14, %v8156_v9  ;;  %v1266_v10 = vsel %vm953_vm11, %v1212_v4, 0.0 }
 0xc81   : > { %770 = vrot.lane.b32.xlu0 %v768_v42, %s7647_s20  ;;  %v1107_v42 = vmul.f32 %v8089_v1, %v7876_v63 }
 0xc83   : > { %v1127_v35 = vsel %vm357_vm8, %v1107_v42, 0.0 }
 0xc85   : > { %1164 = vadd.xlane.f32.xlu2 %v1163_v27  ;;  %v8177_v13 = vpop.xlane.xlu0 %970  ;;  %v8179_v14 = vpop.xlane.xlu1 %1079 }
 0xc86   : > { %10209 = vst [vmem:[#allocation22_spill] sm:$0xff] %v8177_v13 }
 0xc8d   : > { %v8184_v27 = vpop.xlane.xlu0 %982  ;;  %v8187_v20 = vpop.xlane.xlu1 %958 }
 0xc8e   : > { %10210 = vst [vmem:[#allocation23_spill] sm:$0xff] %v8184_v27 }
 0xc95   : > { %v8192_v13 = vpop.xlane.xlu0 %1003  ;;  %v8194_v4 = vpop.xlane.xlu1 %973 }
 0xc96   : > { %10211 = vst [vmem:[#allocation24_spill] sm:$0xff] %v8192_v13 }
 0xc9d   : > { %v8199_v42 = vpop.xlane.xlu0 %991  ;;  %v8203_v33 = vpop.xlane.xlu1 %976 }
 0xc9e   : > { %10212 = vst [vmem:[#allocation25_spill] sm:$0xff] %v8199_v42 }
 0xca5   : > { %v8206_v13 = vpop.xlane.xlu0 %1222  ;;  %v8210_v55 = vpop.xlane.xlu1 %985 }
 0xca6   : > { %10213 = vst [vmem:[#allocation26_spill] sm:$0xff] %v8206_v13 }
 0xcab   : > { %1267 = vadd.xlane.f32.xlu0 %v1266_v10  ;;  %v1111_v10 = vmul.f32 %v8089_v1, %v7886_v8 }
 0xcad   : > { %v1139_v27 = vsel %vm357_vm8, %v1111_v10, 0.0  ;;  %v8215_v42 = vpop.xlane.xlu0 %1228  ;;  %v8218_v3 = vpop.xlane.xlu1 %1006 }
 0xcae   : > { %10214 = vst [vmem:[#allocation27_spill] sm:$0xff] %v8215_v42 }
 0xcb3   : > { %1128 = vadd.xlane.f32.xlu0 %v1127_v35  ;;  %v1210_v35 = vmul.f32 %v8041_v29, %v7926_v36 }
 0xcb5   : > { %v1260_v18 = vsel %vm953_vm11, %v1210_v35, 0.0  ;;  %v1125_v35 = vmul.f32 %v8089_v1, %v8006_v49  ;;  %v8222_v13 = vpop.xlane.xlu0 %1237 }
 0xcb6   : > { %10215 = vst [vmem:[#allocation28_spill] sm:$0xff] %v8222_v13 }
 0xcbb   : > { %1137 = vadd.xlane.f32.xlu0 %v1136_v15  ;;  %v1115_v15 = vmul.f32 %v8089_v1, %v7992_v34 }
 0xcbd   : > { %v1151_v10 = vsel %vm357_vm8, %v1115_v15, 0.0  ;;  %v1181_v15 = vsel %vm357_vm8, %v1125_v35, 0.0 }
 0xcc3   : > { %1140 = vadd.xlane.f32.xlu0 %v1139_v27  ;;  %v1118_v27 = vmul.f32 %v8089_v1, %v7999_v44 }
 0xcc5   : > { %v1160_v29 = vsel %vm953_vm11, %v1118_v27, 0.0  ;;  %v1120_v27 = vmul.f32 %v8089_v1, %v7973_v22 }
 0xcc7   : > { %v1166_v42 = vsel %vm953_vm11, %v1120_v27, 0.0  ;;  %v1567_v27 = vmul.f32 0.015625, %v1065_v30  ;;  %v1574_v30 = vmul.f32 0.015625, %v8167_v45  ;;  %v1565_v45 = vmul.f32 0.015625, %v7967_v17 }
 0xcc8   : > { %v1275_v17 = vrot.slane %v7951_v61, 7 }
 0xccb   : > { %1261 = vadd.xlane.f32.xlu0 %v1260_v18  ;;  %v7650_v18 = vmov 0  }
 0xccc   : > { %7456 = vset.pattern.permute.xlu0 %v7650_v18  ;;  %7457 = vset.pattern.permute.xlu1 %v7650_v18 }
 0xccd   : > { %7455 = vset.pattern.permute.xlu2 %v7650_v18  ;;  %v763_v18 = vmul.f32 %v761_v58, %v8156_v9  ;;  %v1577_v58 = vmul.f32 0.015625, %v8173_v60 }
 0xcd3   : > { %1152 = vadd.xlane.f32.xlu0 %v1151_v10  ;;  %v8225_v10 = vpop.xlane.xlu1 %994 }
 0xcd4   : > { %10216 = vst [vmem:[#allocation29_spill] sm:$0xff] %v8225_v10  ;;  %v1560_v10 = vmul.f32 0.015625, %v8151_v24 }
 0xcdb   : > { %1161 = vadd.xlane.f32.xlu0 %v1160_v29  ;;  %v8230_v29 = vpop.xlane.xlu0 %1246  ;;  %v8232_v38 = vpop.xlane.xlu1 %1216 }
 0xcdc   : > { %10217 = vst [vmem:[#allocation30_spill] sm:$0xff] %v8230_v29 }
 0xce3   : > { %1182 = vadd.xlane.f32.xlu0 %v1181_v15  ;;  %v8239_v35 = vpop.xlane.xlu1 %1225 }
 0xceb   : > { %1167 = vadd.xlane.f32.xlu0 %v1166_v42  ;;  %v8243_v42 = vpop.xlane.xlu1 %1231 }
 0xcf3   : > { %v771_v13 = vpop.permute.xlu0 %770  ;;  %v8245_v29 = vpop.xlane.xlu1 %1240 }
 0xcf4   : > { %v8236_v54 = vadd.f32 %v771_v13, %v763_v18  ;;  %v1571_v18 = vmul.f32 0.015625, %v8158_v5  ;;  %v1563_v5 = vmul.f32 0.015625, %v8123_v40  ;;  %v1572_v40 = vmul.f32 0.015625, %v8179_v14 }
 0xcf6   : > { %7505 = vtanh.f32 %v8236_v54 }
 0xcfb   : > { %v8248_v13 = vpop.xlane.xlu1 %1249 }
 0xcfc   : > { %v7506_v15 = vpop.eup %7505 }
 0xcfd   : > { %776 = vrot.lane.b32.xlu1 %v7506_v15, %s7648_s21 }
 0xcff   : > { %1892 = vperm.xlu0 %7456, %v1560_v10   ;;  %v1121_v10 = vmul.f32 %v8089_v1, %v7874_v62 }
 0xd01   : > { %v1169_v48 = vsel %vm357_vm8, %v1121_v10, 0.0  ;;  %v1568_v10 = vmul.f32 0.015625, %v7975_v23 }
 0xd03   : > { %v8251_v24 = vpop.xlane.xlu1 %1270 }
 0xd07   : > { %1913 = vperm.xlu0 %7456, %v1567_v27   ;;  %v1561_v27 = vmul.f32 0.015625, %v7953_v0  ;;  %v1575_v0 = vmul.f32 0.015625, %v7980_v25 }
 0xd0b   : > { %v8257_v15 = vpop.xlane.xlu1 %1131 }
 0xd0f   : > { %1922 = vperm.xlu0 %7456, %v1570_v39  }
 0xd13   : > { %v8259_v60 = vpop.xlane.xlu1 %1252 }
 0xd17   : > { %1943 = vperm.xlu0 %7456, %v1577_v58  }
 0xd1b   : > { %v8262_v39 = vpop.xlane.xlu1 %1143 }
 0xd1f   : > { %1925 = vperm.xlu0 %7456, %v1571_v18  }
 0xd23   : > { %v8265_v58 = vpop.xlane.xlu1 %1146 }
 0xd27   : > { %1170 = vadd.xlane.f32.xlu1 %v1169_v48  ;;  %1934 = vperm.xlu0 %7456, %v1574_v30   ;;  %v1578_v48 = vmul.f32 0.015625, %v7984_v28  ;;  %v8286_v28 = vpop.xlane.xlu2 %1273 }
 0xd2b   : > { %v8268_v18 = vpop.xlane.xlu1 %1155 }
 0xd33   : > { %v8271_v30 = vpop.xlane.xlu1 %1176 }
 0xd40   : > { %1895 = vperm.xlu1 %7457, %v1561_v27   ;;  %v8275_v27 = vpop.xlane.xlu1 %1185 }
 0xd41   : > { %10218 = vst [vmem:[#allocation31_spill] sm:$0xff] %v8275_v27 }
 0xd48   : > { %1901 = vperm.xlu1 %7457, %v1563_v5  }
 0xd50   : > { %1907 = vperm.xlu1 %7457, %v1565_v45  }
 0xd58   : > { %1916 = vperm.xlu1 %7457, %v1568_v10  }
 0xd60   : > { %1937 = vperm.xlu1 %7457, %v1575_v0   ;;  %v8288_v0 = vpop.xlane.xlu2 %1134 }
 0xd61   : > { %10220 = vst [vmem:[#allocation33_spill] sm:$0xff] %v8288_v0 }
 0xd68   : > { %1946 = vperm.xlu1 %7457, %v1578_v48   ;;  %v8290_v14 = vpop.xlane.xlu2 %1255 }
 0xd69   : > { %10221 = vst [vmem:[#allocation34_spill] sm:$0xff] %v8290_v14  ;;  %v1539_v14 = vmul.f32 0.015625, %v7996_v37 }
 0xd6f   : > { %v777_v5 = vpop.permute.xlu1 %776 }
 0xd70   : > { %v8280_v45 = vmul.f32 %v777_v5, %v8156_v9  ;;  %1928 = vperm.xlu1 %7457, %v1572_v40   ;;  %v1122_v9 = vmul.f32 %v8089_v1, %v7926_v36  ;;  %v8295_v48 = vpop.xlane.xlu2 %1258  ;;  %v1562_v1 = vmul.f32 0.015625, %v7960_v12 }
 0xd71   : > { %10222 = vst [vmem:[#allocation35_spill] sm:$0xff] %v8295_v48 }
 0xd72   : > { %10219 = vst [vmem:[#allocation32_spill] sm:$0xff] %v8280_v45  ;;  %v781_v23 = vrot.slane %v8280_v45, 5  ;;  %v1277_v10 = vsub.f32 %v8280_v45, %v1275_v17  ;;  %v1172_v61 = vsel %vm953_vm11, %v1122_v9, 0.0  ;;  %v8311_v9 = vpop.xlane.xlu0 %1267 }
 0xd74   : > { %782 = vrot.lane.b32.xlu2 %v781_v23, %s7649_s22  ;;  %v1278_v25 = vperm.slane %v1277_v10, 5  ;;  %v1559_v10 = vmul.f32 0.015625, %v8118_v6 }
 0xd78   : > { %1280 = vrot.lane.b32.xlu1 %v1278_v25, %s7649_s22  ;;  %v8297_v40 = vpop.xlane.xlu2 %1149 }
 0xd79   : > { %10223 = vst [vmem:[#allocation36_spill] sm:$0xff] %v8297_v40  ;;  %v1569_v40 = vmul.f32 0.015625, %v8139_v51 }
 0xd80   : > { %v8301_v17 = vpop.xlane.xlu2 %1158 }
 0xd81   : > { %10225 = vst [vmem:[#allocation38_spill] sm:$0xff] %v8301_v17  ;;  %v8318_v17 = vpop.xlane.xlu0 %1128 }
 0xd88   : > { %v8309_v27 = vpop.xlane.xlu2 %1179 }
 0xd89   : > { %10226 = vst [vmem:[#allocation39_spill] sm:$0xff] %v8309_v27  ;;  %v8324_v27 = vpop.xlane.xlu0 %1137 }
 0xd90   : > { %v8316_v45 = vpop.xlane.xlu2 %1164 }
 0xd91   : > { %10227 = vst [vmem:[#allocation40_spill] sm:$0xff] %v8316_v45  ;;  %v1576_v45 = vmul.f32 0.015625, %v8147_v19 }
 0xd9a   : > { %v8299_v5 = vpop.xlane.xlu1 %1170 }
 0xd9b   : > { %10224 = vst [vmem:[#allocation37_spill] sm:$0xff] %v8299_v5  ;;  %v1564_v5 = vmul.f32 0.015625, %v8163_v57  ;;  %v8329_v57 = vpop.xlane.xlu0 %1140 }
 0xd9d   : > { %1173 = vadd.xlane.f32.xlu2 %v1172_v61 }
 0xdb2   : > { %v8303_v23 = vpop.permute.xlu1 %1895 }
 0xdb5   : > { %1889 = vperm.xlu2 %7455, %v1559_v10   ;;  %v1566_v10 = vmul.f32 0.015625, %v8132_v7  ;;  %v1573_v7 = vmul.f32 0.015625, %v7989_v32 }
 0xdba   : > { %v8306_v25 = vpop.permute.xlu1 %1901 }
 0xdbd   : > { %1898 = vperm.xlu2 %7455, %v1562_v1  }
 0xdc2   : > { %v8313_v61 = vpop.permute.xlu1 %1907 }
 0xdc5   : > { %1904 = vperm.xlu2 %7455, %v1564_v5  }
 0xdca   : > { %v8320_v6 = vpop.permute.xlu1 %1916 }
 0xdcd   : > { %1910 = vperm.xlu2 %7455, %v1566_v10   ;;  %v8337_v10 = vpop.xlane.xlu0 %1261 }
 0xdce   : > { %v783_v12 = vpop.permute.xlu2 %782 }
 0xdcf   : > { %6995 = vmatmul.msk.f32.vlgmr.msrb.gmra.mxu3 %vm357_vm8, %v783_v12 }
 0xdd2   : > { %v8326_v1 = vpop.permute.xlu1 %1937 }
 0xdd5   : > { %1919 = vperm.xlu2 %7455, %v1569_v40   ;;  %v8348_v0 = vpop.xlane.xlu0 %1152 }
 0xdda   : > { %v8331_v5 = vpop.permute.xlu1 %1946 }
 0xddd   : > { %1940 = vperm.xlu2 %7455, %v1576_v45  }
 0xde2   : > { %v8334_v48 = vpop.permute.xlu1 %1928 }
 0xde5   : > { %1931 = vperm.xlu2 %7455, %v1573_v7  }
 0xdea   : > { %v8339_v12 = vpop.permute.xlu1 %1280 }
 0xdeb   : > { %v1284_v51 = vmul.f32 %v8339_v12, %v7934_v41  ;;  %v1283_v40 = vmul.f32 %v8339_v12, %v7876_v63  ;;  %v1287_v32 = vmul.f32 %v8339_v12, %v7886_v8  ;;  %v1286_v37 = vmul.f32 %v8339_v12, %v7848_v46  ;;  %v8356_v63 = vpop.xlane.xlu0 %1161 }
 0xdec   : > { %v1293_v46 = vmul.f32 %v8339_v12, %v7902_v21 }
 0xded   : > { %1829 = vperm.xlu2 %7455, %v1539_v14   ;;  %v1306_v19 = vsel %vm953_vm11, %v1284_v51, 0.0  ;;  %v1303_v45 = vsel %vm357_vm8, %v1283_v40, 0.0  ;;  %v1315_v41 = vsel %vm357_vm8, %v1287_v32, 0.0  ;;  %v1312_v7 = vsel %vm953_vm11, %v1286_v37, 0.0 }
 0xdee   : > { %1307 = vadd.xlane.f32.xlu1 %v1306_v19  ;;  %1304 = vadd.xlane.f32.xlu0 %v1303_v45  ;;  %v1290_v14 = vmul.f32 %v8339_v12, %v7894_v16  ;;  %v1289_v51 = vmul.f32 %v8339_v12, %v7854_v50  ;;  %v1292_v19 = vmul.f32 %v8339_v12, %v7859_v53  ;;  %v1333_v32 = vsel %vm357_vm8, %v1293_v46, 0.0 }
 0xdef   : > { %v1300_v50 = vmul.f32 %v8339_v12, %v7910_v26  ;;  %v1299_v37 = vmul.f32 %v8339_v12, %v7864_v56  ;;  %v1302_v26 = vmul.f32 %v8339_v12, %v7869_v59  ;;  %v1297_v59 = vmul.f32 %v8339_v12, %v7874_v62 }
 0xdf0   : > { %v1324_v40 = vsel %vm953_vm11, %v1290_v14, 0.0  ;;  %v1321_v8 = vsel %vm357_vm8, %v1289_v51, 0.0  ;;  %v1330_v16 = vsel %vm953_vm11, %v1292_v19, 0.0  ;;  %v1285_v14 = vmul.f32 %v8339_v12, %v7842_v43 }
 0xdf1   : > { %v1354_v21 = vsel %vm953_vm11, %v1300_v50, 0.0  ;;  %v1351_v53 = vsel %vm357_vm8, %v1299_v37, 0.0  ;;  %v1295_v51 = vmul.f32 %v8339_v12, %v7918_v31  ;;  %v1360_v46 = vsel %vm953_vm11, %v1302_v26, 0.0 }
 0xdf2   : > { %v1288_v43 = vmul.f32 %v8339_v12, %v7942_v52  ;;  %v1298_v31 = vmul.f32 %v8339_v12, %v7926_v36  ;;  %v1345_v37 = vsel %vm357_vm8, %v1297_v59, 0.0  ;;  %v1291_v52 = vmul.f32 %v8339_v12, %v7992_v34 }
 0xdf3   : > { %v8368_v45 = vpop.xlane.xlu0 %1182 }
 0xdf4   : > { %v1327_v36 = vsel %vm357_vm8, %v1291_v52, 0.0 }
 0xdf6   : > { %1316 = vadd.xlane.f32.xlu1 %v1315_v41  ;;  %1313 = vadd.xlane.f32.xlu0 %v1312_v7 }
 0xdfb   : > { %v8376_v41 = vpop.xlane.xlu0 %1167 }
 0xdfe   : > { %1325 = vadd.xlane.f32.xlu1 %v1324_v40  ;;  %1322 = vadd.xlane.f32.xlu0 %v1321_v8  ;;  %v1309_v40 = vsel %vm357_vm8, %v1285_v14, 0.0  ;;  %v1339_v8 = vsel %vm357_vm8, %v1295_v51, 0.0  ;;  %v1294_v14 = vmul.f32 %v8339_v12, %v7999_v44  ;;  %v1296_v44 = vmul.f32 %v8339_v12, %v7973_v22 }
 0xe00   : > { %v1336_v51 = vsel %vm953_vm11, %v1294_v14, 0.0 }
 0xe03   : > { %v1893_v56 = vpop.permute.xlu0 %1892 }
 0xe06   : > { %1334 = vadd.xlane.f32.xlu1 %v1333_v32  ;;  %1331 = vadd.xlane.f32.xlu0 %v1330_v16  ;;  %v1318_v32 = vsel %vm953_vm11, %v1288_v43, 0.0  ;;  %v1348_v16 = vsel %vm953_vm11, %v1298_v31, 0.0  ;;  %v8413_v31 = vadd.s32 4294967288, %v7751_v2 }
 0xe08   : > { %v2281_v14 = vperm.slane %v1893_v56, %v8413_v31  ;;  %v2304_v56 = vperm.slane %v8326_v1, %v7751_v2 }
 0xe0b   : > { %v8399_v50 = vpop.permute.xlu0 %1913 }
 0xe0e   : > { %1355 = vadd.xlane.f32.xlu1 %v1354_v21  ;;  %1352 = vadd.xlane.f32.xlu0 %v1351_v53 }
 0xe10   : > { %v8380_v7 = vpop.xlane.xlu2 %1173 }
 0xe13   : > { %v1923_v53 = vpop.permute.xlu0 %1922 }
 0xe14   : > { %v2296_v1 = vperm.slane %v1923_v53, %v8413_v31 }
 0xe16   : > { %1310 = vadd.xlane.f32.xlu2 %v1309_v40  ;;  %1340 = vadd.xlane.f32.xlu1 %v1339_v8  ;;  %v1301_v40 = vmul.f32 %v8339_v12, %v8006_v49  ;;  %v2286_v12 = vperm.slane %v8306_v25, %v7751_v2 }
 0xe17   : > { %1361 = vadd.xlane.f32.xlu0 %v1360_v46  ;;  %v1541_v46 = vmul.f32 0.015625, %v8187_v20  ;;  %v2283_v20 = vperm.slane %v8303_v23, %v7751_v2  ;;  %v2308_v23 = vperm.slane %v8331_v5, %v8413_v31 }
 0xe18   : > { %v1890_v19 = vpop.permute.xlu2 %1889  ;;  %v1357_v34 = vsel %vm357_vm8, %v1301_v40, 0.0 }
 0xe1b   : > { %v1944_v8 = vpop.permute.xlu0 %1943 }
 0xe1c   : > { %v2307_v22 = vperm.slane %v1944_v8, %v7751_v2 }
 0xe1e   : > { %1319 = vadd.xlane.f32.xlu2 %v1318_v32  ;;  %1349 = vadd.xlane.f32.xlu1 %v1348_v16  ;;  %v1546_v32 = vmul.f32 0.015625, %v8194_v4  ;;  %v2289_v4 = vperm.slane %v8313_v61, %v7751_v2  ;;  %v2309_v8 = vsel %vm2251_vm0, %v2308_v23, %v2307_v22 }
 0xe1f   : > { %1346 = vadd.xlane.f32.xlu0 %v1345_v37  ;;  %v2280_v37 = vperm.slane %v1890_v19, %v7751_v2 }
 0xe20   : > { %v1899_v21 = vpop.permute.xlu2 %1898 }
 0xe21   : > { %v2284_v59 = vperm.slane %v1899_v21, %v8413_v31 }
 0xe23   : > { %v1926_v16 = vpop.permute.xlu0 %1925  ;;  %v2285_v19 = vsel %vm2251_vm0, %v2284_v59, %v2283_v20 }
 0xe26   : > { %1328 = vadd.xlane.f32.xlu2 %v1327_v36  ;;  %v1342_v36 = vsel %vm953_vm11, %v1296_v44, 0.0  ;;  %v2292_v44 = vperm.slane %v8399_v50, %v7751_v2  ;;  %v2299_v50 = vperm.slane %v8334_v48, %v8413_v31 }
 0xe28   : > { %v1905_v62 = vpop.permute.xlu2 %1904 }
 0xe29   : > { %v2287_v49 = vperm.slane %v1905_v62, %v8413_v31  ;;  %v2282_v62 = vsel %vm2251_vm0, %v2281_v14, %v2280_v37  ;;  %v2298_v37 = vperm.slane %v1926_v16, %v7751_v2  ;;  %v1550_v16 = vmul.f32 0.015625, %v8210_v55  ;;  %v8484_v55 = vld [vmem:[%s10166_s3] ss:$0 sm:$0xff] }
 0xe2a   : > { %v2475_v40 = vsel %vm2460_vm2, %v2285_v19, %v2282_v62 }
 0xe2b   : > { %v2288_v21 = vsel %vm2251_vm0, %v2287_v49, %v2286_v12  ;;  %v2300_v22 = vsel %vm2251_vm0, %v2299_v50, %v2298_v37  ;;  %v10238_v50 = vld [vmem:[#allocation23_spill] sm:$0xff]  ;;  %v10239_v37 = vld [vmem:[#allocation16_spill] sm:$0xff] }
 0xe2e   : > { %1337 = vadd.xlane.f32.xlu2 %v1336_v51 }
 0xe30   : > { %v1911_v26 = vpop.permute.xlu2 %1910 }
 0xe31   : > { %v2290_v52 = vperm.slane %v1911_v26, %v8413_v31  ;;  %v2293_v26 = vperm.slane %v8320_v6, %v8413_v31  ;;  %v1547_v6 = vmul.f32 0.015625, %v8203_v33 }
 0xe33   : > { %v2291_v51 = vsel %vm2251_vm0, %v2290_v52, %v2289_v4  ;;  %v2294_v49 = vsel %vm2251_vm0, %v2293_v26, %v2292_v44 }
 0xe36   : > { %1358 = vadd.xlane.f32.xlu2 %v1357_v34 }
 0xe37   : > { %1835 = vperm.xlu1 %7457, %v1541_v46   ;;  %v2476_v46 = vsel %vm2462_vm3, %v2288_v21, %v2475_v40  ;;  %v1557_v21 = vmul.f32 0.015625, %v8218_v3  ;;  %v10232_v40 = vld [vmem:[#allocation20_spill] sm:$0xff] }
 0xe38   : > { %v1920_v43 = vpop.permute.xlu2 %1919 }
 0xe39   : > { %v2295_v61 = vperm.slane %v1920_v43, %v7751_v2  ;;  %v2477_v43 = vsel %vm2464_vm4, %v2291_v51, %v2476_v46  ;;  %v10230_v51 = vld [vmem:[#allocation10_spill] sm:$0xff] }
 0xe3a   : > { %v2478_v20 = vsel %vm2466_vm5, %v2294_v49, %v2477_v43  ;;  %v10235_v43 = vld [vmem:[#allocation13_spill] sm:$0xff] }
 0xe3b   : > { %v2297_v53 = vsel %vm2251_vm0, %v2296_v1, %v2295_v61  ;;  %v1543_v61 = vmul.f32 0.015625, %v10230_v51  ;;  %v1540_v1 = vmul.f32 0.015625, %v10232_v40  ;;  %v10244_v51 = vld [vmem:[#allocation26_spill] sm:$0xff] }
 0xe3c   : > { %v2479_v52 = vsel %vm2468_vm6, %v2297_v53, %v2478_v20  ;;  %v1549_v20 = vmul.f32 0.015625, %v10238_v50 }
 0xe3d   : > { %v2480_v48 = vsel %vm2470_vm7, %v2300_v22, %v2479_v52  ;;  %v1600_v52 = vmul.f32 0.015625, %v10239_v37  ;;  %v10241_v22 = vld [vmem:[#allocation15_spill] sm:$0xff] }
 0xe3e   : > { %1343 = vadd.xlane.f32.xlu2 %v1342_v36 }
 0xe3f   : > { %1850 = vperm.xlu1 %7457, %v1546_v32   ;;  %v1935_v32 = vpop.permute.xlu0 %1934 }
 0xe40   : > { %v1941_v25 = vpop.permute.xlu2 %1940  ;;  %v2302_v36 = vperm.slane %v1935_v32, %v8413_v31  ;;  %v10237_v32 = vld [vmem:[#allocation14_spill] sm:$0xff] }
 0xe41   : > { %v2305_v5 = vperm.slane %v1941_v25, %v8413_v31  ;;  %v1551_v49 = vmul.f32 0.015625, %v10237_v32 }
 0xe43   : > { %v2306_v34 = vsel %vm2251_vm0, %v2305_v5, %v2304_v56  ;;  %v1542_v56 = vmul.f32 0.015625, %v8003_v47  ;;  %v1599_v47 = vmul.f32 0.015625, %v8232_v38  ;;  %v10231_v5 = vld [vmem:[#allocation11_spill] sm:$0xff]  ;;  %v10236_v38 = vld [vmem:[#allocation22_spill] sm:$0xff] }
 0xe44   : > { %v8452_v59 = vsel %vm2460_vm2, %v2309_v8, %v2306_v34  ;;  %v1548_v26 = vmul.f32 0.015625, %v10231_v5  ;;  %v10233_v8 = vld [vmem:[#allocation12_spill] sm:$0xff]  ;;  %v10234_v34 = vld [vmem:[#allocation21_spill] sm:$0xff]  ;;  %v1545_v53 = vmul.f32 0.015625, %v10236_v38  ;;  %v10245_v5 = vld [vmem:[#allocation18_spill] sm:$0xff] }
 0xe45   : > { %10228 = vst [vmem:[#allocation41_spill] sm:$0xff] %v8452_v59  ;;  %7003 = vmatpush.msk.msra.mxu2 %vm333_vm1, %v8452_v59  ;;  %v1555_v46 = vmul.f32 0.015625, %v10233_v8  ;;  %v1544_v44 = vmul.f32 0.015625, %v10234_v34 }
 0xe47   : > { %1853 = vperm.xlu1 %7457, %v1547_v6   ;;  %v1558_v6 = vmul.f32 0.015625, %v10235_v43  ;;  %v10247_v43 = vld [vmem:[#allocation28_spill] sm:$0xff] }
 0xe48   : > { %v1932_v33 = vpop.permute.xlu2 %1931 }
 0xe49   : > { %v2301_v14 = vperm.slane %v1932_v33, %v7751_v2  ;;  %v10240_v33 = vld [vmem:[#allocation24_spill] sm:$0xff] }
 0xe4b   : > { %v2303_v12 = vsel %vm2251_vm0, %v2302_v36, %v2301_v14  ;;  %v1556_v36 = vmul.f32 0.015625, %v10240_v33 }
 0xe4c   : > { %v8470_v4 = vsel %vm2472_vm9, %v2303_v12, %v2480_v48  ;;  %v1554_v12 = vmul.f32 0.015625, %v10241_v22 }
 0xe4d   : > { %10229 = vst [vmem:[#allocation42_spill] sm:$0xff] %v8470_v4  ;;  %2601 = vmatpush.msra.mxu2 %v8470_v4 }
 0xe4e   : > { %7004 = vmatmul.msk.f32.vlgmr.msra.gmra.mxu2 %vm357_vm8, %v8470_v4 }
 0xe4f   : > { %1862 = vperm.xlu1 %7457, %v1550_v16   ;;  %v10242_v16 = vld [vmem:[#allocation25_spill] sm:$0xff] }
 0xe50   : > { %v8500_v14 = vpop.permute.xlu2 %1829 }
 0xe52   : > { %v803_v23 = vpop.f32.mrf.mxu3 }
 0xe53   : > { %v807_v19 = vrot.slane %v803_v23, 2  ;;  %v1552_v23 = vmul.f32 0.015625, %v10242_v16  ;;  %v1579_v16 = vmul.f32 0.015625, %v8318_v17 }
 0xe55   : > { %v809_v25 = vadd.f32 %v807_v19, %v7780_v11 }
 0xe56   : > { %7005 = vmatmul.msk.f32.gmra.mxu2 %vm357_vm8, %v8452_v59  ;;  %1838 = vperm.xlu2 %7455, %v1542_v56  }
 0xe57   : > { %v810_v62 = vadd.f32 %v8484_v55, %v809_v25  ;;  %1883 = vperm.xlu1 %7457, %v1557_v21   ;;  %v10243_v21 = vld [vmem:[#allocation17_spill] sm:$0xff] }
 0xe58   : > { %v1605_v25 = vmul.f32 0.015625, %v10243_v21 }
 0xe59   : > { %7507 = vtanh.f32 %v810_v62 }
 0xe5e   : > { %1841 = vperm.xlu2 %7455, %v1543_v61   ;;  %v1601_v61 = vmul.f32 0.015625, %v10244_v51 }
 0xe5f   : > { %v7508_v3 = vpop.eup %7507  ;;  %2009 = vperm.xlu1 %7457, %v1599_v47  }
 0xe60   : > { %836 = vrot.lane.b32.xlu0 %v7508_v3, %s7646_s19 }
 0xe61   : > { %v8503_v48 = vpop.xlane.xlu1 %1307  ;;  %v8506_v19 = vpop.xlane.xlu0 %1304 }
 0xe66   : > { %1856 = vperm.xlu2 %7455, %v1548_v26   ;;  %v1608_v26 = vmul.f32 0.015625, %v10245_v5 }
 0xe68   : > { %1832 = vperm.xlu0 %7456, %v1540_v1   ;;  %v10246_v1 = vld [vmem:[#allocation27_spill] sm:$0xff] }
 0xe69   : > { %v8512_v47 = vpop.xlane.xlu1 %1316  ;;  %v8514_v3 = vpop.xlane.xlu0 %1313  ;;  %v1603_v8 = vmul.f32 0.015625, %v10246_v1 }
 0xe6e   : > { %1877 = vperm.xlu2 %7455, %v1555_v46  }
 0xe70   : > { %1844 = vperm.xlu0 %7456, %v1544_v44   ;;  %v6996_v44 = vmul.f32 -1.442695, %v810_v62  ;;  %v1616_v62 = vmul.f32 0.015625, %v8311_v9  ;;  %v1582_v9 = vmul.f32 0.015625, %v8324_v27 }
 0xe71   : > { %v8520_v46 = vpop.xlane.xlu1 %1325  ;;  %v8522_v34 = vpop.xlane.xlu0 %1322 }
 0xe72   : > { %7509 = vpow2.f32 %v6996_v44 }
 0xe76   : > { %1886 = vperm.xlu2 %7455, %v1558_v6   ;;  %v1606_v6 = vmul.f32 0.015625, %v10247_v43  ;;  %v1583_v43 = vmul.f32 0.015625, %v8329_v57 }
 0xe78   : > { %1847 = vperm.xlu0 %7456, %v1545_v53  }
 0xe79   : > { %v8527_v53 = vpop.xlane.xlu1 %1334  ;;  %v8529_v32 = vpop.xlane.xlu0 %1331 }
 0xe7e   : > { %1865 = vperm.xlu2 %7455, %v1551_v49   ;;  %v10248_v49 = vld [vmem:[#allocation30_spill] sm:$0xff] }
 0xe7f   : > { %v1609_v50 = vmul.f32 0.015625, %v10248_v49 }
 0xe80   : > { %1859 = vperm.xlu0 %7456, %v1549_v20   ;;  %v7510_v20 = vpop.eup %7509 }
 0xe81   : > { %v8534_v33 = vpop.xlane.xlu1 %1355 }
 0xe86   : > { %2012 = vperm.xlu2 %7455, %v1600_v52   ;;  %v814_v52 = vadd.f32 1.0, %v7510_v20 }
 0xe88   : > { %1880 = vperm.xlu0 %7456, %v1556_v36   ;;  %7511 = vrcp.f32 %v814_v52  ;;  %v8537_v36 = vpop.xlane.xlu0 %1352  ;;  %v826_v17 = vand.u32 2147483648, %v814_v52  ;;  %vm820_vm12 = vweird.f32 %v814_v52  ;;  %v824_v44 = vand.u32 2147483647, %v814_v52 }
 0xe89   : > { %v8508_v56 = vpop.xlane.xlu2 %1310 }
 0xe8a   : > { %v827_v27 = vor.u32 1.1754944e-38, %v826_v17  ;;  %vm825_vm14 = vcmp.eq.f32.partialorder %v824_v44, 8.507059e+37  ;;  %v10249_v17 = vld [vmem:[#allocation29_spill] sm:$0xff] }
 0xe8b   : > { %v1553_v44 = vmul.f32 0.015625, %v10249_v17  ;;  %v1610_v17 = vmul.f32 0.015625, %v8248_v13  ;;  %v1580_v13 = vmul.f32 0.015625, %v8257_v15  ;;  %v832_v15 = vrot.slane %v8236_v54, 7 }
 0xe8c   : > { %v2248_v54 = vperm.slane %v8500_v14, %v7751_v2 }
 0xe8e   : > { %1874 = vperm.xlu2 %7455, %v1554_v12   ;;  %v7512_v12 = vpop.eup %7511 }
 0xe8f   : > { %v816_v21 = vmul.f32 %v7512_v12, %v814_v52  ;;  %vm821_vm10 = vweird.f32 %v7512_v12  ;;  %v1614_v52 = vmul.f32 0.015625, %v8337_v10 }
 0xe90   : > { %1868 = vperm.xlu0 %7456, %v1552_v23   ;;  %v8542_v23 = vpop.xlane.xlu1 %1340  ;;  %vm822_vm13 = vmor %vm820_vm12, %vm821_vm10 }
 0xe91   : > { %v8517_v40 = vpop.xlane.xlu2 %1319  ;;  %v817_v51 = vsub.f32 1.0, %v816_v21 }
 0xe93   : > { %v818_v5 = vmul.f32 %v7512_v12, %v817_v51  ;;  %v1602_v51 = vmul.f32 0.015625, %v8239_v35 }
 0xe96   : > { %2027 = vperm.xlu2 %7455, %v1605_v25   ;;  %v8544_v25 = vpop.xlane.xlu0 %1361 }
 0xe98   : > { %2015 = vperm.xlu0 %7456, %v1601_v61  }
 0xe99   : > { %v8525_v38 = vpop.xlane.xlu2 %1328 }
 0xe9e   : > { %2036 = vperm.xlu2 %7455, %v1608_v26   ;;  %v8549_v26 = vpop.xlane.xlu1 %1349  ;;  %v8551_v1 = vpop.xlane.xlu0 %1346 }
 0xea0   : > { %2021 = vperm.xlu0 %7456, %v1603_v8   ;;  %v819_v8 = vadd.f32 %v7512_v12, %v818_v5 }
 0xea1   : > { %v8532_v37 = vpop.xlane.xlu2 %1337 }
 0xea2   : > { %v823_v49 = vsel %vm822_vm13, %v7512_v12, %v819_v8 }
 0xea3   : > { %v8558_v20 = vsel %vm825_vm14, %v827_v27, %v823_v49  ;;  %v1604_v49 = vmul.f32 0.015625, %v8243_v42 }
 0xea8   : > { %2030 = vperm.xlu0 %7456, %v1606_v6  }
 0xea9   : > { %v8539_v22 = vpop.xlane.xlu2 %1358 }
 0xeb0   : > { %2039 = vperm.xlu0 %7456, %v1609_v50   ;;  %v8556_v50 = vpop.permute.xlu1 %1835 }
 0xeb1   : > { %v8546_v61 = vpop.xlane.xlu2 %1343 }
 0xeb8   : > { %2060 = vperm.xlu0 %7456, %v1616_v62   ;;  %v8565_v57 = vpop.permute.xlu1 %1850 }
 0xeb9   : > { %v8554_v6 = vpop.permute.xlu2 %1838 }
 0xec0   : > { %1949 = vperm.xlu0 %7456, %v1579_v16   ;;  %v8576_v10 = vpop.permute.xlu1 %1853 }
 0xec1   : > { %v8563_v21 = vpop.permute.xlu2 %1841 }
 0xec8   : > { %1958 = vperm.xlu0 %7456, %v1582_v9   ;;  %v1587_v9 = vmul.f32 0.015625, %v8348_v0  ;;  %v8581_v35 = vpop.permute.xlu1 %1862  ;;  %v1607_v0 = vmul.f32 0.015625, %v8245_v29 }
 0xec9   : > { %v8571_v5 = vpop.permute.xlu2 %1856 }
 0xed0   : > { %1961 = vperm.xlu0 %7456, %v1583_v43  }
 0xed1   : > { %v1878_v27 = vpop.permute.xlu2 %1877 }
 0xed2   : > { %v837_v62 = vpop.permute.xlu0 %836  ;;  %v2274_v42 = vperm.slane %v1878_v27, %v7751_v2  ;;  %v1611_v27 = vmul.f32 0.015625, %v8259_v60  ;;  %v834_v60 = vmul.f32 %v832_v15, %v8558_v20 }
 0xed3   : > { %v839_v16 = vmul.f32 %v837_v62, %v8558_v20 }
 0xed5   : > { %841 = vrot.lane.b32.xlu1 %v839_v16, %s7647_s20 }
 0xed8   : > { %2054 = vperm.xlu0 %7456, %v1614_v52   ;;  %v1884_v52 = vpop.permute.xlu1 %1883 }
 0xed9   : > { %v1887_v16 = vpop.permute.xlu2 %1886 }
 0xeda   : > { %v8567_v12 = vpop.permute.xlu0 %1832 }
 0xedd   : > { %2018 = vperm.xlu1 %7457, %v1602_v51   ;;  %v2278_v51 = vperm.slane %v1887_v16, %v8413_v31  ;;  %v1584_v16 = vmul.f32 0.015625, %v8262_v39 }
 0xee0   : > { %1973 = vperm.xlu0 %7456, %v1587_v9  }
 0xee2   : > { %v8573_v8 = vpop.permute.xlu0 %1844 }
 0xee5   : > { %1871 = vperm.xlu1 %7457, %v1553_v44   ;;  %v2277_v44 = vperm.slane %v1884_v52, %v7751_v2  ;;  %v1585_v52 = vmul.f32 0.015625, %v8265_v58 }
 0xee7   : > { %v2279_v4 = vsel %vm2251_vm0, %v2278_v51, %v2277_v44  ;;  %v2010_v51 = vpop.permute.xlu1 %2009 }
 0xeea   : > { %v8578_v43 = vpop.permute.xlu0 %1847 }
 0xeed   : > { %2024 = vperm.xlu1 %7457, %v1604_v49  }
 0xef2   : > { %v8583_v62 = vpop.permute.xlu0 %1859 }
 0xef5   : > { %2033 = vperm.xlu1 %7457, %v1607_v0   ;;  %v1617_v0 = vmul.f32 0.015625, %v8251_v24 }
 0xefa   : > { %v1881_v9 = vpop.permute.xlu0 %1880 }
 0xefb   : > { %v2275_v49 = vperm.slane %v1881_v9, %v8413_v31  ;;  %v1866_v9 = vpop.permute.xlu2 %1865 }
 0xefd   : > { %v2276_v59 = vsel %vm2251_vm0, %v2275_v49, %v2274_v42  ;;  %2042 = vperm.xlu1 %7457, %v1610_v17   ;;  %v2257_v42 = vperm.slane %v8573_v8, %v8413_v31  ;;  %v2340_v8 = vperm.slane %v2010_v51, %v7751_v2  ;;  %v2265_v51 = vperm.slane %v8583_v62, %v7751_v2 }
 0xefe   : > { %v8594_v29 = vsel %vm2460_vm2, %v2279_v4, %v2276_v59  ;;  %v1588_v59 = vmul.f32 0.015625, %v8268_v18  ;;  %v1595_v4 = vmul.f32 0.015625, %v8271_v30  ;;  %v2250_v18 = vperm.slane %v8567_v12, %v8413_v31 }
 0xeff   : > { %10250 = vst [vmem:[#allocation10_spill] sm:$0xff] %v8594_v29  ;;  %7000 = vmatpush.msk.msra.mxu1 %vm333_vm1, %v8594_v29  ;;  %v2254_v30 = vperm.slane %v8554_v6, %v8413_v31  ;;  %v2260_v12 = vperm.slane %v8565_v57, %v8413_v31  ;;  %v2256_v6 = vperm.slane %v8563_v21, %v7751_v2 }
 0xf00   : > { %v2252_v14 = vsel %vm2251_vm0, %v2250_v18, %v2248_v54  ;;  %v2266_v18 = vperm.slane %v8581_v35, %v8413_v31  ;;  %v2262_v62 = vperm.slane %v8576_v10, %v7751_v2 }
 0xf02   : > { %v1869_v24 = vpop.permute.xlu0 %1868 }
 0xf03   : > { %v2013_v58 = vpop.permute.xlu2 %2012 }
 0xf04   : > { %v2341_v49 = vperm.slane %v2013_v58, %v8413_v31 }
 0xf05   : > { %2063 = vperm.xlu1 %7457, %v1617_v0   ;;  %v2259_v0 = vperm.slane %v8578_v43, %v7751_v2 }
 0xf06   : > { %v2342_v21 = vsel %vm2251_vm0, %v2341_v49, %v2340_v8  ;;  %v2267_v49 = vsel %vm2251_vm0, %v2266_v18, %v2265_v51 }
 0xf07   : > { %v2261_v57 = vsel %vm2251_vm0, %v2260_v12, %v2259_v0  ;;  %v10251_v0 = vld [vmem:[#allocation19_spill] sm:$0xff] }
 0xf0a   : > { %v2016_v17 = vpop.permute.xlu0 %2015 }
 0xf0d   : > { %1952 = vperm.xlu1 %7457, %v1580_v13   ;;  %v2253_v13 = vperm.slane %v8556_v50, %v7751_v2  ;;  %v2258_v50 = vsel %vm2251_vm0, %v2257_v42, %v2256_v6  ;;  %v2268_v42 = vperm.slane %v1866_v9, %v7751_v2 }
 0xf0f   : > { %v2255_v43 = vsel %vm2251_vm0, %v2254_v30, %v2253_v13 }
 0xf15   : > { %2045 = vperm.xlu1 %7457, %v1611_v27  }
 0xf1d   : > { %1964 = vperm.xlu1 %7457, %v1584_v16  }
 0xf25   : > { %1967 = vperm.xlu1 %7457, %v1585_v52   ;;  %v2343_v52 = vperm.slane %v2016_v17, %v7751_v2  ;;  %v2461_v17 = vsel %vm2460_vm2, %v2255_v43, %v2252_v14 }
 0xf26   : > { %v2463_v30 = vsel %vm2462_vm3, %v2258_v50, %v2461_v17 }
 0xf27   : > { %v2465_v54 = vsel %vm2464_vm4, %v2261_v57, %v2463_v30 }
 0xf2d   : > { %1976 = vperm.xlu1 %7457, %v1588_v59  }
 0xf35   : > { %1997 = vperm.xlu1 %7457, %v1595_v4   ;;  %v8633_v4 = vpop.permute.xlu0 %2021 }
 0xf3d   : > { %v8665_v14 = vpop.permute.xlu0 %2030 }
 0xf45   : > { %v8676_v50 = vpop.permute.xlu0 %2039 }
 0xf47   : > { %v842_v44 = vpop.permute.xlu1 %841 }
 0xf48   : > { %v8607_v39 = vadd.f32 %v842_v44, %v834_v60  ;;  %v2263_v60 = vperm.slane %v8571_v5, %v8413_v31  ;;  %v2269_v44 = vperm.slane %v1869_v24, %v8413_v31  ;;  %v1875_v5 = vpop.permute.xlu2 %1874  ;;  %v1615_v24 = vmul.f32 0.015625, %v10251_v0 }
 0xf49   : > { %v2272_v35 = vperm.slane %v1875_v5, %v8413_v31 }
 0xf4a   : > { %7513 = vtanh.f32 %v8607_v39  ;;  %v2264_v13 = vsel %vm2251_vm0, %v2263_v60, %v2262_v62  ;;  %v2270_v12 = vsel %vm2251_vm0, %v2269_v44, %v2268_v42  ;;  %v10256_v42 = vld [vmem:[#allocation36_spill] sm:$0xff] }
 0xf4d   : > { %v2061_v17 = vpop.permute.xlu0 %2060 }
 0xf4f   : > { %v2019_v27 = vpop.permute.xlu1 %2018 }
 0xf50   : > { %v7514_v16 = vpop.eup %7513  ;;  %v2344_v59 = vperm.slane %v2019_v27, %v8413_v31  ;;  %v2467_v27 = vsel %vm2466_vm5, %v2264_v13, %v2465_v54  ;;  %v1586_v54 = vmul.f32 0.015625, %v10256_v42  ;;  %v1590_v42 = vmul.f32 0.015625, %v8356_v63  ;;  %v10260_v63 = vld [vmem:[#allocation32_spill] sm:$0xff] }
 0xf51   : > { %847 = vrot.lane.b32.xlu2 %v7514_v16, %s7648_s21  ;;  %v2469_v9 = vsel %vm2468_vm6, %v2267_v49, %v2467_v27 }
 0xf52   : > { %v2345_v15 = vsel %vm2251_vm0, %v2344_v59, %v2343_v52  ;;  %v2471_v16 = vsel %vm2470_vm7, %v2270_v12, %v2469_v9  ;;  %v1618_v59 = vmul.f32 0.015625, %v8286_v28  ;;  %v10255_v28 = vld [vmem:[#allocation35_spill] sm:$0xff]  ;;  %v10257_v12 = vld [vmem:[#allocation38_spill] sm:$0xff] }
 0xf53   : > { %v8646_v58 = vsel %vm2460_vm2, %v2345_v15, %v2342_v21  ;;  %v10253_v21 = vld [vmem:[#allocation33_spill] sm:$0xff]  ;;  %v10254_v15 = vld [vmem:[#allocation34_spill] sm:$0xff]  ;;  %v1613_v18 = vmul.f32 0.015625, %v10255_v28 }
 0xf54   : > { %v1581_v57 = vmul.f32 0.015625, %v10253_v21  ;;  %v1612_v60 = vmul.f32 0.015625, %v10254_v15 }
 0xf55   : > { %v1950_v62 = vpop.permute.xlu0 %1949 }
 0xf56   : > { %v2310_v49 = vperm.slane %v1950_v62, %v7751_v2 }
 0xf57   : > { %v1872_v6 = vpop.permute.xlu1 %1871 }
 0xf58   : > { %v2271_v10 = vperm.slane %v1872_v6, %v7751_v2  ;;  %v1589_v6 = vmul.f32 0.015625, %v10257_v12 }
 0xf59   : > { %2057 = vperm.xlu2 %7455, %v1615_v24  }
 0xf5a   : > { %v2273_v8 = vsel %vm2251_vm0, %v2272_v35, %v2271_v10  ;;  %v10258_v10 = vld [vmem:[#allocation39_spill] sm:$0xff] }
 0xf5b   : > { %v8668_v52 = vsel %vm2472_vm9, %v2273_v8, %v2471_v16  ;;  %v1596_v9 = vmul.f32 0.015625, %v10258_v10 }
 0xf5c   : > { %10252 = vst [vmem:[#allocation11_spill] sm:$0xff] %v8668_v52  ;;  %2572 = vmatpush.msra.mxu1 %v8668_v52 }
 0xf5d   : > { %7001 = vmatmul.msk.f32.vlgmr.msra.gmra.mxu1 %vm357_vm8, %v8668_v52  ;;  %v1959_v13 = vpop.permute.xlu0 %1958 }
 0xf5f   : > { %v8674_v43 = vpop.permute.xlu1 %2024 }
 0xf61   : > { %2066 = vperm.xlu2 %7455, %v1618_v59  }
 0xf65   : > { %7002 = vmatmul.msk.f32.gmra.mxu1 %vm357_vm8, %v8594_v29  ;;  %v1962_v27 = vpop.permute.xlu0 %1961 }
 0xf66   : > { %v2316_v8 = vperm.slane %v1962_v27, %v7751_v2 }
 0xf67   : > { %v8681_v51 = vpop.permute.xlu1 %2033 }
 0xf69   : > { %1955 = vperm.xlu2 %7455, %v1581_v57   ;;  %v2028_v57 = vpop.permute.xlu2 %2027 }
 0xf6f   : > { %v8684_v44 = vpop.permute.xlu1 %2042 }
 0xf71   : > { %2048 = vperm.xlu2 %7455, %v1612_v60   ;;  %v2037_v15 = vpop.permute.xlu2 %2036 }
 0xf77   : > { %v2064_v30 = vpop.permute.xlu1 %2063 }
 0xf79   : > { %2051 = vperm.xlu2 %7455, %v1613_v18  }
 0xf7f   : > { %v1953_v5 = vpop.permute.xlu1 %1952 }
 0xf80   : > { %v2311_v0 = vperm.slane %v1953_v5, %v8413_v31 }
 0xf81   : > { %1970 = vperm.xlu2 %7455, %v1586_v54  }
 0xf82   : > { %v2312_v24 = vsel %vm2251_vm0, %v2311_v0, %v2310_v49  ;;  %v2365_v49 = vperm.slane %v2061_v17, %v8413_v31  ;;  %v2367_v0 = vperm.slane %v2064_v30, %v7751_v2 }
 0xf87   : > { %v2046_v35 = vpop.permute.xlu1 %2045 }
 0xf89   : > { %1979 = vperm.xlu2 %7455, %v1589_v6  }
 0xf8f   : > { %v1965_v16 = vpop.permute.xlu1 %1964 }
 0xf90   : > { %v2317_v59 = vperm.slane %v1965_v16, %v8413_v31  ;;  %v2314_v16 = vperm.slane %v1959_v13, %v8413_v31 }
 0xf91   : > { %2000 = vperm.xlu2 %7455, %v1596_v9   ;;  %v1363_v9 = vrot.slane %v10260_v63, 7 }
 0xf92   : > { %v2318_v21 = vsel %vm2251_vm0, %v2317_v59, %v2316_v8 }
 0xfab   : > { %v848_v60 = vpop.permute.xlu2 %847 }
 0xfac   : > { %v8697_v28 = vmul.f32 %v848_v60, %v8558_v20  ;;  %v1597_v20 = vmul.f32 0.015625, %v8368_v45 }
 0xfae   : > { %v852_v18 = vrot.slane %v8697_v28, 6  ;;  %v1365_v17 = vsub.f32 %v8697_v28, %v1363_v9 }
 0xfb0   : > { %853 = vrot.lane.b32.xlu0 %v852_v18, %s7649_s22  ;;  %v1366_v8 = vperm.slane %v1365_v17, 6 }
 0xfb3   : > { %v2058_v62 = vpop.permute.xlu2 %2057 }
 0xfb4   : > { %v2364_v54 = vperm.slane %v2058_v62, %v7751_v2  ;;  %v2347_v62 = vperm.slane %v8674_v43, %v8413_v31 }
 0xfb6   : > { %v2366_v6 = vsel %vm2251_vm0, %v2365_v49, %v2364_v54  ;;  %v2350_v49 = vperm.slane %v8665_v14, %v8413_v31  ;;  %v2358_v14 = vperm.slane %v2046_v35, %v7751_v2 }
 0xfb8   : > { %1982 = vperm.xlu0 %7456, %v1590_v42   ;;  %v2346_v42 = vperm.slane %v8633_v4, %v7751_v2  ;;  %v2355_v4 = vperm.slane %v8676_v50, %v7751_v2 }
 0xfba   : > { %v2348_v13 = vsel %vm2251_vm0, %v2347_v62, %v2346_v42 }
 0xfbb   : > { %v2067_v5 = vpop.permute.xlu2 %2066 }
 0xfbc   : > { %v2368_v12 = vperm.slane %v2067_v5, %v8413_v31  ;;  %v2352_v5 = vperm.slane %v8681_v51, %v7751_v2  ;;  %v2492_v51 = vsel %vm2462_vm3, %v2348_v13, %v8646_v58 }
 0xfbe   : > { %v2369_v27 = vsel %vm2251_vm0, %v2368_v12, %v2367_v0  ;;  %v1968_v0 = vpop.permute.xlu1 %1967  ;;  %v2349_v12 = vperm.slane %v2028_v57, %v7751_v2 }
 0xfbf   : > { %v8710_v10 = vsel %vm2460_vm2, %v2369_v27, %v2366_v6  ;;  %v2319_v62 = vperm.slane %v1968_v0, %v7751_v2 }
 0xfc0   : > { %10259 = vst [vmem:[#allocation20_spill] sm:$0xff] %v8710_v10  ;;  %2003 = vperm.xlu0 %7456, %v1597_v20   ;;  %7009 = vmatpush.msk.msrb.mxu0 %vm333_vm1, %v8710_v10  ;;  %v2055_v20 = vpop.permute.xlu0 %2054 }
 0xfc1   : > { %v2362_v9 = vperm.slane %v2055_v20, %v8413_v31 }
 0xfc3   : > { %v1956_v30 = vpop.permute.xlu2 %1955 }
 0xfc4   : > { %v2313_v45 = vperm.slane %v1956_v30, %v7751_v2 }
 0xfc6   : > { %v2315_v59 = vsel %vm2251_vm0, %v2314_v16, %v2313_v45  ;;  %v1977_v45 = vpop.permute.xlu1 %1976 }
 0xfc7   : > { %v2483_v60 = vsel %vm2460_vm2, %v2315_v59, %v2312_v24  ;;  %v2356_v24 = vperm.slane %v8684_v44, %v8413_v31  ;;  %v2351_v44 = vsel %vm2251_vm0, %v2350_v49, %v2349_v12  ;;  %v2323_v59 = vperm.slane %v1977_v45, %v8413_v31 }
 0xfc8   : > { %1368 = vrot.lane.b32.xlu0 %v1366_v8, %s7649_s22  ;;  %v2484_v18 = vsel %vm2462_vm3, %v2318_v21, %v2483_v60  ;;  %v2353_v21 = vperm.slane %v2037_v15, %v8413_v31  ;;  %v2493_v15 = vsel %vm2464_vm4, %v2351_v44, %v2492_v51  ;;  %v1974_v8 = vpop.permute.xlu0 %1973 }
 0xfc9   : > { %v2357_v27 = vsel %vm2251_vm0, %v2356_v24, %v2355_v4 }
 0xfca   : > { %v2354_v6 = vsel %vm2251_vm0, %v2353_v21, %v2352_v5 }
 0xfcb   : > { %v2049_v54 = vpop.permute.xlu2 %2048  ;;  %v2494_v50 = vsel %vm2466_vm5, %v2354_v6, %v2493_v15 }
 0xfcc   : > { %v2359_v43 = vperm.slane %v2049_v54, %v8413_v31  ;;  %v2495_v58 = vsel %vm2468_vm6, %v2357_v27, %v2494_v50  ;;  %v2322_v54 = vperm.slane %v1974_v8, %v7751_v2  ;;  %v8786_v27 = vld [vmem:[#allocation2 + $0x10] sm:$0xff]  ;;  %v8803_v8 = vld [vmem:[#allocation2 + $0x20] sm:$0xff] }
 0xfce   : > { %v2360_v63 = vsel %vm2251_vm0, %v2359_v43, %v2358_v14  ;;  %v2324_v5 = vsel %vm2251_vm0, %v2323_v59, %v2322_v54 }
 0xfcf   : > { %v2496_v30 = vsel %vm2470_vm7, %v2360_v63, %v2495_v58  ;;  %v8790_v63 = vld [vmem:[#allocation2 + $0x8] sm:$0x3] }
 0xfd3   : > { %v2052_v57 = vpop.permute.xlu2 %2051 }
 0xfd4   : > { %v2361_v17 = vperm.slane %v2052_v57, %v7751_v2 }
 0xfd6   : > { %v2363_v35 = vsel %vm2251_vm0, %v2362_v9, %v2361_v17  ;;  %v8794_v9 = vld [vmem:[#allocation2] sm:$0xff] }
 0xfd7   : > { %v8753_v16 = vsel %vm2472_vm9, %v2363_v35, %v2496_v30 }
 0xfd8   : > { %10261 = vst [vmem:[#allocation12_spill] sm:$0xff] %v8753_v16  ;;  %2659 = vmatpush.msrb.mxu0 %v8753_v16 }
 0xfda   : > { %v2574_v6 = vpop.f32.mrf.mxu1 }
 0xfdb   : > { %v1971_v60 = vpop.permute.xlu2 %1970  ;;  %v8780_v14 = vmul.f32 0.5, %v2574_v6 }
 0xfdc   : > { %v2320_v42 = vperm.slane %v1971_v60, %v8413_v31  ;;  %v8807_v60 = vld [vmem:[#allocation2 + $0x38] sm:$0x3] }
 0xfdd   : > { %10262 = vst [vmem:[#allocation21_spill] sm:$0xff] %v8780_v14 }
 0xfde   : > { %v2321_v13 = vsel %vm2251_vm0, %v2320_v42, %v2319_v62  ;;  %v8811_v42 = vld [vmem:[#allocation2 + $0x18] sm:$0x3] }
 0xfdf   : > { %v2485_v49 = vsel %vm2464_vm4, %v2321_v13, %v2484_v18 }
 0xfe0   : > { %v2486_v24 = vsel %vm2466_vm5, %v2324_v5, %v2485_v49 }
 0xfe2   : > { %v2577_v35 = vpop.f32.mrf.mxu1 }
 0xfe3   : > { %v1980_v0 = vpop.permute.xlu2 %1979  ;;  %v8801_v45 = vmul.f32 0.5, %v2577_v35 }
 0xfe4   : > { %v2325_v12 = vperm.slane %v1980_v0, %v7751_v2  ;;  %v8824_v0 = vld [vmem:[#allocation2 + $0x40] sm:$0xff] }
 0xfe5   : > { %10263 = vst [vmem:[#allocation13_spill] sm:$0xff] %v8801_v45 }
0x1022   : > { %v854_v21 = vpop.permute.xlu0 %853 }
0x1023   : > { %6998 = vmatmul.msk.f32.vlgmr.msra.gmra.mxu0 %vm357_vm8, %v854_v21 }
0x1024   : > { %7021 = vmatpush.msk.msra.mxu0 %vm333_vm1, %v8594_v29 }
0x1026   : > { %2803 = vmatpush.msra.mxu0 %v8668_v52 }
0x102a   : > { %v1983_v43 = vpop.permute.xlu0 %1982 }
0x102b   : > { %v2326_v4 = vperm.slane %v1983_v43, %v8413_v31  ;;  %7010 = vmatmul.msk.f32.vlgmr.msrb.gmra.mxu0 %vm357_vm8, %v8753_v16 }
0x102d   : > { %v2327_v18 = vsel %vm2251_vm0, %v2326_v4, %v2325_v12  ;;  %v8828_v12 = vld [vmem:[#allocation2 + $0x28] sm:$0x3] }
0x102e   : > { %v8774_v20 = vsel %vm2468_vm6, %v2327_v18, %v2486_v24  ;;  %v8820_v24 = vld [vmem:[#allocation2 + $0x48] sm:$0x3] }
0x1032   : > { %v8776_v51 = vpop.permute.xlu0 %2003 }
0x1033   : > { %7011 = vmatmul.msk.f32.gmra.mxu0 %vm357_vm8, %v8710_v10 }
0x103a   : > { %v8782_v44 = vpop.permute.xlu0 %1368 }
0x103b   : > { %7022 = vmatmul.msk.f32.vlgmr.msra.gmra.mxu0 %vm357_vm8, %v8780_v14  ;;  %v1373_v15 = vmul.f32 %v8786_v27, %v8782_v44  ;;  %v1372_v57 = vmul.f32 %v8790_v63, %v8782_v44  ;;  %v1371_v50 = vmul.f32 %v8794_v9, %v8782_v44  ;;  %v1375_v59 = vmul.f32 %v8803_v8, %v8782_v44 }
0x103c   : > { %v1378_v62 = vmul.f32 %v8807_v60, %v8782_v44  ;;  %v1374_v54 = vmul.f32 %v8811_v42, %v8782_v44  ;;  %v1380_v21 = vmul.f32 %v8820_v24, %v8782_v44  ;;  %v1379_v43 = vmul.f32 %v8824_v0, %v8782_v44 }
0x103d   : > { %v1397_v17 = vsel %vm357_vm8, %v1373_v15, 0.0  ;;  %v1394_v58 = vsel %vm953_vm11, %v1372_v57, 0.0  ;;  %v1391_v30 = vsel %vm357_vm8, %v1371_v50, 0.0  ;;  %v1403_v13 = vsel %vm357_vm8, %v1375_v59, 0.0  ;;  %v8835_v57 = vld [vmem:[#allocation2 + $0x50] sm:$0xff] }
0x103e   : > { %1398 = vadd.xlane.f32.xlu0 %v1397_v17  ;;  %1395 = vadd.xlane.f32.xlu2 %v1394_v58  ;;  %v1412_v5 = vsel %vm953_vm11, %v1378_v62, 0.0  ;;  %v1400_v49 = vsel %vm953_vm11, %v1374_v54, 0.0  ;;  %v1376_v4 = vmul.f32 %v8828_v12, %v8782_v44  ;;  %v1418_v18 = vsel %vm953_vm11, %v1380_v21, 0.0  ;;  %v8839_v17 = vld [vmem:[#allocation2 + $0x80] sm:$0xff] }
0x103f   : > { %1392 = vadd.xlane.f32.xlu1 %v1391_v30  ;;  %v1415_v6 = vsel %vm357_vm8, %v1379_v43, 0.0  ;;  %v1381_v50 = vmul.f32 %v8835_v57, %v8782_v44  ;;  %v1387_v58 = vmul.f32 %v8839_v17, %v8782_v44  ;;  %v8843_v30 = vld [vmem:[#allocation2 + $0x30] sm:$0xff]  ;;  %v8858_v43 = vld [vmem:[#allocation2 + $0x58] sm:$0x3] }
0x1040   : > { %v1406_v15 = vsel %vm953_vm11, %v1376_v4, 0.0  ;;  %v1377_v35 = vmul.f32 %v8843_v30, %v8782_v44  ;;  %v1382_v4 = vmul.f32 %v8858_v43, %v8782_v44 }
0x1041   : > { %v1421_v59 = vsel %vm357_vm8, %v1381_v50, 0.0  ;;  %v1439_v62 = vsel %vm357_vm8, %v1387_v58, 0.0  ;;  %v8865_v50 = vld [vmem:[#allocation2 + $0x60] sm:$0xff] }
0x1042   : > { %v1409_v54 = vsel %vm357_vm8, %v1377_v35, 0.0  ;;  %10265 = vst [vmem:[#allocation14_spill] sm:$0xff] %v8865_v50  ;;  %v1383_v58 = vmul.f32 %v8865_v50, %v8782_v44  ;;  %v8869_v35 = vld [vmem:[#allocation2 + $0x70] sm:$0xff] }
0x1043   : > { %7023 = vmatmul.msk.f32.gmra.mxu0 %vm357_vm8, %v8801_v45  ;;  %10266 = vst [vmem:[#allocation23_spill] sm:$0xff] %v8869_v35 }
0x1046   : > { %1404 = vadd.xlane.f32.xlu0 %v1403_v13  ;;  %1413 = vadd.xlane.f32.xlu2 %v1412_v5  ;;  %v8850_v13 = vld [vmem:[#allocation2 + $0x88] sm:$0x3] }
0x1047   : > { %1401 = vadd.xlane.f32.xlu1 %v1400_v49  ;;  %v1388_v5 = vmul.f32 %v8850_v13, %v8782_v44  ;;  %v8854_v49 = vld [vmem:[#allocation2 + $0x98] sm:$0x3] }
0x1048   : > { %10264 = vst [vmem:[#allocation22_spill] sm:$0xff] %v8854_v49  ;;  %v1390_v21 = vmul.f32 %v8854_v49, %v8782_v44 }
0x104e   : > { %1419 = vadd.xlane.f32.xlu0 %v1418_v18  ;;  %1416 = vadd.xlane.f32.xlu2 %v1415_v6  ;;  %v1442_v18 = vsel %vm953_vm11, %v1388_v5, 0.0  ;;  %v1448_v6 = vsel %vm953_vm11, %v1390_v21, 0.0  ;;  %v1427_v5 = vsel %vm357_vm8, %v1383_v58, 0.0 }
0x104f   : > { %1407 = vadd.xlane.f32.xlu1 %v1406_v15  ;;  %v1424_v15 = vsel %vm953_vm11, %v1382_v4, 0.0 }
0x1056   : > { %1422 = vadd.xlane.f32.xlu0 %v1421_v59  ;;  %1440 = vadd.xlane.f32.xlu2 %v1439_v62  ;;  %v1385_v59 = vmul.f32 %v8869_v35, %v8782_v44  ;;  %v8873_v62 = vld [vmem:[#allocation2 + $0x90] sm:$0xff] }
0x1057   : > { %1410 = vadd.xlane.f32.xlu1 %v1409_v54  ;;  %v1389_v54 = vmul.f32 %v8873_v62, %v8782_v44 }
0x1058   : > { %v1433_v21 = vsel %vm357_vm8, %v1385_v59, 0.0  ;;  %v8890_v59 = vpop.permute.xlu2 %2000 }
0x1059   : > { %v1445_v4 = vsel %vm357_vm8, %v1389_v54, 0.0  ;;  %v8892_v54 = vpop.permute.xlu1 %1997 }
0x105e   : > { %1443 = vadd.xlane.f32.xlu0 %v1442_v18  ;;  %1449 = vadd.xlane.f32.xlu2 %v1448_v6  ;;  %v8880_v18 = vld [vmem:[#allocation2 + $0x78] sm:$0x3] }
0x105f   : > { %1425 = vadd.xlane.f32.xlu1 %v1424_v15  ;;  %10267 = vst [vmem:[#allocation16_spill] sm:$0xff] %v8880_v18  ;;  %v1386_v6 = vmul.f32 %v8880_v18, %v8782_v44  ;;  %v8884_v15 = vld [vmem:[#allocation2 + $0x68] sm:$0x3] }
0x1060   : > { %10268 = vst [vmem:[#allocation24_spill] sm:$0xff] %v8884_v15  ;;  %v1384_v45 = vmul.f32 %v8884_v15, %v8782_v44 }
0x1061   : > { %v1436_v14 = vsel %vm953_vm11, %v1386_v6, 0.0 }
0x1062   : > { %v1430_v58 = vsel %vm953_vm11, %v1384_v45, 0.0 }
0x1066   : > { %1428 = vadd.xlane.f32.xlu0 %v1427_v5  ;;  %1434 = vadd.xlane.f32.xlu2 %v1433_v21 }
0x1067   : > { %1446 = vadd.xlane.f32.xlu1 %v1445_v4 }
0x106e   : > { %1437 = vadd.xlane.f32.xlu0 %v1436_v14 }
0x106f   : > { %1431 = vadd.xlane.f32.xlu1 %v1430_v58 }
0x10b1   : > { %v1399_v5 = vpop.xlane.xlu0 %1398  ;;  %v1396_v21 = vpop.xlane.xlu2 %1395 }
0x10b2   : > { %v1641_v4 = vmul.f32 0.015625, %v1399_v5  ;;  %v1640_v52 = vmul.f32 0.015625, %v1396_v21  ;;  %v1393_v29 = vpop.xlane.xlu1 %1392 }
0x10b3   : > { %v1639_v16 = vmul.f32 0.015625, %v1393_v29 }
0x10b4   : > { %2135 = vperm.xlu0 %7456, %v1641_v4   ;;  %2132 = vperm.xlu2 %7455, %v1640_v52  }
0x10b5   : > { %2129 = vperm.xlu1 %7457, %v1639_v16  }
0x10b9   : > { %v1405_v44 = vpop.xlane.xlu0 %1404  ;;  %v1414_v10 = vpop.xlane.xlu2 %1413 }
0x10ba   : > { %v1643_v6 = vmul.f32 0.015625, %v1405_v44  ;;  %v1646_v14 = vmul.f32 0.015625, %v1414_v10  ;;  %v1402_v35 = vpop.xlane.xlu1 %1401 }
0x10bb   : > { %v1642_v45 = vmul.f32 0.015625, %v1402_v35 }
0x10bc   : > { %2141 = vperm.xlu0 %7456, %v1643_v6   ;;  %2150 = vperm.xlu2 %7455, %v1646_v14  }
0x10bd   : > { %2138 = vperm.xlu1 %7457, %v1642_v45  }
0x10c1   : > { %v1420_v58 = vpop.xlane.xlu0 %1419  ;;  %v1417_v18 = vpop.xlane.xlu2 %1416 }
0x10c2   : > { %v1648_v49 = vmul.f32 0.015625, %v1420_v58  ;;  %v1647_v50 = vmul.f32 0.015625, %v1417_v18  ;;  %v1408_v5 = vpop.xlane.xlu1 %1407 }
0x10c3   : > { %v1644_v21 = vmul.f32 0.015625, %v1408_v5 }
0x10c4   : > { %2156 = vperm.xlu0 %7456, %v1648_v49   ;;  %2153 = vperm.xlu2 %7455, %v1647_v50   ;;  %v874_v49 = vpop.f32.mrf.mxu0 }
0x10c5   : > { %2144 = vperm.xlu1 %7457, %v1644_v21   ;;  %v878_v21 = vrot.slane %v874_v49, 1 }
0x10c9   : > { %v1423_v29 = vpop.xlane.xlu0 %1422  ;;  %v1441_v52 = vpop.xlane.xlu2 %1440 }
0x10ca   : > { %v1649_v16 = vmul.f32 0.015625, %v1423_v29  ;;  %v1655_v4 = vmul.f32 0.015625, %v1441_v52  ;;  %v1411_v44 = vpop.xlane.xlu1 %1410 }
0x10cb   : > { %v1645_v10 = vmul.f32 0.015625, %v1411_v44 }
0x10cc   : > { %2159 = vperm.xlu0 %7456, %v1649_v16   ;;  %2177 = vperm.xlu2 %7455, %v1655_v4   ;;  %v880_v16 = vadd.f32 %v878_v21, %v7780_v11  ;;  %v1619_v11 = vmul.f32 0.015625, %v8506_v19  ;;  %v1622_v21 = vmul.f32 0.015625, %v8514_v3  ;;  %v1627_v19 = vmul.f32 0.015625, %v8525_v38 }
0x10cd   : > { %2147 = vperm.xlu1 %7457, %v1645_v10   ;;  %v10269_v10 = vld [vmem:[#allocation40_spill] sm:$0xff]  ;;  %v1630_v3 = vmul.f32 0.015625, %v8532_v37  ;;  %v1629_v38 = vmul.f32 0.015625, %v8527_v53  ;;  %v1634_v53 = vmul.f32 0.015625, %v8549_v26 }
0x10d1   : > { %v1444_v35 = vpop.xlane.xlu0 %1443  ;;  %v1450_v6 = vpop.xlane.xlu2 %1449 }
0x10d2   : > { %v1656_v14 = vmul.f32 0.015625, %v1444_v35  ;;  %v1658_v45 = vmul.f32 0.015625, %v1450_v6  ;;  %v1426_v58 = vpop.xlane.xlu1 %1425  ;;  %v1591_v35 = vmul.f32 0.015625, %v10269_v10  ;;  %v881_v6 = vadd.f32 %v8484_v55, %v880_v16 }
0x10d3   : > { %v1650_v18 = vmul.f32 0.015625, %v1426_v58  ;;  %v1621_v55 = vmul.f32 0.015625, %v8508_v56  ;;  %v1620_v56 = vmul.f32 0.015625, %v8503_v48  ;;  %v1635_v16 = vmul.f32 0.015625, %v8537_v36 }
0x10d4   : > { %2180 = vperm.xlu0 %7456, %v1656_v14   ;;  %2186 = vperm.xlu2 %7455, %v1658_v45   ;;  %7515 = vtanh.f32 %v881_v6  ;;  %v1638_v48 = vmul.f32 0.015625, %v8544_v25  ;;  %v1631_v36 = vmul.f32 0.015625, %v8542_v23  ;;  %v6999_v25 = vmul.f32 -1.442695, %v881_v6 }
0x10d5   : > { %2162 = vperm.xlu1 %7457, %v1650_v18   ;;  %v1592_v18 = vmul.f32 0.015625, %v8376_v41  ;;  %v1624_v41 = vmul.f32 0.015625, %v8517_v40  ;;  %v1623_v40 = vmul.f32 0.015625, %v8512_v47  ;;  %v1636_v47 = vmul.f32 0.015625, %v8534_v33 }
0x10d6   : > { %7517 = vpow2.f32 %v6999_v25 }
0x10d9   : > { %v1429_v50 = vpop.xlane.xlu0 %1428  ;;  %v1435_v5 = vpop.xlane.xlu2 %1434 }
0x10da   : > { %v1651_v29 = vmul.f32 0.015625, %v1429_v50  ;;  %v1653_v52 = vmul.f32 0.015625, %v1435_v5  ;;  %v1447_v15 = vpop.xlane.xlu1 %1446  ;;  %v7516_v49 = vpop.eup %7515  ;;  %v10270_v50 = vld [vmem:[#allocation31_spill] sm:$0xff] }
0x10db   : > { %v1657_v44 = vmul.f32 0.015625, %v1447_v15  ;;  %v1594_v15 = vmul.f32 0.015625, %v8380_v7  ;;  %v1598_v5 = vmul.f32 0.015625, %v10270_v50 }
0x10dc   : > { %2165 = vperm.xlu0 %7456, %v1651_v29   ;;  %2171 = vperm.xlu2 %7455, %v1653_v52   ;;  %v10271_v29 = vld [vmem:[#allocation37_spill] sm:$0xff]  ;;  %v1625_v52 = vmul.f32 0.015625, %v8522_v34  ;;  %v1626_v34 = vmul.f32 0.015625, %v8520_v46 }
0x10dd   : > { %2183 = vperm.xlu1 %7457, %v1657_v44   ;;  %v1593_v7 = vmul.f32 0.015625, %v10271_v29  ;;  %v1628_v44 = vmul.f32 0.015625, %v8529_v32  ;;  %v1633_v32 = vmul.f32 0.015625, %v8551_v1 }
0x10e1   : > { %v1438_v4 = vpop.xlane.xlu0 %1437 }
0x10e2   : > { %v1654_v14 = vmul.f32 0.015625, %v1438_v4  ;;  %v1432_v45 = vpop.xlane.xlu1 %1431 }
0x10e3   : > { %v1652_v58 = vmul.f32 0.015625, %v1432_v45 }
0x10e4   : > { %2174 = vperm.xlu0 %7456, %v1654_v14   ;;  %1985 = vperm.xlu2 %7455, %v1591_v35  }
0x10e5   : > { %2168 = vperm.xlu1 %7457, %v1652_v58  }
0x10ec   : > { %1988 = vperm.xlu0 %7456, %v1592_v18   ;;  %1994 = vperm.xlu2 %7455, %v1594_v15   ;;  %v7518_v18 = vpop.eup %7517 }
0x10ed   : > { %907 = vrot.lane.b32.xlu1 %v7516_v49, %s7646_s19  ;;  %v8920_v33 = vadd.f32 1.0, %v7518_v18  ;;  %s6901_s19 = sshll.u32 %s6897_s16, 4  ;;  %s6902_s19 = int_to_ptr.hbm [resolvable:$true] %s6901_s19 }
0x10ef   : > { %7519 = vrcp.f32 %v8920_v33  ;;  %vm891_vm10 = vweird.f32 %v8920_v33 }
0x10f4   : > { %2069 = vperm.xlu0 %7456, %v1619_v11   ;;  %2075 = vperm.xlu2 %7455, %v1621_v55  }
0x10f5   : > { %2006 = vperm.xlu1 %7457, %v1598_v5   ;;  %v7520_v50 = vpop.eup %7519 }
0x10f6   : > { %v887_v6 = vmul.f32 %v7520_v50, %v8920_v33  ;;  %vm892_vm15 = vweird.f32 %v7520_v50 }
0x10f7   : > { %vm893_vm12 = vmor %vm891_vm10, %vm892_vm15 }
0x10fc   : > { %2078 = vperm.xlu0 %7456, %v1622_v21   ;;  %2084 = vperm.xlu2 %7455, %v1624_v41  }
0x10fd   : > { %1991 = vperm.xlu1 %7457, %v1593_v7  }
0x1104   : > { %2087 = vperm.xlu0 %7456, %v1625_v52   ;;  %2093 = vperm.xlu2 %7455, %v1627_v19  }
0x1105   : > { %2072 = vperm.xlu1 %7457, %v1620_v56  }
0x110c   : > { %2096 = vperm.xlu0 %7456, %v1628_v44   ;;  %2102 = vperm.xlu2 %7455, %v1630_v3   ;;  %v888_v44 = vsub.f32 1.0, %v887_v6 }
0x110d   : > { %2081 = vperm.xlu1 %7457, %v1623_v40  }
0x110e   : > { %v2133_v37 = vpop.permute.xlu2 %2132 }
0x1114   : > { %2117 = vperm.xlu0 %7456, %v1635_v16  }
0x1115   : > { %2090 = vperm.xlu1 %7457, %v1626_v34  }
0x1116   : > { %v2151_v46 = vpop.permute.xlu2 %2150 }
0x111c   : > { %2126 = vperm.xlu0 %7456, %v1638_v48   ;;  %v2401_v48 = vperm.slane %v2133_v37, %v8413_v31 }
0x111d   : > { %2099 = vperm.xlu1 %7457, %v1629_v38   ;;  %v2410_v38 = vperm.slane %v2151_v46, %v8413_v31 }
0x111e   : > { %v2154_v45 = vpop.permute.xlu2 %2153 }
0x1124   : > { %2111 = vperm.xlu0 %7456, %v1633_v32  }
0x1125   : > { %2120 = vperm.xlu1 %7457, %v1636_v47  }
0x1126   : > { %v2136_v4 = vpop.permute.xlu0 %2135  ;;  %v2178_v11 = vpop.permute.xlu2 %2177 }
0x1127   : > { %v2130_v10 = vpop.permute.xlu1 %2129  ;;  %v2403_v7 = vperm.slane %v2136_v4, %v7751_v2  ;;  %v2424_v3 = vperm.slane %v2178_v11, %v7751_v2  ;;  %v2412_v11 = vperm.slane %v2154_v45, %v7751_v2 }
0x1128   : > { %v2400_v52 = vperm.slane %v2130_v10, %v7751_v2 }
0x112d   : > { %2105 = vperm.xlu1 %7457, %v1631_v36   ;;  %v2402_v36 = vsel %vm2251_vm0, %v2401_v48, %v2400_v52 }
0x112e   : > { %v2142_v35 = vpop.permute.xlu0 %2141  ;;  %v2187_v5 = vpop.permute.xlu2 %2186 }
0x112f   : > { %v2139_v14 = vpop.permute.xlu1 %2138  ;;  %v2406_v40 = vperm.slane %v2142_v35, %v7751_v2  ;;  %v2428_v16 = vperm.slane %v2187_v5, %v8413_v31 }
0x1130   : > { %v2404_v26 = vperm.slane %v2139_v14, %v8413_v31 }
0x1132   : > { %v2405_v32 = vsel %vm2251_vm0, %v2404_v26, %v2403_v7 }
0x1133   : > { %v2507_v37 = vsel %vm2460_vm2, %v2405_v32, %v2402_v36  ;;  %v2337_v36 = vperm.slane %v8776_v51, %v7751_v2 }
0x1135   : > { %2114 = vperm.xlu1 %7457, %v1634_v53  }
0x1136   : > { %v2157_v1 = vpop.permute.xlu0 %2156  ;;  %v2172_v53 = vpop.permute.xlu2 %2171 }
0x1137   : > { %v2145_v58 = vpop.permute.xlu1 %2144  ;;  %v2413_v46 = vperm.slane %v2157_v1, %v8413_v31  ;;  %v2421_v5 = vperm.slane %v2172_v53, %v7751_v2 }
0x1138   : > { %v2407_v21 = vperm.slane %v2145_v58, %v8413_v31  ;;  %v889_v58 = vmul.f32 %v7520_v50, %v888_v44 }
0x113a   : > { %v2408_v47 = vsel %vm2251_vm0, %v2407_v21, %v2406_v40  ;;  %v2414_v21 = vsel %vm2251_vm0, %v2413_v46, %v2412_v11 }
0x113b   : > { %v2508_v18 = vsel %vm2462_vm3, %v2408_v47, %v2507_v37  ;;  %v2335_v47 = vperm.slane %v8890_v59, %v8413_v31 }
0x113e   : > { %v2160_v15 = vpop.permute.xlu0 %2159 }
0x113f   : > { %v2148_v49 = vpop.permute.xlu1 %2147 }
0x1140   : > { %v2409_v19 = vperm.slane %v2148_v49, %v7751_v2  ;;  %v2415_v49 = vperm.slane %v2160_v15, %v7751_v2  ;;  %v890_v15 = vadd.f32 %v7520_v50, %v889_v58 }
0x1142   : > { %v2411_v35 = vsel %vm2251_vm0, %v2410_v38, %v2409_v19  ;;  %v897_v19 = vand.u32 2147483648, %v8920_v33 }
0x1146   : > { %v2181_v23 = vpop.permute.xlu0 %2180 }
0x1147   : > { %v2163_v55 = vpop.permute.xlu1 %2162  ;;  %v2425_v41 = vperm.slane %v2181_v23, %v8413_v31  ;;  %v2509_v23 = vsel %vm2464_vm4, %v2411_v35, %v2508_v18  ;;  %v1632_v18 = vmul.f32 0.015625, %v8546_v61 }
0x1148   : > { %v2416_v14 = vperm.slane %v2163_v55, %v8413_v31  ;;  %v2510_v45 = vsel %vm2466_vm5, %v2414_v21, %v2509_v23 }
0x1149   : > { %v2426_v4 = vsel %vm2251_vm0, %v2425_v41, %v2424_v3  ;;  %v895_v3 = vand.u32 2147483647, %v8920_v33  ;;  %v1986_v33 = vpop.permute.xlu2 %1985 }
0x114a   : > { %v2417_v6 = vsel %vm2251_vm0, %v2416_v14, %v2415_v49 }
0x114b   : > { %vm896_vm13 = vcmp.eq.f32.partialorder %v895_v3, 8.507059e+37  ;;  %v903_v3 = vrot.slane %v8607_v39, 7 }
0x114e   : > { %v2166_v29 = vpop.permute.xlu0 %2165 }
0x114f   : > { %v2184_v56 = vpop.permute.xlu1 %2183  ;;  %v2418_v41 = vperm.slane %v2166_v29, %v7751_v2 }
0x1150   : > { %v2427_v34 = vperm.slane %v2184_v56, %v7751_v2  ;;  %v2511_v56 = vsel %vm2468_vm6, %v2417_v6, %v2510_v45 }
0x1151   : > { %v1995_v51 = vpop.permute.xlu2 %1994 }
0x1152   : > { %v2429_v10 = vsel %vm2251_vm0, %v2428_v16, %v2427_v34  ;;  %v894_v16 = vsel %vm893_vm12, %v7520_v50, %v890_v15  ;;  %v898_v34 = vor.u32 1.1754944e-38, %v897_v19  ;;  %v2332_v49 = vperm.slane %v1995_v51, %v8413_v31 }
0x1153   : > { %v8944_v25 = vsel %vm2460_vm2, %v2429_v10, %v2426_v4  ;;  %v1637_v4 = vmul.f32 0.015625, %v8539_v22  ;;  %v2334_v10 = vperm.slane %v8892_v54, %v7751_v2  ;;  %v2328_v22 = vperm.slane %v1986_v33, %v7751_v2 }
0x1154   : > { %7015 = vmatpush.msk.msrb.mxu2 %vm333_vm1, %v8944_v25  ;;  %v8974_v48 = vsel %vm896_vm13, %v898_v34, %v894_v16 }
0x1155   : > { %v2336_v37 = vsel %vm2251_vm0, %v2335_v47, %v2334_v10 }
0x1156   : > { %v2175_v55 = vpop.permute.xlu0 %2174 }
0x1157   : > { %v2422_v1 = vperm.slane %v2175_v55, %v8413_v31  ;;  %v2169_v26 = vpop.permute.xlu1 %2168 }
0x1158   : > { %v2419_v7 = vperm.slane %v2169_v26, %v8413_v31 }
0x1159   : > { %v2423_v52 = vsel %vm2251_vm0, %v2422_v1, %v2421_v5  ;;  %v2076_v1 = vpop.permute.xlu2 %2075 }
0x115a   : > { %v2420_v44 = vsel %vm2251_vm0, %v2419_v7, %v2418_v41 }
0x115b   : > { %v2512_v40 = vsel %vm2470_vm7, %v2420_v44, %v2511_v56 }
0x115c   : > { %v8969_v29 = vsel %vm2472_vm9, %v2423_v52, %v2512_v40  ;;  %v905_v40 = vmul.f32 %v903_v3, %v8974_v48 }
0x115d   : > { %2717 = vmatpush.msrb.mxu2 %v8969_v29 }
0x115e   : > { %7016 = vmatmul.msk.f32.vlgmr.msrb.gmra.mxu2 %vm357_vm8, %v8969_v29  ;;  %v1989_v35 = vpop.permute.xlu0 %1988 }
0x115f   : > { %v908_v38 = vpop.permute.xlu1 %907  ;;  %v2329_v59 = vperm.slane %v1989_v35, %v8413_v31 }
0x1160   : > { %v910_v32 = vmul.f32 %v908_v38, %v8974_v48 }
0x1161   : > { %v2330_v54 = vsel %vm2251_vm0, %v2329_v59, %v2328_v22  ;;  %v2085_v21 = vpop.permute.xlu2 %2084  ;;  %v2373_v22 = vperm.slane %v2076_v1, %v7751_v2 }
0x1162   : > { %912 = vrot.lane.b32.xlu2 %v910_v32, %s7647_s20  ;;  %v2488_v23 = vsel %vm2470_vm7, %v2330_v54, %v8774_v20  ;;  %s6889_s20 = scalar_lea.sflag [#allocation4], %s284_s13 }
0x1166   : > { %7017 = vmatmul.msk.f32.gmra.mxu2 %vm357_vm8, %v8944_v25  ;;  %v2070_v6 = vpop.permute.xlu0 %2069 }
0x1167   : > { %v2007_v50 = vpop.permute.xlu1 %2006 }
0x1168   : > { %v2338_v14 = vperm.slane %v2007_v50, %v8413_v31 }
0x1169   : > { %v2094_v15 = vpop.permute.xlu2 %2093 }
0x116a   : > { %v2339_v46 = vsel %vm2251_vm0, %v2338_v14, %v2337_v36  ;;  %2123 = vperm.xlu2 %7455, %v1637_v4   ;;  %v2370_v4 = vperm.slane %v2070_v6, %v7751_v2  ;;  %v2377_v14 = vperm.slane %v2085_v21, %v8413_v31 }
0x116b   : > { %v8992_v53 = vsel %vm2460_vm2, %v2339_v46, %v2336_v37 }
0x116c   : > { %7006 = vmatpush.msk.msra.mxu3 %vm333_vm1, %v8992_v53  ;;  %7027 = vmatpush.msk.msra.mxu2 %vm333_vm1, %v8992_v53 }
0x116e   : > { %v2079_v26 = vpop.permute.xlu0 %2078 }
0x116f   : > { %v1992_v58 = vpop.permute.xlu1 %1991  ;;  %v2374_v10 = vperm.slane %v2079_v26, %v8413_v31 }
0x1170   : > { %v2331_v11 = vperm.slane %v1992_v58, %v7751_v2 }
0x1171   : > { %v2103_v19 = vpop.permute.xlu2 %2102 }
0x1172   : > { %v2333_v55 = vsel %vm2251_vm0, %v2332_v49, %v2331_v11  ;;  %2108 = vperm.xlu2 %7455, %v1632_v18   ;;  %v2375_v11 = vsel %vm2251_vm0, %v2374_v10, %v2373_v22  ;;  %v2386_v26 = vperm.slane %v2103_v19, %v8413_v31  ;;  %v2603_v10 = vpop.f32.mrf.mxu2 }
0x1173   : > { %v9007_v5 = vsel %vm2472_vm9, %v2333_v55, %v2488_v23 }
0x1174   : > { %2630 = vmatpush.msra.mxu3 %v9007_v5  ;;  %2861 = vmatpush.msra.mxu2 %v9007_v5 }
0x1175   : > { %7007 = vmatmul.msk.f32.vlgmr.msra.gmra.mxu3 %vm357_vm8, %v9007_v5 }
0x1176   : > { %v2088_v7 = vpop.permute.xlu0 %2087 }
0x1177   : > { %v2073_v61 = vpop.permute.xlu1 %2072  ;;  %v2379_v51 = vperm.slane %v2088_v7, %v7751_v2 }
0x1178   : > { %v2371_v33 = vperm.slane %v2073_v61, %v8413_v31 }
0x117a   : > { %v2372_v54 = vsel %vm2251_vm0, %v2371_v33, %v2370_v4  ;;  %v10273_v4 = vld [vmem:[#allocation42_spill] sm:$0xff] }
0x117b   : > { %v2499_v6 = vsel %vm2460_vm2, %v2375_v11, %v2372_v54 }
0x117d   : > { %7008 = vmatmul.msk.f32.gmra.mxu3 %vm357_vm8, %v8992_v53 }
0x117e   : > { %v2097_v52 = vpop.permute.xlu0 %2096 }
0x117f   : > { %v2082_v20 = vpop.permute.xlu1 %2081  ;;  %v2383_v1 = vperm.slane %v2097_v52, %v8413_v31 }
0x1180   : > { %v2376_v47 = vperm.slane %v2082_v20, %v7751_v2 }
0x1182   : > { %v2378_v58 = vsel %vm2251_vm0, %v2377_v14, %v2376_v47 }
0x1183   : > { %v2500_v21 = vsel %vm2462_vm3, %v2378_v58, %v2499_v6 }
0x1186   : > { %v2118_v44 = vpop.permute.xlu0 %2117 }
0x1187   : > { %v2091_v41 = vpop.permute.xlu1 %2090  ;;  %v2394_v37 = vperm.slane %v2118_v44, %v7751_v2 }
0x1188   : > { %v2380_v36 = vperm.slane %v2091_v41, %v8413_v31  ;;  %v2382_v41 = vperm.slane %v2094_v15, %v7751_v2 }
0x118a   : > { %v2381_v23 = vsel %vm2251_vm0, %v2380_v36, %v2379_v51  ;;  %v2384_v3 = vsel %vm2251_vm0, %v2383_v1, %v2382_v41  ;;  %v9079_v36 = vmul.f32 0.5, %v2603_v10 }
0x118b   : > { %v2501_v7 = vsel %vm2464_vm4, %v2381_v23, %v2500_v21 }
0x118c   : > { %v2502_v19 = vsel %vm2466_vm5, %v2384_v3, %v2501_v7  ;;  %v10274_v7 = vld [vmem:[#allocation8_spill] sm:$0xff] }
0x118e   : > { %v2127_v32 = vpop.permute.xlu0 %2126 }
0x118f   : > { %v2100_v45 = vpop.permute.xlu1 %2099  ;;  %v2398_v46 = vperm.slane %v2127_v32, %v8413_v31 }
0x1190   : > { %v2385_v55 = vperm.slane %v2100_v45, %v7751_v2 }
0x1196   : > { %v2112_v45 = vpop.permute.xlu0 %2111 }
0x1197   : > { %v2121_v56 = vpop.permute.xlu1 %2120 }
0x1198   : > { %v2395_v50 = vperm.slane %v2121_v56, %v8413_v31  ;;  %v2387_v56 = vsel %vm2251_vm0, %v2386_v26, %v2385_v55 }
0x1199   : > { %v2503_v15 = vsel %vm2468_vm6, %v2387_v56, %v2502_v19 }
0x119a   : > { %v2396_v18 = vsel %vm2251_vm0, %v2395_v50, %v2394_v37 }
0x119f   : > { %v2106_v38 = vpop.permute.xlu1 %2105 }
0x11a7   : > { %v2115_v20 = vpop.permute.xlu1 %2114 }
0x11a8   : > { %v2392_v52 = vperm.slane %v2115_v20, %v8413_v31 }
0x11bc   : > { %v913_v16 = vpop.permute.xlu2 %912 }
0x11bd   : > { %v915_v34 = vadd.f32 %v913_v16, %v905_v40  ;;  %v2388_v40 = vperm.slane %v2106_v38, %v7751_v2  ;;  %v10272_v38 = vld [vmem:[#allocation41_spill] sm:$0xff] }
0x11bf   : > { %7521 = vtanh.f32 %v915_v34  ;;  %v2391_v34 = vperm.slane %v2112_v45, %v7751_v2  ;;  %v2547_v45 = vadd.f32 %v8969_v29, %v10274_v7 }
0x11c1   : > { %v2393_v33 = vsel %vm2251_vm0, %v2392_v52, %v2391_v34 }
0x11c4   : > { %v2124_v39 = vpop.permute.xlu2 %2123 }
0x11c5   : > { %v7522_v35 = vpop.eup %7521  ;;  %v2397_v59 = vperm.slane %v2124_v39, %v7751_v2  ;;  %v2606_v39 = vpop.f32.mrf.mxu2 }
0x11c6   : > { %918 = vrot.lane.b32.xlu2 %v7522_v35, %s7648_s21  ;;  %v9086_v35 = vmul.f32 0.5, %v2606_v39  ;;  %s7588_s21 = sshra.s32 %s6902_s19, 4  ;;  %s7589_s21 = int_to_ptr.hbm [resolvable:$true] %s7588_s21 }
0x11c7   : > { %v2399_v49 = vsel %vm2251_vm0, %v2398_v46, %v2397_v59  ;;  %p7595_p3 = scmp.lt.s32.totalorder %s7589_s21, %s10170_s7 }
0x11c8   : > { %v9038_v61 = vsel %vm2460_vm2, %v2399_v49, %v2396_v18  ;;  %v1451_v49 = vrot.slane %v8697_v28, 7 }
0x11c9   : > { %7012 = vmatpush.msk.msrb.mxu1 %vm333_vm1, %v9038_v61  ;;  %7033 = vmatpush.msk.msrb.mxu0 %vm333_vm1, %v9038_v61 }
0x11cc   : > { %v2109_v44 = vpop.permute.xlu2 %2108 }
0x11cd   : > { %v2389_v16 = vperm.slane %v2109_v44, %v8413_v31 }
0x11cf   : > { %v2390_v32 = vsel %vm2251_vm0, %v2389_v16, %v2388_v40  ;;  %v10275_v40 = vld [vmem:[#allocation9_spill] sm:$0xff] }
0x11d0   : > { %v2504_v47 = vsel %vm2470_vm7, %v2390_v32, %v2503_v15  ;;  %v2548_v16 = vadd.f32 %v8944_v25, %v10275_v40 }
0x11d1   : > { %v9062_v50 = vsel %vm2472_vm9, %v2393_v33, %v2504_v47  ;;  %v2541_v33 = vadd.f32 %v9007_v5, %v10274_v7 }
0x11d2   : > { %2688 = vmatpush.msrb.mxu1 %v9062_v50  ;;  %2919 = vmatpush.msrb.mxu0 %v9062_v50 }
0x11d3   : > { %7013 = vmatmul.msk.f32.vlgmr.msrb.gmra.mxu1 %vm357_vm8, %v9062_v50 }
0x11d4   : > { %7045 = vmatpush.msk.msra.mxu0 %vm333_vm1, %v10272_v38  ;;  %7024 = vmatpush.msk.msra.mxu1 %vm333_vm1, %v10272_v38 }
0x11d6   : > { %3063 = vmatpush.msra.mxu0 %v10273_v4  ;;  %2832 = vmatpush.msra.mxu1 %v10273_v4 }
0x11d8   : > { %7036 = vmatpush.msk.msrb.mxu1 %vm333_vm1, %v8944_v25 }
0x11da   : > { %2948 = vmatpush.msrb.mxu1 %v8969_v29 }
0x11db   : > { %7014 = vmatmul.msk.f32.gmra.mxu1 %vm357_vm8, %v9038_v61 }
0x11e1   : > { %v2719_v14 = vpop.f32.mrf.mxu2 }
0x11e2   : > { %v2764_v37 = vmul.f32 0.5, %v2719_v14 }
0x11e3   : > { %7025 = vmatmul.msk.f32.vlgmr.msra.gmra.mxu1 %vm357_vm8, %v9079_v36 }
0x11e4   : > { %7048 = vmatpush.msk.msra.mxu1 %vm333_vm1, %v8992_v53  ;;  %v2778_v52 = vadd.f32 %v2764_v37, %v2547_v45 }
0x11e6   : > { %3092 = vmatpush.msra.mxu1 %v9007_v5 }
0x11e9   : > { %v2722_v46 = vpop.f32.mrf.mxu2 }
0x11ea   : > { %v2765_v22 = vmul.f32 0.5, %v2722_v46 }
0x11eb   : > { %7026 = vmatmul.msk.f32.gmra.mxu1 %vm357_vm8, %v9086_v35 }
0x11ec   : > { %v2779_v34 = vadd.f32 %v2765_v22, %v2548_v16 }
0x11f3   : > { %7037 = vmatmul.msk.f32.vlgmr.msrb.gmra.mxu1 %vm357_vm8, %v2764_v37 }
0x11f8   : > { %v2632_v59 = vpop.f32.mrf.mxu3 }
0x11f9   : > { %v2758_v51 = vmul.f32 0.5, %v2632_v59 }
0x11fb   : > { %7028 = vmatmul.msk.f32.vlgmr.msra.gmra.mxu2 %vm357_vm8, %v2758_v51  ;;  %7038 = vmatmul.msk.f32.gmra.mxu1 %vm357_vm8, %v2765_v22  ;;  %v2772_v10 = vadd.f32 %v2758_v51, %v2541_v33  ;;  %v10276_v33 = vld [vmem:[#allocation24_spill] sm:$0xff] }
0x1200   : > { %v2635_v54 = vpop.f32.mrf.mxu3 }
0x1201   : > { %v2759_v58 = vmul.f32 0.5, %v2635_v54 }
0x1203   : > { %7029 = vmatmul.msk.f32.gmra.mxu2 %vm357_vm8, %v2759_v58 }
0x1220   : > { %v919_v18 = vpop.permute.xlu2 %918 }
0x1221   : > { %v921_v11 = vmul.f32 %v919_v18, %v8974_v48 }
0x1223   : > { %v1453_v23 = vsub.f32 %v921_v11, %v1451_v49  ;;  %v2542_v49 = vadd.f32 %v8992_v53, %v10275_v40 }
0x1225   : > { %v1454_v55 = vperm.slane %v1453_v23, 7 }
0x1227   : > { %1456 = vrot.lane.b32.xlu2 %v1454_v55, %s7649_s22  ;;  %s7590_s22 = scalar_lea.hbm %s7589_s21, 1 }
0x1228   : > { %p7591_p0 = scmp.ne.s32.totalorder %s7589_s21, %s7590_s22  ;;  %p7596_p4 = scmp.lt.s32.totalorder %s7594_s29, %s7590_s22 }
0x122a   : > { %p7592_p1 = pnand %p7591_p0, %p7729_p5  ;;  %p7597_p7 = por %p7596_p4, %p7595_p3 }
0x122c   : > { %p7593_p2 = pneg %p7592_p1 }
0x122e   : > { %p7598_p8 = pnand %p7597_p7, %p7593_p2 }
0x1250   : > { %v2690_v6 = vpop.f32.mrf.mxu1 }
0x1251   : > { %v9097_v1 = vmul.f32 0.5, %v2690_v6 }
0x1253   : > { %7034 = vmatmul.msk.f32.vlgmr.msrb.gmra.mxu0 %vm357_vm8, %v9097_v1 }
0x1254   : > { %7057 = vmatpush.msk.msrb.mxu0 %vm333_vm1, %v8944_v25 }
0x1256   : > { %3179 = vmatpush.msrb.mxu0 %v8969_v29 }
0x1258   : > { %v2693_v20 = vpop.f32.mrf.mxu1 }
0x1259   : > { %v9104_v26 = vmul.f32 0.5, %v2693_v20 }
0x125b   : > { %7035 = vmatmul.msk.f32.gmra.mxu0 %vm357_vm8, %v9104_v26 }
0x1260   : > { %v2834_v28 = vpop.f32.mrf.mxu1 }
0x1261   : > { %v9108_v48 = vmul.f32 0.33333334, %v2834_v28 }
0x1263   : > { %7046 = vmatmul.msk.f32.vlgmr.msra.gmra.mxu0 %vm357_vm8, %v9108_v48 }
0x1264   : > { %7069 = vmatpush.msk.msra.mxu0 %vm333_vm1, %v8992_v53 }
0x1266   : > { %3323 = vmatpush.msra.mxu0 %v9007_v5 }
0x1268   : > { %v2837_v21 = vpop.f32.mrf.mxu1 }
0x1269   : > { %v9115_v41 = vmul.f32 0.33333334, %v2837_v21 }
0x126b   : > { %7047 = vmatmul.msk.f32.gmra.mxu0 %vm357_vm8, %v9115_v41 }
0x1270   : > { %v2950_v56 = vpop.f32.mrf.mxu1 }
0x1271   : > { %v2995_v44 = vmul.f32 0.33333334, %v2950_v56 }
0x1273   : > { %v9121_v3 = vadd.f32 %v2995_v44, %v2778_v52  ;;  %7058 = vmatmul.msk.f32.vlgmr.msrb.gmra.mxu0 %vm357_vm8, %v2995_v44 }
0x1278   : > { %v2953_v19 = vpop.f32.mrf.mxu1 }
0x1279   : > { %v2996_v15 = vmul.f32 0.33333334, %v2953_v19 }
0x127b   : > { %v9126_v32 = vadd.f32 %v2996_v15, %v2779_v34  ;;  %7059 = vmatmul.msk.f32.gmra.mxu0 %vm357_vm8, %v2996_v15 }
0x127e   : > { %v2863_v47 = vpop.f32.mrf.mxu2 }
0x127f   : > { %v2989_v39 = vmul.f32 0.33333334, %v2863_v47 }
0x1281   : > { %v9131_v14 = vadd.f32 %v2989_v39, %v2772_v10  ;;  %v9133_v37 = vpop.permute.xlu2 %1456  ;;  %7049 = vmatmul.msk.f32.vlgmr.msra.gmra.mxu1 %vm357_vm8, %v2989_v39 }
0x1282   : > { %v1461_v46 = vmul.f32 %v8786_v27, %v9133_v37  ;;  %v1460_v59 = vmul.f32 %v8790_v63, %v9133_v37  ;;  %v1459_v22 = vmul.f32 %v8794_v9, %v9133_v37  ;;  %v2773_v27 = vadd.f32 %v2759_v58, %v2542_v49 }
0x1283   : > { %v1464_v63 = vmul.f32 %v8828_v12, %v9133_v37  ;;  %v1463_v9 = vmul.f32 %v8803_v8, %v9133_v37  ;;  %v1462_v6 = vmul.f32 %v8811_v42, %v9133_v37  ;;  %v1467_v12 = vmul.f32 %v8824_v0, %v9133_v37 }
0x1284   : > { %v1485_v54 = vsel %vm357_vm8, %v1461_v46, 0.0  ;;  %v1482_v51 = vsel %vm953_vm11, %v1460_v59, 0.0  ;;  %v1479_v18 = vsel %vm357_vm8, %v1459_v22, 0.0  ;;  %v1466_v8 = vmul.f32 %v8807_v60, %v9133_v37  ;;  %v10279_v22 = vld [vmem:[#allocation16_spill] sm:$0xff] }
0x1285   : > { %1486 = vadd.xlane.f32.xlu2 %v1485_v54  ;;  %1483 = vadd.xlane.f32.xlu1 %v1482_v51  ;;  %v1494_v20 = vsel %vm953_vm11, %v1464_v63, 0.0  ;;  %v1491_v28 = vsel %vm357_vm8, %v1463_v9, 0.0  ;;  %v1488_v58 = vsel %vm953_vm11, %v1462_v6, 0.0  ;;  %v1465_v21 = vmul.f32 %v8843_v30, %v9133_v37  ;;  %v10280_v51 = vld [vmem:[#allocation23_spill] sm:$0xff] }
0x1286   : > { %1480 = vadd.xlane.f32.xlu0 %v1479_v18  ;;  %v2866_v11 = vpop.f32.mrf.mxu2  ;;  %v1503_v42 = vsel %vm357_vm8, %v1467_v12, 0.0  ;;  %v1500_v45 = vsel %vm953_vm11, %v1466_v8, 0.0  ;;  %v1470_v52 = vmul.f32 %v8858_v43, %v9133_v37  ;;  %v1469_v0 = vmul.f32 %v8835_v57, %v9133_v37 }
0x1287   : > { %v2990_v23 = vmul.f32 0.33333334, %v2866_v11  ;;  %v1497_v56 = vsel %vm357_vm8, %v1465_v21, 0.0  ;;  %v1468_v60 = vmul.f32 %v8820_v24, %v9133_v37  ;;  %v1477_v19 = vmul.f32 %v8873_v62, %v9133_v37  ;;  %v10277_v62 = vld [vmem:[#allocation14_spill] sm:$0xff] }
0x1288   : > { %v1512_v30 = vsel %vm953_vm11, %v1470_v52, 0.0  ;;  %v1509_v44 = vsel %vm357_vm8, %v1469_v0, 0.0  ;;  %v1476_v43 = vmul.f32 %v8850_v13, %v9133_v37  ;;  %v1475_v57 = vmul.f32 %v8839_v17, %v9133_v37  ;;  %v10278_v13 = vld [vmem:[#allocation22_spill] sm:$0xff] }
0x1289   : > { %v9151_v55 = vadd.f32 %v2990_v23, %v2773_v27  ;;  %7050 = vmatmul.msk.f32.gmra.mxu1 %vm357_vm8, %v2990_v23  ;;  %v1506_v16 = vsel %vm953_vm11, %v1468_v60, 0.0  ;;  %v1533_v24 = vsel %vm357_vm8, %v1477_v19, 0.0  ;;  %v1472_v47 = vmul.f32 %v10276_v33, %v9133_v37 }
0x128a   : > { %v1530_v34 = vsel %vm953_vm11, %v1476_v43, 0.0  ;;  %v1527_v15 = vsel %vm357_vm8, %v1475_v57, 0.0  ;;  %v1471_v10 = vmul.f32 %v10277_v62, %v9133_v37  ;;  %v1478_v39 = vmul.f32 %v10278_v13, %v9133_v37 }
0x128b   : > { %v1518_v17 = vsel %vm953_vm11, %v1472_v47, 0.0  ;;  %v1474_v54 = vmul.f32 %v10279_v22, %v9133_v37  ;;  %v1473_v18 = vmul.f32 %v10280_v51, %v9133_v37 }
0x128c   : > { %v1515_v46 = vsel %vm357_vm8, %v1471_v10, 0.0  ;;  %v1536_v59 = vsel %vm953_vm11, %v1478_v39, 0.0 }
0x128d   : > { %1495 = vadd.xlane.f32.xlu2 %v1494_v20  ;;  %1492 = vadd.xlane.f32.xlu1 %v1491_v28  ;;  %v1524_v49 = vsel %vm953_vm11, %v1474_v54, 0.0  ;;  %v1521_v11 = vsel %vm357_vm8, %v1473_v18, 0.0  ;;  %vm6615_vm11 = vcmask 1045504  }
0x128e   : > { %1489 = vadd.xlane.f32.xlu0 %v1488_v58 }
0x1295   : > { %1504 = vadd.xlane.f32.xlu2 %v1503_v42  ;;  %1501 = vadd.xlane.f32.xlu1 %v1500_v45 }
0x1296   : > { %1498 = vadd.xlane.f32.xlu0 %v1497_v56 }
0x129d   : > { %1513 = vadd.xlane.f32.xlu2 %v1512_v30  ;;  %1510 = vadd.xlane.f32.xlu1 %v1509_v44 }
0x129e   : > { %1507 = vadd.xlane.f32.xlu0 %v1506_v16 }
0x12a5   : > { %1534 = vadd.xlane.f32.xlu2 %v1533_v24  ;;  %1531 = vadd.xlane.f32.xlu1 %v1530_v34 }
0x12a6   : > { %1528 = vadd.xlane.f32.xlu0 %v1527_v15 }
0x12ad   : > { %1519 = vadd.xlane.f32.xlu2 %v1518_v17  ;;  %1516 = vadd.xlane.f32.xlu1 %v1515_v46 }
0x12ae   : > { %1537 = vadd.xlane.f32.xlu0 %v1536_v59 }
0x12b5   : > { %1525 = vadd.xlane.f32.xlu1 %v1524_v49 }
0x12b6   : > { %1522 = vadd.xlane.f32.xlu0 %v1521_v11 }
0x12f8   : > { %v1487_v27 = vpop.xlane.xlu2 %1486  ;;  %v1484_v9 = vpop.xlane.xlu1 %1483 }
0x12f9   : > { %v1661_v23 = vmul.f32 0.015625, %v1487_v27  ;;  %v1481_v63 = vpop.xlane.xlu0 %1480  ;;  %v1660_v20 = vmul.f32 0.015625, %v1484_v9 }
0x12fa   : > { %v1659_v6 = vmul.f32 0.015625, %v1481_v63 }
0x12fb   : > { %2195 = vperm.xlu1 %7457, %v1661_v23   ;;  %2192 = vperm.xlu0 %7456, %v1660_v20  }
0x12fc   : > { %2189 = vperm.xlu2 %7455, %v1659_v6  }
0x12fe   : > { %v3094_v28 = vpop.f32.mrf.mxu1 }
0x12ff   : > { %v3220_v58 = vmul.f32 0.25, %v3094_v28 }
0x1300   : > { %v1496_v12 = vpop.xlane.xlu2 %1495  ;;  %v1493_v42 = vpop.xlane.xlu1 %1492 }
0x1301   : > { %v9202_v37 = vadd.f32 %v3220_v58, %v9131_v14  ;;  %v1664_v8 = vmul.f32 0.015625, %v1496_v12  ;;  %v1490_v21 = vpop.xlane.xlu0 %1489  ;;  %7070 = vmatmul.msk.f32.vlgmr.msra.gmra.mxu0 %vm357_vm8, %v3220_v58  ;;  %v1663_v56 = vmul.f32 0.015625, %v1493_v42 }
0x1302   : > { %v1662_v45 = vmul.f32 0.015625, %v1490_v21 }
0x1303   : > { %2204 = vperm.xlu1 %7457, %v1664_v8  }
0x1304   : > { %2198 = vperm.xlu0 %7456, %v1662_v45   ;;  %2201 = vperm.xlu2 %7455, %v1663_v56  }
0x1306   : > { %v3097_v52 = vpop.f32.mrf.mxu1 }
0x1307   : > { %v3221_v0 = vmul.f32 0.25, %v3097_v52 }
0x1308   : > { %v1505_v60 = vpop.xlane.xlu2 %1504  ;;  %v1502_v14 = vpop.xlane.xlu1 %1501 }
0x1309   : > { %v9206_v30 = vadd.f32 %v3221_v0, %v9151_v55  ;;  %v1667_v44 = vmul.f32 0.015625, %v1505_v60  ;;  %v1499_v16 = vpop.xlane.xlu0 %1498  ;;  %7071 = vmatmul.msk.f32.gmra.mxu0 %vm357_vm8, %v3221_v0  ;;  %v1666_v43 = vmul.f32 0.015625, %v1502_v14 }
0x130a   : > { %v1665_v19 = vmul.f32 0.015625, %v1499_v16 }
0x130b   : > { %2213 = vperm.xlu1 %7457, %v1667_v44  }
0x130c   : > { %2207 = vperm.xlu0 %7456, %v1665_v19   ;;  %2210 = vperm.xlu2 %7455, %v1666_v43  }
0x1310   : > { %v1514_v57 = vpop.xlane.xlu2 %1513  ;;  %v1511_v15 = vpop.xlane.xlu1 %1510 }
0x1311   : > { %v1670_v24 = vmul.f32 0.015625, %v1514_v57  ;;  %v1508_v34 = vpop.xlane.xlu0 %1507  ;;  %v1669_v47 = vmul.f32 0.015625, %v1511_v15 }
0x1312   : > { %v1668_v33 = vmul.f32 0.015625, %v1508_v34 }
0x1313   : > { %2222 = vperm.xlu1 %7457, %v1670_v24  }
0x1314   : > { %2216 = vperm.xlu0 %7456, %v1668_v33   ;;  %2219 = vperm.xlu2 %7455, %v1669_v47  }
0x1318   : > { %v1535_v55 = vpop.xlane.xlu2 %1534  ;;  %v1532_v13 = vpop.xlane.xlu1 %1531 }
0x1319   : > { %v1677_v62 = vmul.f32 0.015625, %v1535_v55  ;;  %v1529_v10 = vpop.xlane.xlu0 %1528  ;;  %v1676_v17 = vmul.f32 0.015625, %v1532_v13 }
0x131a   : > { %v1675_v39 = vmul.f32 0.015625, %v1529_v10 }
0x131b   : > { %2243 = vperm.xlu1 %7457, %v1677_v62  }
0x131c   : > { %2237 = vperm.xlu0 %7456, %v1675_v39   ;;  %2240 = vperm.xlu2 %7455, %v1676_v17  }
0x1320   : > { %v1520_v46 = vpop.xlane.xlu2 %1519  ;;  %v1517_v54 = vpop.xlane.xlu1 %1516 }
0x1321   : > { %v1672_v59 = vmul.f32 0.015625, %v1520_v46  ;;  %v1538_v22 = vpop.xlane.xlu0 %1537  ;;  %v1671_v18 = vmul.f32 0.015625, %v1517_v54 }
0x1322   : > { %v1678_v51 = vmul.f32 0.015625, %v1538_v22 }
0x1323   : > { %2228 = vperm.xlu1 %7457, %v1672_v59  }
0x1324   : > { %2246 = vperm.xlu0 %7456, %v1678_v51   ;;  %2225 = vperm.xlu2 %7455, %v1671_v18  }
0x1328   : > { %v1526_v11 = vpop.xlane.xlu1 %1525 }
0x1329   : > { %v1523_v49 = vpop.xlane.xlu0 %1522  ;;  %v1674_v23 = vmul.f32 0.015625, %v1526_v11 }
0x132a   : > { %v1673_v27 = vmul.f32 0.015625, %v1523_v49 }
0x132c   : > { %2231 = vperm.xlu0 %7456, %v1673_v27   ;;  %2234 = vperm.xlu2 %7455, %v1674_v23  }
0x1356   : > { %v2190_v63 = vpop.permute.xlu2 %2189 }
0x1357   : > { %v2430_v57 = vperm.slane %v2190_v63, %v7751_v2 }
0x135e   : > { %v2202_v9 = vpop.permute.xlu2 %2201 }
0x135f   : > { %v2436_v33 = vperm.slane %v2202_v9, %v7751_v2 }
0x1366   : > { %v2211_v28 = vpop.permute.xlu2 %2210 }
0x1367   : > { %v2440_v47 = vperm.slane %v2211_v28, %v8413_v31 }
0x136d   : > { %v2196_v6 = vpop.permute.xlu1 %2195  ;;  %v2193_v20 = vpop.permute.xlu0 %2192 }
0x136e   : > { %v2220_v21 = vpop.permute.xlu2 %2219  ;;  %v2431_v14 = vperm.slane %v2193_v20, %v8413_v31  ;;  %v2433_v19 = vperm.slane %v2196_v6, %v7751_v2 }
0x136f   : > { %v2445_v9 = vperm.slane %v2220_v21, %v7751_v2  ;;  %v2661_v21 = vpop.f32.mrf.mxu0 }
0x1370   : > { %v2432_v10 = vsel %vm2251_vm0, %v2431_v14, %v2430_v57 }
0x1375   : > { %v2205_v58 = vpop.permute.xlu1 %2204 }
0x1376   : > { %v2199_v12 = vpop.permute.xlu0 %2198  ;;  %v2241_v52 = vpop.permute.xlu2 %2240  ;;  %v2437_v43 = vperm.slane %v2205_v58, %v8413_v31 }
0x1377   : > { %v2434_v44 = vperm.slane %v2199_v12, %v8413_v31  ;;  %v2455_v13 = vperm.slane %v2241_v52, %v8413_v31  ;;  %v2664_v14 = vpop.f32.mrf.mxu0 }
0x1378   : > { %v2438_v22 = vsel %vm2251_vm0, %v2437_v43, %v2436_v33  ;;  %v10284_v43 = vld [vmem:[#allocation11_spill] sm:$0xff] }
0x1379   : > { %v2435_v24 = vsel %vm2251_vm0, %v2434_v44, %v2433_v19  ;;  %v10283_v19 = vld [vmem:[#allocation10_spill] sm:$0xff] }
0x137a   : > { %v2515_v59 = vsel %vm2460_vm2, %v2435_v24, %v2432_v10  ;;  %v9282_v24 = vmul.f32 0.5, %v2661_v21 }
0x137b   : > { %v2516_v6 = vsel %vm2462_vm3, %v2438_v22, %v2515_v59 }
0x137d   : > { %v2214_v8 = vpop.permute.xlu1 %2213 }
0x137e   : > { %v2208_v42 = vpop.permute.xlu0 %2207  ;;  %v2226_v16 = vpop.permute.xlu2 %2225  ;;  %v2442_v54 = vperm.slane %v2214_v8, %v7751_v2 }
0x137f   : > { %v2439_v34 = vperm.slane %v2208_v42, %v7751_v2  ;;  %v2448_v28 = vperm.slane %v2226_v16, %v7751_v2  ;;  %v2805_v57 = vpop.f32.mrf.mxu0 }
0x1380   : > { %v9293_v33 = vmul.f32 0.33333334, %v2805_v57 }
0x1381   : > { %v2441_v51 = vsel %vm2251_vm0, %v2440_v47, %v2439_v34  ;;  %v9289_v34 = vmul.f32 0.5, %v2664_v14 }
0x1382   : > { %v2517_v20 = vsel %vm2464_vm4, %v2441_v51, %v2516_v6 }
0x1385   : > { %v2223_v45 = vpop.permute.xlu1 %2222 }
0x1386   : > { %v2217_v56 = vpop.permute.xlu0 %2216  ;;  %v2446_v18 = vperm.slane %v2223_v45, %v8413_v31  ;;  %v2235_v58 = vpop.permute.xlu2 %2234 }
0x1387   : > { %v2443_v55 = vperm.slane %v2217_v56, %v8413_v31  ;;  %v2452_v56 = vperm.slane %v2235_v58, %v8413_v31 }
0x1388   : > { %v2447_v8 = vsel %vm2251_vm0, %v2446_v18, %v2445_v9 }
0x1389   : > { %v2444_v27 = vsel %vm2251_vm0, %v2443_v55, %v2442_v54 }
0x138a   : > { %v2518_v12 = vsel %vm2466_vm5, %v2444_v27, %v2517_v20 }
0x138d   : > { %v2244_v0 = vpop.permute.xlu1 %2243 }
0x138e   : > { %v2238_v60 = vpop.permute.xlu0 %2237  ;;  %v2457_v39 = vperm.slane %v2244_v0, %v7751_v2  ;;  %v2519_v0 = vsel %vm2468_vm6, %v2447_v8, %v2518_v12 }
0x138f   : > { %v2454_v15 = vperm.slane %v2238_v60, %v7751_v2 }
0x1391   : > { %v2456_v49 = vsel %vm2251_vm0, %v2455_v13, %v2454_v15  ;;  %v2808_v15 = vpop.f32.mrf.mxu0 }
0x1392   : > { %v9300_v55 = vmul.f32 0.33333334, %v2808_v15 }
0x1395   : > { %v2229_v46 = vpop.permute.xlu1 %2228 }
0x1396   : > { %v2247_v62 = vpop.permute.xlu0 %2246  ;;  %v2449_v63 = vperm.slane %v2229_v46, %v8413_v31 }
0x1397   : > { %v2458_v17 = vperm.slane %v2247_v62, %v8413_v31  ;;  %v10282_v31 = vld [vmem:[#allocation12_spill] sm:$0xff] }
0x1398   : > { %v2450_v42 = vsel %vm2251_vm0, %v2449_v63, %v2448_v28 }
0x1399   : > { %v2459_v11 = vsel %vm2251_vm0, %v2458_v17, %v2457_v39  ;;  %v2520_v60 = vsel %vm2470_vm7, %v2450_v42, %v2519_v0  ;;  %v2921_v47 = vpop.f32.mrf.mxu0  ;;  %v2545_v0 = vadd.f32 %v9062_v50, %v10274_v7 }
0x139a   : > { %v9233_v23 = vsel %vm2460_vm2, %v2459_v11, %v2456_v49  ;;  %v2993_v10 = vmul.f32 0.33333334, %v2921_v47  ;;  %v2546_v47 = vadd.f32 %v9038_v61, %v10275_v40 }
0x139b   : > { %7018 = vmatpush.msk.msrb.mxu3 %vm333_vm1, %v9233_v23  ;;  %7039 = vmatpush.msk.msrb.mxu2 %vm333_vm1, %v9233_v23 }
0x139c   : > { %7060 = vmatpush.msk.msrb.mxu1 %vm333_vm1, %v9233_v23  ;;  %7081 = vmatpush.msk.msrb.mxu0 %vm333_vm1, %v9233_v23 }
0x139e   : > { %v2232_v45 = vpop.permute.xlu0 %2231 }
0x139f   : > { %v2451_v52 = vperm.slane %v2232_v45, %v7751_v2  ;;  %v10281_v2 = vld [vmem:[#allocation20_spill] sm:$0xff] }
0x13a1   : > { %v2453_v44 = vsel %vm2251_vm0, %v2452_v56, %v2451_v52  ;;  %v2924_v62 = vpop.f32.mrf.mxu0  ;;  %vm6647_vm0 = vcmask 1043456  }
0x13a2   : > { %v9257_v16 = vsel %vm2472_vm9, %v2453_v44, %v2520_v60  ;;  %v2994_v39 = vmul.f32 0.33333334, %v2924_v62  ;;  %v2776_v60 = vadd.f32 %v9097_v1, %v2545_v0  ;;  %v2777_v62 = vadd.f32 %v9104_v26, %v2546_v47 }
0x13a3   : > { %2746 = vmatpush.msrb.mxu3 %v9257_v16  ;;  %2977 = vmatpush.msrb.mxu2 %v9257_v16  ;;  %v2540_v26 = vadd.f32 %v10272_v38, %v10275_v40 }
0x13a4   : > { %3208 = vmatpush.msrb.mxu1 %v9257_v16  ;;  %3439 = vmatpush.msrb.mxu0 %v9257_v16  ;;  %v3007_v14 = vadd.f32 %v2993_v10, %v2776_v60 }
0x13a5   : > { %7019 = vmatmul.msk.f32.vlgmr.msrb.gmra.mxu3 %vm357_vm8, %v9257_v16  ;;  %7051 = vmatpush.msk.msra.mxu2 %vm333_vm1, %v10281_v2 }
0x13a6   : > { %7030 = vmatpush.msk.msra.mxu3 %vm333_vm1, %v10281_v2  ;;  %7072 = vmatpush.msk.msra.mxu1 %vm333_vm1, %v10281_v2 }
0x13a7   : > { %7093 = vmatpush.msk.msra.mxu0 %vm333_vm1, %v10281_v2  ;;  %3121 = vmatpush.msra.mxu2 %v10282_v31 }
0x13a8   : > { %2890 = vmatpush.msra.mxu3 %v10282_v31  ;;  %3352 = vmatpush.msra.mxu1 %v10282_v31 }
0x13a9   : > { %3583 = vmatpush.msra.mxu0 %v10282_v31  ;;  %v3065_v13 = vpop.f32.mrf.mxu0 }
0x13aa   : > { %7042 = vmatpush.msk.msrb.mxu3 %vm333_vm1, %v10283_v19  ;;  %v9309_v46 = vmul.f32 0.25, %v3065_v13 }
0x13ac   : > { %3034 = vmatpush.msrb.mxu3 %v10284_v43 }
0x13ad   : > { %7020 = vmatmul.msk.f32.gmra.mxu3 %vm357_vm8, %v9233_v23 }
0x13b1   : > { %v3068_v17 = vpop.f32.mrf.mxu0 }
0x13b2   : > { %v9316_v59 = vmul.f32 0.25, %v3068_v17  ;;  %v3008_v17 = vadd.f32 %v2994_v39, %v2777_v62 }
0x13b5   : > { %7031 = vmatmul.msk.f32.vlgmr.msra.gmra.mxu3 %vm357_vm8, %v9282_v24 }
0x13b6   : > { %7054 = vmatpush.msk.msra.mxu3 %vm333_vm1, %v9038_v61 }
0x13b8   : > { %3150 = vmatpush.msra.mxu3 %v9062_v50 }
0x13b9   : > { %v3181_v22 = vpop.f32.mrf.mxu0 }
0x13ba   : > { %v9320_v54 = vmul.f32 0.25, %v3181_v22 }
0x13bc   : > { %v3240_v0 = vadd.f32 %v9320_v54, %v9121_v3 }
0x13bd   : > { %7032 = vmatmul.msk.f32.gmra.mxu3 %vm357_vm8, %v9289_v34 }
0x13c1   : > { %v3184_v51 = vpop.f32.mrf.mxu0 }
0x13c2   : > { %v9327_v18 = vmul.f32 0.25, %v3184_v51 }
0x13c5   : > { %7043 = vmatmul.msk.f32.vlgmr.msrb.gmra.mxu3 %vm357_vm8, %v9293_v33 }
0x13c6   : > { %7066 = vmatpush.msk.msrb.mxu3 %vm333_vm1, %v10272_v38 }
0x13c8   : > { %3294 = vmatpush.msrb.mxu3 %v10273_v4 }
0x13c9   : > { %v3325_v49 = vpop.f32.mrf.mxu0 }
0x13ca   : > { %v9331_v11 = vmul.f32 0.2, %v3325_v49 }
0x13cd   : > { %7044 = vmatmul.msk.f32.gmra.mxu3 %vm357_vm8, %v9300_v55 }
0x13d1   : > { %v3328_v27 = vpop.f32.mrf.mxu0 }
0x13d2   : > { %v9338_v63 = vmul.f32 0.2, %v3328_v27 }
0x13d5   : > { %7055 = vmatmul.msk.f32.vlgmr.msra.gmra.mxu3 %vm357_vm8, %v2993_v10  ;;  %v2539_v10 = vadd.f32 %v10273_v4, %v10274_v7 }
0x13d6   : > { %7078 = vmatpush.msk.msra.mxu3 %vm333_vm1, %v8944_v25 }
0x13d7   : > { %v2770_v51 = vadd.f32 %v9079_v36, %v2539_v10 }
0x13d8   : > { %3410 = vmatpush.msra.mxu3 %v8969_v29 }
0x13d9   : > { %v3001_v49 = vadd.f32 %v9108_v48, %v2770_v51 }
0x13dd   : > { %7056 = vmatmul.msk.f32.gmra.mxu3 %vm357_vm8, %v2994_v39 }
0x13e5   : > { %7067 = vmatmul.msk.f32.vlgmr.msrb.gmra.mxu3 %vm357_vm8, %v9309_v46 }
0x13e6   : > { %7090 = vmatpush.msk.msrb.mxu3 %vm333_vm1, %v8992_v53 }
0x13e8   : > { %3554 = vmatpush.msrb.mxu3 %v9007_v5 }
0x13ed   : > { %7068 = vmatmul.msk.f32.gmra.mxu3 %vm357_vm8, %v9316_v59 }
0x13f5   : > { %7079 = vmatmul.msk.f32.vlgmr.msra.gmra.mxu3 %vm357_vm8, %v9320_v54  ;;  %v3465_v54 = vadd.f32 %v9331_v11, %v9202_v37  ;;  %v2549_v37 = vadd.f32 %v9257_v16, %v10274_v7 }
0x13f6   : > { %7102 = vmatpush.msk.msra.mxu3 %vm333_vm1, %v9233_v23 }
0x13f8   : > { %3670 = vmatpush.msra.mxu3 %v9257_v16 }
0x13fd   : > { %7080 = vmatmul.msk.f32.gmra.mxu3 %vm357_vm8, %v9327_v18 }
0x1405   : > { %7091 = vmatmul.msk.f32.vlgmr.msrb.gmra.mxu3 %vm357_vm8, %v9331_v11 }
0x1406   : > { %7114 = vmatpush.msk.msrb.mxu3 %vm333_vm1, %v10281_v2 }
0x1408   : > { %3814 = vmatpush.msrb.mxu3 %v10282_v31 }
0x140d   : > { %7092 = vmatmul.msk.f32.gmra.mxu3 %vm357_vm8, %v9338_v63 }
0x1428   : > { %v2748_v9 = vpop.f32.mrf.mxu3 }
0x1429   : > { %v9342_v6 = vmul.f32 0.5, %v2748_v9  ;;  %v3232_v9 = vadd.f32 %v9309_v46, %v3001_v49 }
0x142b   : > { %7040 = vmatmul.msk.f32.vlgmr.msrb.gmra.mxu2 %vm357_vm8, %v9342_v6 }
0x142c   : > { %7063 = vmatpush.msk.msrb.mxu2 %vm333_vm1, %v10283_v19 }
0x142e   : > { %3265 = vmatpush.msrb.mxu2 %v10284_v43 }
0x1430   : > { %v2751_v20 = vpop.f32.mrf.mxu3 }
0x1431   : > { %v9349_v28 = vmul.f32 0.5, %v2751_v20 }
0x1433   : > { %7041 = vmatmul.msk.f32.gmra.mxu2 %vm357_vm8, %v9349_v28 }
0x1438   : > { %v2892_v58 = vpop.f32.mrf.mxu3 }
0x1439   : > { %v9353_v12 = vmul.f32 0.33333334, %v2892_v58  ;;  %v2771_v58 = vadd.f32 %v9086_v35, %v2540_v26 }
0x143b   : > { %7052 = vmatmul.msk.f32.vlgmr.msra.gmra.mxu2 %vm357_vm8, %v9353_v12  ;;  %v3002_v36 = vadd.f32 %v9115_v41, %v2771_v58  ;;  %v3241_v41 = vadd.f32 %v9327_v18, %v9126_v32  ;;  %v3466_v18 = vadd.f32 %v9338_v63, %v9206_v30  ;;  %v2550_v30 = vadd.f32 %v9233_v23, %v10275_v40 }
0x143c   : > { %7075 = vmatpush.msk.msra.mxu2 %vm333_vm1, %v9038_v61 }
0x143d   : > { %v3233_v46 = vadd.f32 %v9316_v59, %v3002_v36  ;;  %v2781_v51 = vadd.f32 %v9349_v28, %v2550_v30  ;;  %v2544_v28 = vadd.f32 %v10281_v2, %v10275_v40 }
0x143e   : > { %3381 = vmatpush.msra.mxu2 %v9062_v50 }
0x1440   : > { %v2895_v8 = vpop.f32.mrf.mxu3 }
0x1441   : > { %v9360_v21 = vmul.f32 0.33333334, %v2895_v8 }
0x1443   : > { %7053 = vmatmul.msk.f32.gmra.mxu2 %vm357_vm8, %v9360_v21 }
0x1448   : > { %v3036_v42 = vpop.f32.mrf.mxu3 }
0x1449   : > { %v9364_v45 = vmul.f32 0.25, %v3036_v42 }
0x144b   : > { %7064 = vmatmul.msk.f32.vlgmr.msrb.gmra.mxu2 %vm357_vm8, %v9364_v45 }
0x144c   : > { %7087 = vmatpush.msk.msrb.mxu2 %vm333_vm1, %v10272_v38 }
0x144e   : > { %3525 = vmatpush.msrb.mxu2 %v10273_v4 }
0x1450   : > { %v3039_v56 = vpop.f32.mrf.mxu3 }
0x1451   : > { %v9371_v52 = vmul.f32 0.25, %v3039_v56 }
0x1453   : > { %7065 = vmatmul.msk.f32.gmra.mxu2 %vm357_vm8, %v9371_v52 }
0x1458   : > { %v3152_v44 = vpop.f32.mrf.mxu3 }
0x1459   : > { %v3224_v57 = vmul.f32 0.25, %v3152_v44 }
0x145b   : > { %v9378_v15 = vadd.f32 %v3224_v57, %v3007_v14  ;;  %7076 = vmatmul.msk.f32.vlgmr.msra.gmra.mxu2 %vm357_vm8, %v3224_v57 }
0x145c   : > { %7099 = vmatpush.msk.msra.mxu2 %vm333_vm1, %v8944_v25 }
0x145e   : > { %3641 = vmatpush.msra.mxu2 %v8969_v29 }
0x1460   : > { %v3155_v13 = vpop.f32.mrf.mxu3 }
0x1461   : > { %v3225_v1 = vmul.f32 0.25, %v3155_v13 }
0x1463   : > { %v9389_v22 = vadd.f32 %v3225_v1, %v3008_v17  ;;  %7077 = vmatmul.msk.f32.gmra.mxu2 %vm357_vm8, %v3225_v1  ;;  %v2780_v17 = vadd.f32 %v9342_v6, %v2549_v37  ;;  %v2543_v6 = vadd.f32 %v10282_v31, %v10274_v7 }
0x1468   : > { %v3296_v27 = vpop.f32.mrf.mxu3 }
0x1469   : > { %v3449_v20 = vmul.f32 0.2, %v3296_v27 }
0x146b   : > { %v9397_v39 = vadd.f32 %v3449_v20, %v3232_v9  ;;  %7088 = vmatmul.msk.f32.vlgmr.msrb.gmra.mxu2 %vm357_vm8, %v3449_v20  ;;  %v2774_v9 = vadd.f32 %v9282_v24, %v2543_v6 }
0x146c   : > { %7111 = vmatpush.msk.msrb.mxu2 %vm333_vm1, %v8992_v53 }
0x146d   : > { %v3005_v26 = vadd.f32 %v9353_v12, %v2774_v9  ;;  %v2537_v12 = vadd.f32 %v10284_v43, %v10274_v7  ;;  %v10286_v7 = vld [vmem:[#allocation13_spill] sm:$0xff] }
0x146e   : > { %3785 = vmatpush.msrb.mxu2 %v9007_v5 }
0x1470   : > { %v3299_v48 = vpop.f32.mrf.mxu3 }
0x1471   : > { %v3450_v8 = vmul.f32 0.2, %v3299_v48  ;;  %v2775_v48 = vadd.f32 %v9289_v34, %v2544_v28  ;;  %v2538_v34 = vadd.f32 %v10283_v19, %v10275_v40 }
0x1473   : > { %v9406_v42 = vadd.f32 %v3450_v8, %v3233_v46  ;;  %7089 = vmatmul.msk.f32.gmra.mxu2 %vm357_vm8, %v3450_v8  ;;  %v3006_v24 = vadd.f32 %v9360_v21, %v2775_v48 }
0x1478   : > { %v3412_v56 = vpop.f32.mrf.mxu3 }
0x1479   : > { %v3457_v60 = vmul.f32 0.2, %v3412_v56 }
0x147b   : > { %v9411_v44 = vadd.f32 %v3457_v60, %v3240_v0  ;;  %7100 = vmatmul.msk.f32.vlgmr.msra.gmra.mxu2 %vm357_vm8, %v3457_v60  ;;  %v10285_v0 = vld [vmem:[#allocation21_spill] sm:$0xff] }
0x147c   : > { %7123 = vmatpush.msk.msra.mxu2 %vm333_vm1, %v9233_v23  ;;  %v2768_v60 = vadd.f32 %v10285_v0, %v2537_v12 }
0x147e   : > { %3901 = vmatpush.msra.mxu2 %v9257_v16 }
0x1480   : > { %v3415_v35 = vpop.f32.mrf.mxu3 }
0x1481   : > { %v3458_v59 = vmul.f32 0.2, %v3415_v35  ;;  %v2999_v35 = vadd.f32 %v9293_v33, %v2768_v60 }
0x1483   : > { %v9419_v14 = vadd.f32 %v3458_v59, %v3241_v41  ;;  %7101 = vmatmul.msk.f32.gmra.mxu2 %vm357_vm8, %v3458_v59  ;;  %v3230_v59 = vadd.f32 %v9364_v45, %v2999_v35 }
0x1488   : > { %v3556_v3 = vpop.f32.mrf.mxu3 }
0x1489   : > { %v3682_v57 = vmul.f32 0.16666667, %v3556_v3 }
0x148b   : > { %v9424_v47 = vadd.f32 %v3682_v57, %v3465_v54  ;;  %7112 = vmatmul.msk.f32.vlgmr.msrb.gmra.mxu2 %vm357_vm8, %v3682_v57  ;;  %v2769_v54 = vadd.f32 %v10286_v7, %v2538_v34 }
0x148c   : > { %7135 = vmatpush.msk.msrb.mxu2 %vm333_vm1, %v10281_v2 }
0x148d   : > { %v3000_v33 = vadd.f32 %v9300_v55, %v2769_v54 }
0x148e   : > { %4045 = vmatpush.msrb.mxu2 %v10282_v31 }
0x148f   : > { %v3231_v45 = vadd.f32 %v9371_v52, %v3000_v33 }
0x1490   : > { %v3559_v32 = vpop.f32.mrf.mxu3 }
0x1491   : > { %v3683_v62 = vmul.f32 0.16666667, %v3559_v32 }
0x1493   : > { %v9432_v13 = vadd.f32 %v3683_v62, %v3466_v18  ;;  %7113 = vmatmul.msk.f32.gmra.mxu2 %vm357_vm8, %v3683_v62 }
0x14ae   : > { %v2979_v11 = vpop.f32.mrf.mxu2 }
0x14af   : > { %v2997_v1 = vmul.f32 0.33333334, %v2979_v11 }
0x14b1   : > { %v9438_v10 = vadd.f32 %v2997_v1, %v2780_v17  ;;  %7061 = vmatmul.msk.f32.vlgmr.msrb.gmra.mxu1 %vm357_vm8, %v2997_v1 }
0x14b2   : > { %7084 = vmatpush.msk.msrb.mxu1 %vm333_vm1, %v10283_v19 }
0x14b4   : > { %3496 = vmatpush.msrb.mxu1 %v10284_v43 }
0x14b6   : > { %v2982_v63 = vpop.f32.mrf.mxu2 }
0x14b7   : > { %v2998_v49 = vmul.f32 0.33333334, %v2982_v63 }
0x14b9   : > { %v9447_v27 = vadd.f32 %v2998_v49, %v2781_v51  ;;  %7062 = vmatmul.msk.f32.gmra.mxu1 %vm357_vm8, %v2998_v49 }
0x14be   : > { %v3123_v20 = vpop.f32.mrf.mxu2 }
0x14bf   : > { %v3222_v58 = vmul.f32 0.25, %v3123_v20 }
0x14c1   : > { %v9454_v36 = vadd.f32 %v3222_v58, %v3005_v26  ;;  %7073 = vmatmul.msk.f32.vlgmr.msra.gmra.mxu1 %vm357_vm8, %v3222_v58 }
0x14c2   : > { %7096 = vmatpush.msk.msra.mxu1 %vm333_vm1, %v9038_v61 }
0x14c4   : > { %3612 = vmatpush.msra.mxu1 %v9062_v50 }
0x14c6   : > { %v3126_v46 = vpop.f32.mrf.mxu2 }
0x14c7   : > { %v3223_v8 = vmul.f32 0.25, %v3126_v46 }
0x14c9   : > { %v9466_v56 = vadd.f32 %v3223_v8, %v3006_v24  ;;  %7074 = vmatmul.msk.f32.gmra.mxu1 %vm357_vm8, %v3223_v8 }
0x14ce   : > { %v3267_v41 = vpop.f32.mrf.mxu2 }
0x14cf   : > { %v3447_v3 = vmul.f32 0.2, %v3267_v41 }
0x14d1   : > { %v9474_v21 = vadd.f32 %v3447_v3, %v3230_v59  ;;  %7085 = vmatmul.msk.f32.vlgmr.msrb.gmra.mxu1 %vm357_vm8, %v3447_v3 }
0x14d2   : > { %7108 = vmatpush.msk.msrb.mxu1 %vm333_vm1, %v10272_v38 }
0x14d4   : > { %3756 = vmatpush.msrb.mxu1 %v10273_v4 }
0x14d6   : > { %v3270_v57 = vpop.f32.mrf.mxu2 }
0x14d7   : > { %v3448_v32 = vmul.f32 0.2, %v3270_v57 }
0x14d9   : > { %v9483_v18 = vadd.f32 %v3448_v32, %v3231_v45  ;;  %7086 = vmatmul.msk.f32.gmra.mxu1 %vm357_vm8, %v3448_v32 }
0x14de   : > { %v3383_v40 = vpop.f32.mrf.mxu2 }
0x14df   : > { %v3455_v62 = vmul.f32 0.2, %v3383_v40 }
0x14e1   : > { %v9487_v37 = vadd.f32 %v3455_v62, %v9378_v15  ;;  %7097 = vmatmul.msk.f32.vlgmr.msra.gmra.mxu1 %vm357_vm8, %v3455_v62 }
0x14e2   : > { %7120 = vmatpush.msk.msra.mxu1 %vm333_vm1, %v8944_v25 }
0x14e4   : > { %3872 = vmatpush.msra.mxu1 %v8969_v29 }
0x14e6   : > { %v3386_v55 = vpop.f32.mrf.mxu2 }
0x14e7   : > { %v3456_v11 = vmul.f32 0.2, %v3386_v55 }
0x14e9   : > { %v9494_v52 = vadd.f32 %v3456_v11, %v9389_v22  ;;  %7098 = vmatmul.msk.f32.gmra.mxu1 %vm357_vm8, %v3456_v11 }
0x14ee   : > { %v3527_v17 = vpop.f32.mrf.mxu2 }
0x14ef   : > { %v3680_v1 = vmul.f32 0.16666667, %v3527_v17 }
0x14f1   : > { %v9498_v30 = vadd.f32 %v3680_v1, %v9397_v39  ;;  %7109 = vmatmul.msk.f32.vlgmr.msrb.gmra.mxu1 %vm357_vm8, %v3680_v1 }
0x14f2   : > { %7132 = vmatpush.msk.msrb.mxu1 %vm333_vm1, %v8992_v53 }
0x14f4   : > { %4016 = vmatpush.msrb.mxu1 %v9007_v5 }
0x14f6   : > { %v3530_v15 = vpop.f32.mrf.mxu2 }
0x14f7   : > { %v3681_v63 = vmul.f32 0.16666667, %v3530_v15 }
0x14f9   : > { %v9505_v51 = vadd.f32 %v3681_v63, %v9406_v42  ;;  %7110 = vmatmul.msk.f32.gmra.mxu1 %vm357_vm8, %v3681_v63 }
0x14fe   : > { %v3643_v22 = vpop.f32.mrf.mxu2 }
0x14ff   : > { %v3688_v49 = vmul.f32 0.16666667, %v3643_v22 }
0x1501   : > { %v9509_v6 = vadd.f32 %v3688_v49, %v9411_v44  ;;  %7121 = vmatmul.msk.f32.vlgmr.msra.gmra.mxu1 %vm357_vm8, %v3688_v49 }
0x1502   : > { %7144 = vmatpush.msk.msra.mxu1 %vm333_vm1, %v9233_v23 }
0x1504   : > { %4132 = vmatpush.msra.mxu1 %v9257_v16 }
0x1506   : > { %v3646_v39 = vpop.f32.mrf.mxu2 }
0x1507   : > { %v3689_v9 = vmul.f32 0.16666667, %v3646_v39 }
0x1509   : > { %v9516_v20 = vadd.f32 %v3689_v9, %v9419_v14  ;;  %7122 = vmatmul.msk.f32.gmra.mxu1 %vm357_vm8, %v3689_v9 }
0x150e   : > { %v3787_v42 = vpop.f32.mrf.mxu2 }
0x150f   : > { %v3913_v26 = vmul.f32 0.14285715, %v3787_v42 }
0x1511   : > { %v9520_v58 = vadd.f32 %v3913_v26, %v9424_v47  ;;  %7133 = vmatmul.msk.f32.vlgmr.msrb.gmra.mxu1 %vm357_vm8, %v3913_v26 }
0x1512   : > { %7156 = vmatpush.msk.msrb.mxu1 %vm333_vm1, %v10281_v2 }
0x1514   : > { %4276 = vmatpush.msrb.mxu1 %v10282_v31 }
0x1516   : > { %v3790_v44 = vpop.f32.mrf.mxu2 }
0x1517   : > { %v3914_v28 = vmul.f32 0.14285715, %v3790_v44 }
0x1519   : > { %v9527_v48 = vadd.f32 %v3914_v28, %v9432_v13  ;;  %7134 = vmatmul.msk.f32.gmra.mxu1 %vm357_vm8, %v3914_v28 }
0x152e   : > { %v3210_v14 = vpop.f32.mrf.mxu1 }
0x152f   : > { %v3228_v46 = vmul.f32 0.25, %v3210_v14 }
0x1531   : > { %v9531_v24 = vadd.f32 %v3228_v46, %v9438_v10  ;;  %7082 = vmatmul.msk.f32.vlgmr.msrb.gmra.mxu0 %vm357_vm8, %v3228_v46 }
0x1532   : > { %7105 = vmatpush.msk.msrb.mxu0 %vm333_vm1, %v10283_v19 }
0x1534   : > { %3727 = vmatpush.msrb.mxu0 %v10284_v43 }
0x1536   : > { %v3213_v47 = vpop.f32.mrf.mxu1 }
0x1537   : > { %v3229_v8 = vmul.f32 0.25, %v3213_v47 }
0x1539   : > { %v9538_v12 = vadd.f32 %v3229_v8, %v9447_v27  ;;  %7083 = vmatmul.msk.f32.gmra.mxu0 %vm357_vm8, %v3229_v8 }
0x153e   : > { %v3354_v13 = vpop.f32.mrf.mxu1 }
0x153f   : > { %v3453_v0 = vmul.f32 0.2, %v3354_v13 }
0x1541   : > { %v9542_v60 = vadd.f32 %v3453_v0, %v9454_v36  ;;  %7094 = vmatmul.msk.f32.vlgmr.msra.gmra.mxu0 %vm357_vm8, %v3453_v0 }
0x1542   : > { %7117 = vmatpush.msk.msra.mxu0 %vm333_vm1, %v9038_v61 }
0x1544   : > { %3843 = vmatpush.msra.mxu0 %v9062_v50 }
0x1546   : > { %v3357_v10 = vpop.f32.mrf.mxu1 }
0x1547   : > { %v3454_v35 = vmul.f32 0.2, %v3357_v10 }
0x1549   : > { %v9549_v41 = vadd.f32 %v3454_v35, %v9466_v56  ;;  %7095 = vmatmul.msk.f32.gmra.mxu0 %vm357_vm8, %v3454_v35 }
0x154e   : > { %v3498_v27 = vpop.f32.mrf.mxu1 }
0x154f   : > { %v3678_v59 = vmul.f32 0.16666667, %v3498_v27 }
0x1551   : > { %v9553_v3 = vadd.f32 %v3678_v59, %v9474_v21  ;;  %7106 = vmatmul.msk.f32.vlgmr.msrb.gmra.mxu0 %vm357_vm8, %v3678_v59 }
0x1552   : > { %7129 = vmatpush.msk.msrb.mxu0 %vm333_vm1, %v10272_v38 }
0x1554   : > { %3987 = vmatpush.msrb.mxu0 %v10273_v4 }
0x1556   : > { %v3501_v36 = vpop.f32.mrf.mxu1 }
0x1557   : > { %v3679_v34 = vmul.f32 0.16666667, %v3501_v36 }
0x1559   : > { %v9560_v7 = vadd.f32 %v3679_v34, %v9483_v18  ;;  %7107 = vmatmul.msk.f32.gmra.mxu0 %vm357_vm8, %v3679_v34 }
0x155e   : > { %v3614_v56 = vpop.f32.mrf.mxu1 }
0x155f   : > { %v3686_v54 = vmul.f32 0.16666667, %v3614_v56 }
0x1561   : > { %v9564_v33 = vadd.f32 %v3686_v54, %v9487_v37  ;;  %7118 = vmatmul.msk.f32.vlgmr.msra.gmra.mxu0 %vm357_vm8, %v3686_v54 }
0x1562   : > { %7141 = vmatpush.msk.msra.mxu0 %vm333_vm1, %v8944_v25 }
0x1564   : > { %4103 = vmatpush.msra.mxu0 %v8969_v29 }
0x1566   : > { %v3617_v21 = vpop.f32.mrf.mxu1 }
0x1567   : > { %v3687_v57 = vmul.f32 0.16666667, %v3617_v21 }
0x1569   : > { %v9571_v45 = vadd.f32 %v3687_v57, %v9494_v52  ;;  %7119 = vmatmul.msk.f32.gmra.mxu0 %vm357_vm8, %v3687_v57 }
0x156e   : > { %v3758_v32 = vpop.f32.mrf.mxu1 }
0x156f   : > { %v3911_v18 = vmul.f32 0.14285715, %v3758_v32 }
0x1571   : > { %v9575_v40 = vadd.f32 %v3911_v18, %v9498_v30  ;;  %7130 = vmatmul.msk.f32.vlgmr.msrb.gmra.mxu0 %vm357_vm8, %v3911_v18 }
0x1572   : > { %7153 = vmatpush.msk.msrb.mxu0 %vm333_vm1, %v8992_v53 }
0x1574   : > { %4247 = vmatpush.msrb.mxu0 %v9007_v5 }
0x1576   : > { %v3761_v62 = vpop.f32.mrf.mxu1 }
0x1577   : > { %v3912_v37 = vmul.f32 0.14285715, %v3761_v62 }
0x1579   : > { %v9582_v55 = vadd.f32 %v3912_v37, %v9505_v51  ;;  %7131 = vmatmul.msk.f32.gmra.mxu0 %vm357_vm8, %v3912_v37 }
0x157e   : > { %v3874_v11 = vpop.f32.mrf.mxu1 }
0x157f   : > { %v3919_v52 = vmul.f32 0.14285715, %v3874_v11 }
0x1581   : > { %v9586_v17 = vadd.f32 %v3919_v52, %v9509_v6  ;;  %7142 = vmatmul.msk.f32.vlgmr.msra.gmra.mxu0 %vm357_vm8, %v3919_v52 }
0x1582   : > { %7165 = vmatpush.msk.msra.mxu0 %vm333_vm1, %v9233_v23 }
0x1584   : > { %4363 = vmatpush.msra.mxu0 %v9257_v16 }
0x1586   : > { %v3877_v1 = vpop.f32.mrf.mxu1 }
0x1587   : > { %v3920_v30 = vmul.f32 0.14285715, %v3877_v1 }
0x1589   : > { %v9593_v15 = vadd.f32 %v3920_v30, %v9516_v20  ;;  %7143 = vmatmul.msk.f32.gmra.mxu0 %vm357_vm8, %v3920_v30 }
0x158e   : > { %v4018_v63 = vpop.f32.mrf.mxu1 }
0x158f   : > { %v4144_v51 = vmul.f32 0.125, %v4018_v63 }
0x1591   : > { %v9597_v22 = vadd.f32 %v4144_v51, %v9520_v58  ;;  %7154 = vmatmul.msk.f32.vlgmr.msrb.gmra.mxu0 %vm357_vm8, %v4144_v51 }
0x1592   : > { %7177 = vmatpush.msk.msrb.mxu0 %vm333_vm1, %v10281_v2 }
0x1594   : > { %4507 = vmatpush.msrb.mxu0 %v10282_v31 }
0x1596   : > { %v4021_v49 = vpop.f32.mrf.mxu1 }
0x1597   : > { %v4145_v6 = vmul.f32 0.125, %v4021_v49 }
0x1599   : > { %v9604_v39 = vadd.f32 %v4145_v6, %v9527_v48  ;;  %7155 = vmatmul.msk.f32.gmra.mxu0 %vm357_vm8, %v4145_v6 }
0x15ae   : > { %v3441_v9 = vpop.f32.mrf.mxu0 }
0x15af   : > { %v3459_v20 = vmul.f32 0.2, %v3441_v9 }
0x15b1   : > { %v9608_v42 = vadd.f32 %v3459_v20, %v9531_v24  ;;  %7103 = vmatmul.msk.f32.vlgmr.msra.gmra.mxu3 %vm357_vm8, %v3459_v20 }
0x15b2   : > { %7126 = vmatpush.msk.msra.mxu3 %vm333_vm1, %v10283_v19 }
0x15b4   : > { %3958 = vmatpush.msra.mxu3 %v10284_v43 }
0x15b6   : > { %v3444_v26 = vpop.f32.mrf.mxu0 }
0x15b7   : > { %v3460_v58 = vmul.f32 0.2, %v3444_v26 }
0x15b9   : > { %v9615_v44 = vadd.f32 %v3460_v58, %v9538_v12  ;;  %7104 = vmatmul.msk.f32.gmra.mxu3 %vm357_vm8, %v3460_v58 }
0x15be   : > { %v3585_v28 = vpop.f32.mrf.mxu0 }
0x15bf   : > { %v3684_v48 = vmul.f32 0.16666667, %v3585_v28 }
0x15c1   : > { %v9619_v14 = vadd.f32 %v3684_v48, %v9542_v60  ;;  %7115 = vmatmul.msk.f32.vlgmr.msrb.gmra.mxu3 %vm357_vm8, %v3684_v48 }
0x15c2   : > { %7138 = vmatpush.msk.msrb.mxu3 %vm333_vm1, %v9038_v61 }
0x15c4   : > { %4074 = vmatpush.msrb.mxu3 %v9062_v50 }
0x15c6   : > { %v3588_v46 = vpop.f32.mrf.mxu0 }
0x15c7   : > { %v3685_v24 = vmul.f32 0.16666667, %v3588_v46 }
0x15c9   : > { %v9626_v47 = vadd.f32 %v3685_v24, %v9549_v41  ;;  %7116 = vmatmul.msk.f32.gmra.mxu3 %vm357_vm8, %v3685_v24 }
0x15ce   : > { %v3729_v8 = vpop.f32.mrf.mxu0 }
0x15cf   : > { %v3909_v12 = vmul.f32 0.14285715, %v3729_v8 }
0x15d1   : > { %v9630_v13 = vadd.f32 %v3909_v12, %v9553_v3  ;;  %7127 = vmatmul.msk.f32.vlgmr.msra.gmra.mxu3 %vm357_vm8, %v3909_v12 }
0x15d2   : > { %7150 = vmatpush.msk.msra.mxu3 %vm333_vm1, %v10272_v38 }
0x15d4   : > { %4218 = vmatpush.msra.mxu3 %v10273_v4 }
0x15d6   : > { %v3732_v0 = vpop.f32.mrf.mxu0 }
0x15d7   : > { %v3910_v60 = vmul.f32 0.14285715, %v3732_v0 }
0x15d9   : > { %v9637_v10 = vadd.f32 %v3910_v60, %v9560_v7  ;;  %7128 = vmatmul.msk.f32.gmra.mxu3 %vm357_vm8, %v3910_v60 }
0x15de   : > { %v3845_v35 = vpop.f32.mrf.mxu0 }
0x15df   : > { %v3917_v41 = vmul.f32 0.14285715, %v3845_v35 }
0x15e1   : > { %v9641_v27 = vadd.f32 %v3917_v41, %v9564_v33  ;;  %7139 = vmatmul.msk.f32.vlgmr.msrb.gmra.mxu3 %vm357_vm8, %v3917_v41 }
0x15e2   : > { %7162 = vmatpush.msk.msrb.mxu3 %vm333_vm1, %v8944_v25 }
0x15e4   : > { %4334 = vmatpush.msrb.mxu3 %v8969_v29 }
0x15e6   : > { %v3848_v59 = vpop.f32.mrf.mxu0 }
0x15e7   : > { %v3918_v3 = vmul.f32 0.14285715, %v3848_v59 }
0x15e9   : > { %v9648_v36 = vadd.f32 %v3918_v3, %v9571_v45  ;;  %7140 = vmatmul.msk.f32.gmra.mxu3 %vm357_vm8, %v3918_v3 }
0x15ee   : > { %v3989_v34 = vpop.f32.mrf.mxu0 }
0x15ef   : > { %v4142_v7 = vmul.f32 0.125, %v3989_v34 }
0x15f1   : > { %v9652_v56 = vadd.f32 %v4142_v7, %v9575_v40  ;;  %7151 = vmatmul.msk.f32.vlgmr.msra.gmra.mxu3 %vm357_vm8, %v4142_v7 }
0x15f2   : > { %7174 = vmatpush.msk.msra.mxu3 %vm333_vm1, %v8992_v53 }
0x15f4   : > { %4478 = vmatpush.msra.mxu3 %v9007_v5 }
0x15f6   : > { %v3992_v54 = vpop.f32.mrf.mxu0 }
0x15f7   : > { %v4143_v33 = vmul.f32 0.125, %v3992_v54 }
0x15f9   : > { %v9659_v21 = vadd.f32 %v4143_v33, %v9582_v55  ;;  %7152 = vmatmul.msk.f32.gmra.mxu3 %vm357_vm8, %v4143_v33 }
0x15fe   : > { %v4105_v57 = vpop.f32.mrf.mxu0 }
0x15ff   : > { %v4150_v45 = vmul.f32 0.125, %v4105_v57 }
0x1601   : > { %v9663_v32 = vadd.f32 %v4150_v45, %v9586_v17  ;;  %7163 = vmatmul.msk.f32.vlgmr.msrb.gmra.mxu3 %vm357_vm8, %v4150_v45 }
0x1602   : > { %7186 = vmatpush.msk.msrb.mxu3 %vm333_vm1, %v9233_v23 }
0x1604   : > { %4594 = vmatpush.msrb.mxu3 %v9257_v16 }
0x1606   : > { %v4108_v18 = vpop.f32.mrf.mxu0 }
0x1607   : > { %v4151_v40 = vmul.f32 0.125, %v4108_v18 }
0x1609   : > { %v9670_v62 = vadd.f32 %v4151_v40, %v9593_v15  ;;  %7164 = vmatmul.msk.f32.gmra.mxu3 %vm357_vm8, %v4151_v40 }
0x160e   : > { %v4249_v37 = vpop.f32.mrf.mxu0 }
0x160f   : > { %v4375_v55 = vmul.f32 0.11111111, %v4249_v37 }
0x1611   : > { %v9674_v11 = vadd.f32 %v4375_v55, %v9597_v22  ;;  %7175 = vmatmul.msk.f32.vlgmr.msra.gmra.mxu3 %vm357_vm8, %v4375_v55 }
0x1612   : > { %7198 = vmatpush.msk.msra.mxu3 %vm333_vm1, %v10281_v2 }
0x1614   : > { %4738 = vmatpush.msra.mxu3 %v10282_v31 }
0x1616   : > { %v4252_v52 = vpop.f32.mrf.mxu0 }
0x1617   : > { %v4376_v17 = vmul.f32 0.11111111, %v4252_v52 }
0x1619   : > { %v9681_v1 = vadd.f32 %v4376_v17, %v9604_v39  ;;  %7176 = vmatmul.msk.f32.gmra.mxu3 %vm357_vm8, %v4376_v17 }
0x1634   : > { %v3672_v30 = vpop.f32.mrf.mxu3 }
0x1635   : > { %v3690_v15 = vmul.f32 0.16666667, %v3672_v30 }
0x1637   : > { %v9685_v63 = vadd.f32 %v3690_v15, %v9608_v42  ;;  %7124 = vmatmul.msk.f32.vlgmr.msra.gmra.mxu2 %vm357_vm8, %v3690_v15 }
0x1638   : > { %7147 = vmatpush.msk.msra.mxu2 %vm333_vm1, %v10283_v19 }
0x163a   : > { %4189 = vmatpush.msra.mxu2 %v10284_v43 }
0x163c   : > { %v3675_v51 = vpop.f32.mrf.mxu3 }
0x163d   : > { %v3691_v22 = vmul.f32 0.16666667, %v3675_v51 }
0x163f   : > { %v9692_v49 = vadd.f32 %v3691_v22, %v9615_v44  ;;  %7125 = vmatmul.msk.f32.gmra.mxu2 %vm357_vm8, %v3691_v22 }
0x1644   : > { %v3816_v6 = vpop.f32.mrf.mxu3 }
0x1645   : > { %v3915_v39 = vmul.f32 0.14285715, %v3816_v6 }
0x1647   : > { %v9696_v9 = vadd.f32 %v3915_v39, %v9619_v14  ;;  %7136 = vmatmul.msk.f32.vlgmr.msrb.gmra.mxu2 %vm357_vm8, %v3915_v39 }
0x1648   : > { %7159 = vmatpush.msk.msrb.mxu2 %vm333_vm1, %v9038_v61 }
0x164a   : > { %4305 = vmatpush.msrb.mxu2 %v9062_v50 }
0x164c   : > { %v3819_v20 = vpop.f32.mrf.mxu3 }
0x164d   : > { %v3916_v42 = vmul.f32 0.14285715, %v3819_v20 }
0x164f   : > { %v9703_v26 = vadd.f32 %v3916_v42, %v9626_v47  ;;  %7137 = vmatmul.msk.f32.gmra.mxu2 %vm357_vm8, %v3916_v42 }
0x1654   : > { %v3960_v58 = vpop.f32.mrf.mxu3 }
0x1655   : > { %v4140_v44 = vmul.f32 0.125, %v3960_v58 }
0x1657   : > { %v9707_v28 = vadd.f32 %v4140_v44, %v9630_v13  ;;  %7148 = vmatmul.msk.f32.vlgmr.msra.gmra.mxu2 %vm357_vm8, %v4140_v44 }
0x1658   : > { %7171 = vmatpush.msk.msra.mxu2 %vm333_vm1, %v10272_v38 }
0x165a   : > { %4449 = vmatpush.msra.mxu2 %v10273_v4 }
0x165c   : > { %v3963_v48 = vpop.f32.mrf.mxu3 }
0x165d   : > { %v4141_v14 = vmul.f32 0.125, %v3963_v48 }
0x165f   : > { %v9714_v46 = vadd.f32 %v4141_v14, %v9637_v10  ;;  %7149 = vmatmul.msk.f32.gmra.mxu2 %vm357_vm8, %v4141_v14 }
0x1664   : > { %v4076_v24 = vpop.f32.mrf.mxu3 }
0x1665   : > { %v4148_v47 = vmul.f32 0.125, %v4076_v24 }
0x1667   : > { %v9718_v8 = vadd.f32 %v4148_v47, %v9641_v27  ;;  %7160 = vmatmul.msk.f32.vlgmr.msrb.gmra.mxu2 %vm357_vm8, %v4148_v47 }
0x1668   : > { %7183 = vmatpush.msk.msrb.mxu2 %vm333_vm1, %v8944_v25 }
0x166a   : > { %4565 = vmatpush.msrb.mxu2 %v8969_v29 }
0x166c   : > { %v4079_v12 = vpop.f32.mrf.mxu3 }
0x166d   : > { %v4149_v13 = vmul.f32 0.125, %v4079_v12 }
0x166f   : > { %v9725_v0 = vadd.f32 %v4149_v13, %v9648_v36  ;;  %7161 = vmatmul.msk.f32.gmra.mxu2 %vm357_vm8, %v4149_v13 }
0x1674   : > { %v4220_v60 = vpop.f32.mrf.mxu3 }
0x1675   : > { %v4373_v10 = vmul.f32 0.11111111, %v4220_v60 }
0x1677   : > { %v9729_v35 = vadd.f32 %v4373_v10, %v9652_v56  ;;  %7172 = vmatmul.msk.f32.vlgmr.msra.gmra.mxu2 %vm357_vm8, %v4373_v10 }
0x1678   : > { %7195 = vmatpush.msk.msra.mxu2 %vm333_vm1, %v8992_v53 }
0x167a   : > { %4709 = vmatpush.msra.mxu2 %v9007_v5 }
0x167c   : > { %v4223_v41 = vpop.f32.mrf.mxu3 }
0x167d   : > { %v4374_v27 = vmul.f32 0.11111111, %v4223_v41 }
0x167f   : > { %v9736_v59 = vadd.f32 %v4374_v27, %v9659_v21  ;;  %7173 = vmatmul.msk.f32.gmra.mxu2 %vm357_vm8, %v4374_v27 }
0x1684   : > { %v4336_v3 = vpop.f32.mrf.mxu3 }
0x1685   : > { %v4381_v36 = vmul.f32 0.11111111, %v4336_v3 }
0x1687   : > { %v9740_v34 = vadd.f32 %v4381_v36, %v9663_v32  ;;  %7184 = vmatmul.msk.f32.vlgmr.msrb.gmra.mxu2 %vm357_vm8, %v4381_v36 }
0x1688   : > { %7207 = vmatpush.msk.msrb.mxu2 %vm333_vm1, %v9233_v23 }
0x168a   : > { %4825 = vmatpush.msrb.mxu2 %v9257_v16 }
0x168c   : > { %v4339_v7 = vpop.f32.mrf.mxu3 }
0x168d   : > { %v4382_v56 = vmul.f32 0.11111111, %v4339_v7 }
0x168f   : > { %v9747_v54 = vadd.f32 %v4382_v56, %v9670_v62  ;;  %7185 = vmatmul.msk.f32.gmra.mxu2 %vm357_vm8, %v4382_v56 }
0x1694   : > { %v4480_v33 = vpop.f32.mrf.mxu3 }
0x1695   : > { %v4606_v21 = vmul.f32 0.1, %v4480_v33 }
0x1697   : > { %v9751_v57 = vadd.f32 %v4606_v21, %v9674_v11  ;;  %7196 = vmatmul.msk.f32.vlgmr.msra.gmra.mxu2 %vm357_vm8, %v4606_v21 }
0x1698   : > { %7219 = vmatpush.msk.msra.mxu2 %vm333_vm1, %v10281_v2 }
0x169a   : > { %4969 = vmatpush.msra.mxu2 %v10282_v31 }
0x169c   : > { %v4483_v45 = vpop.f32.mrf.mxu3 }
0x169d   : > { %v4607_v32 = vmul.f32 0.1, %v4483_v45 }
0x169f   : > { %v9758_v18 = vadd.f32 %v4607_v32, %v9681_v1  ;;  %7197 = vmatmul.msk.f32.gmra.mxu2 %vm357_vm8, %v4607_v32 }
0x16ba   : > { %v3903_v40 = vpop.f32.mrf.mxu2 }
0x16bb   : > { %v3921_v62 = vmul.f32 0.14285715, %v3903_v40 }
0x16bd   : > { %v9762_v37 = vadd.f32 %v3921_v62, %v9685_v63  ;;  %7145 = vmatmul.msk.f32.vlgmr.msra.gmra.mxu1 %vm357_vm8, %v3921_v62 }
0x16be   : > { %7168 = vmatpush.msk.msra.mxu1 %vm333_vm1, %v10283_v19 }
0x16c0   : > { %4420 = vmatpush.msra.mxu1 %v10284_v43 }
0x16c2   : > { %v3906_v2 = vpop.f32.mrf.mxu2 }
0x16c3   : > { %v3922_v31 = vmul.f32 0.14285715, %v3906_v2 }
0x16c5   : > { %v9769_v55 = vadd.f32 %v3922_v31, %v9692_v49  ;;  %7146 = vmatmul.msk.f32.gmra.mxu1 %vm357_vm8, %v3922_v31 }
0x16ca   : > { %v4047_v11 = vpop.f32.mrf.mxu2 }
0x16cb   : > { %v4146_v52 = vmul.f32 0.125, %v4047_v11 }
0x16cd   : > { %v9773_v17 = vadd.f32 %v4146_v52, %v9696_v9  ;;  %7157 = vmatmul.msk.f32.vlgmr.msrb.gmra.mxu1 %vm357_vm8, %v4146_v52 }
0x16ce   : > { %7180 = vmatpush.msk.msrb.mxu1 %vm333_vm1, %v9038_v61 }
0x16d0   : > { %4536 = vmatpush.msrb.mxu1 %v9062_v50 }
0x16d2   : > { %v4050_v1 = vpop.f32.mrf.mxu2 }
0x16d3   : > { %v4147_v30 = vmul.f32 0.125, %v4050_v1 }
0x16d5   : > { %v9780_v15 = vadd.f32 %v4147_v30, %v9703_v26  ;;  %7158 = vmatmul.msk.f32.gmra.mxu1 %vm357_vm8, %v4147_v30 }
0x16da   : > { %v4191_v63 = vpop.f32.mrf.mxu2 }
0x16db   : > { %v4371_v51 = vmul.f32 0.11111111, %v4191_v63 }
0x16dd   : > { %v9784_v22 = vadd.f32 %v4371_v51, %v9707_v28  ;;  %7169 = vmatmul.msk.f32.vlgmr.msra.gmra.mxu1 %vm357_vm8, %v4371_v51 }
0x16de   : > { %7192 = vmatpush.msk.msra.mxu1 %vm333_vm1, %v10272_v38 }
0x16e0   : > { %4680 = vmatpush.msra.mxu1 %v10273_v4 }
0x16e2   : > { %v4194_v49 = vpop.f32.mrf.mxu2 }
0x16e3   : > { %v4372_v6 = vmul.f32 0.11111111, %v4194_v49 }
0x16e5   : > { %v9791_v39 = vadd.f32 %v4372_v6, %v9714_v46  ;;  %7170 = vmatmul.msk.f32.gmra.mxu1 %vm357_vm8, %v4372_v6 }
0x16ea   : > { %v4307_v9 = vpop.f32.mrf.mxu2 }
0x16eb   : > { %v4379_v20 = vmul.f32 0.11111111, %v4307_v9 }
0x16ed   : > { %v9795_v42 = vadd.f32 %v4379_v20, %v9718_v8  ;;  %7181 = vmatmul.msk.f32.vlgmr.msrb.gmra.mxu1 %vm357_vm8, %v4379_v20 }
0x16ee   : > { %7204 = vmatpush.msk.msrb.mxu1 %vm333_vm1, %v8944_v25 }
0x16f0   : > { %4796 = vmatpush.msrb.mxu1 %v8969_v29 }
0x16f2   : > { %v4310_v26 = vpop.f32.mrf.mxu2 }
0x16f3   : > { %v4380_v58 = vmul.f32 0.11111111, %v4310_v26 }
0x16f5   : > { %v9802_v44 = vadd.f32 %v4380_v58, %v9725_v0  ;;  %7182 = vmatmul.msk.f32.gmra.mxu1 %vm357_vm8, %v4380_v58 }
0x16fa   : > { %v4451_v28 = vpop.f32.mrf.mxu2 }
0x16fb   : > { %v4604_v48 = vmul.f32 0.1, %v4451_v28 }
0x16fd   : > { %v9806_v14 = vadd.f32 %v4604_v48, %v9729_v35  ;;  %7193 = vmatmul.msk.f32.vlgmr.msra.gmra.mxu1 %vm357_vm8, %v4604_v48 }
0x16fe   : > { %7216 = vmatpush.msk.msra.mxu1 %vm333_vm1, %v8992_v53 }
0x1700   : > { %4940 = vmatpush.msra.mxu1 %v9007_v5 }
0x1702   : > { %v4454_v46 = vpop.f32.mrf.mxu2 }
0x1703   : > { %v4605_v24 = vmul.f32 0.1, %v4454_v46 }
0x1705   : > { %v9813_v47 = vadd.f32 %v4605_v24, %v9736_v59  ;;  %7194 = vmatmul.msk.f32.gmra.mxu1 %vm357_vm8, %v4605_v24 }
0x170a   : > { %v4567_v8 = vpop.f32.mrf.mxu2 }
0x170b   : > { %v4612_v12 = vmul.f32 0.1, %v4567_v8 }
0x170d   : > { %v9817_v13 = vadd.f32 %v4612_v12, %v9740_v34  ;;  %7205 = vmatmul.msk.f32.vlgmr.msrb.gmra.mxu1 %vm357_vm8, %v4612_v12 }
0x170e   : > { %7228 = vmatpush.msk.msrb.mxu1 %vm333_vm1, %v9233_v23 }
0x1710   : > { %5056 = vmatpush.msrb.mxu1 %v9257_v16 }
0x1712   : > { %v4570_v53 = vpop.f32.mrf.mxu2 }
0x1713   : > { %v4613_v5 = vmul.f32 0.1, %v4570_v53 }
0x1715   : > { %v9824_v0 = vadd.f32 %v4613_v5, %v9747_v54  ;;  %7206 = vmatmul.msk.f32.gmra.mxu1 %vm357_vm8, %v4613_v5 }
0x171a   : > { %v4711_v60 = vpop.f32.mrf.mxu2 }
0x171b   : > { %v4837_v10 = vmul.f32 0.09090909, %v4711_v60 }
0x171d   : > { %v9828_v35 = vadd.f32 %v4837_v10, %v9751_v57  ;;  %7217 = vmatmul.msk.f32.vlgmr.msra.gmra.mxu1 %vm357_vm8, %v4837_v10 }
0x1722   : > { %v4714_v41 = vpop.f32.mrf.mxu2 }
0x1723   : > { %v4838_v27 = vmul.f32 0.09090909, %v4714_v41 }
0x1725   : > { %v4852_v23 = vadd.f32 %v4838_v27, %v9758_v18  ;;  %7218 = vmatmul.msk.f32.gmra.mxu1 %vm357_vm8, %v4838_v27 }
0x173a   : > { %v4134_v16 = vpop.f32.mrf.mxu1 }
0x173b   : > { %v4152_v59 = vmul.f32 0.125, %v4134_v16 }
0x173d   : > { %v9834_v3 = vadd.f32 %v4152_v59, %v9762_v37  ;;  %7166 = vmatmul.msk.f32.vlgmr.msra.gmra.mxu0 %vm357_vm8, %v4152_v59 }
0x173e   : > { %7189 = vmatpush.msk.msra.mxu0 %vm333_vm1, %v10283_v19 }
0x1740   : > { %4651 = vmatpush.msra.mxu0 %v10284_v43 }
0x1742   : > { %v4137_v36 = vpop.f32.mrf.mxu1 }
0x1743   : > { %v4153_v34 = vmul.f32 0.125, %v4137_v36 }
0x1745   : > { %v9841_v7 = vadd.f32 %v4153_v34, %v9769_v55  ;;  %7167 = vmatmul.msk.f32.gmra.mxu0 %vm357_vm8, %v4153_v34 }
0x174a   : > { %v4278_v56 = vpop.f32.mrf.mxu1 }
0x174b   : > { %v4377_v54 = vmul.f32 0.11111111, %v4278_v56 }
0x174d   : > { %v9845_v33 = vadd.f32 %v4377_v54, %v9773_v17  ;;  %7178 = vmatmul.msk.f32.vlgmr.msrb.gmra.mxu0 %vm357_vm8, %v4377_v54 }
0x174e   : > { %7201 = vmatpush.msk.msrb.mxu0 %vm333_vm1, %v9038_v61 }
0x1750   : > { %4767 = vmatpush.msrb.mxu0 %v9062_v50 }
0x1752   : > { %v4281_v21 = vpop.f32.mrf.mxu1 }
0x1753   : > { %v4378_v57 = vmul.f32 0.11111111, %v4281_v21 }
0x1755   : > { %v9852_v45 = vadd.f32 %v4378_v57, %v9780_v15  ;;  %7179 = vmatmul.msk.f32.gmra.mxu0 %vm357_vm8, %v4378_v57 }
0x175a   : > { %v4422_v32 = vpop.f32.mrf.mxu1 }
0x175b   : > { %v4602_v18 = vmul.f32 0.1, %v4422_v32 }
0x175d   : > { %v9856_v40 = vadd.f32 %v4602_v18, %v9784_v22  ;;  %7190 = vmatmul.msk.f32.vlgmr.msra.gmra.mxu0 %vm357_vm8, %v4602_v18 }
0x175e   : > { %7213 = vmatpush.msk.msra.mxu0 %vm333_vm1, %v10272_v38 }
0x1760   : > { %4911 = vmatpush.msra.mxu0 %v10273_v4 }
0x1762   : > { %v4425_v62 = vpop.f32.mrf.mxu1 }
0x1763   : > { %v4603_v37 = vmul.f32 0.1, %v4425_v62 }
0x1765   : > { %v9863_v2 = vadd.f32 %v4603_v37, %v9791_v39  ;;  %7191 = vmatmul.msk.f32.gmra.mxu0 %vm357_vm8, %v4603_v37 }
0x176a   : > { %v4538_v31 = vpop.f32.mrf.mxu1 }
0x176b   : > { %v4610_v55 = vmul.f32 0.1, %v4538_v31 }
0x176d   : > { %v9867_v11 = vadd.f32 %v4610_v55, %v9795_v42  ;;  %7202 = vmatmul.msk.f32.vlgmr.msrb.gmra.mxu0 %vm357_vm8, %v4610_v55 }
0x176e   : > { %7225 = vmatpush.msk.msrb.mxu0 %vm333_vm1, %v8944_v25 }
0x1770   : > { %5027 = vmatpush.msrb.mxu0 %v8969_v29 }
0x1772   : > { %v4541_v38 = vpop.f32.mrf.mxu1 }
0x1773   : > { %v4611_v4 = vmul.f32 0.1, %v4541_v38 }
0x1775   : > { %v4625_v52 = vadd.f32 %v4611_v4, %v9802_v44  ;;  %7203 = vmatmul.msk.f32.gmra.mxu0 %vm357_vm8, %v4611_v4 }
0x177a   : > { %v4682_v17 = vpop.f32.mrf.mxu1 }
0x177b   : > { %v4835_v1 = vmul.f32 0.09090909, %v4682_v17 }
0x177d   : > { %v9876_v30 = vadd.f32 %v4835_v1, %v9806_v14  ;;  %7214 = vmatmul.msk.f32.vlgmr.msra.gmra.mxu0 %vm357_vm8, %v4835_v1 }
0x1782   : > { %v4685_v15 = vpop.f32.mrf.mxu1 }
0x1783   : > { %v4836_v63 = vmul.f32 0.09090909, %v4685_v15 }
0x1785   : > { %v4850_v51 = vadd.f32 %v4836_v63, %v9813_v47  ;;  %7215 = vmatmul.msk.f32.gmra.mxu0 %vm357_vm8, %v4836_v63 }
0x178a   : > { %v4798_v25 = vpop.f32.mrf.mxu1 }
0x178b   : > { %v4843_v29 = vmul.f32 0.09090909, %v4798_v25 }
0x178d   : > { %v9882_v22 = vadd.f32 %v4843_v29, %v9817_v13  ;;  %7226 = vmatmul.msk.f32.vlgmr.msrb.gmra.mxu0 %vm357_vm8, %v4843_v29 }
0x1792   : > { %v4801_v49 = vpop.f32.mrf.mxu1 }
0x1793   : > { %v4844_v6 = vmul.f32 0.09090909, %v4801_v49 }
0x1795   : > { %v4858_v39 = vadd.f32 %v4844_v6, %v9824_v0  ;;  %7227 = vmatmul.msk.f32.gmra.mxu0 %vm357_vm8, %v4844_v6 }
0x179a   : > { %v4942_v9 = vpop.f32.mrf.mxu1 }
0x179b   : > { %v5068_v42 = vmul.f32 0.083333336, %v4942_v9 }
0x179d   : > { %v5082_v44 = vadd.f32 %v5068_v42, %v9828_v35 }
0x17a2   : > { %v4945_v20 = vpop.f32.mrf.mxu1 }
0x17a3   : > { %v5069_v26 = vmul.f32 0.083333336, %v4945_v20 }
0x17a5   : > { %v5083_v58 = vadd.f32 %v5069_v26, %v4852_v23 }
0x17a7   : > { %7237 = vmatpush.msk.msra.mxu0 %vm333_vm1, %v5083_v58 }
0x17a9   : > { %5177 = vmatpush.msra.mxu0 %v5082_v44 }
0x17aa   : > { %7238 = vmatmul.msk.f32.vlgmr.msra.gmra.mxu0 %vm357_vm8, %v5082_v44 }
0x17b2   : > { %7239 = vmatmul.msk.f32.gmra.mxu0 %vm357_vm8, %v5083_v58 }
0x17ba   : > { %v4365_v28 = vpop.f32.mrf.mxu0 }
0x17bb   : > { %v4383_v48 = vmul.f32 0.11111111, %v4365_v28 }
0x17bd   : > { %v4397_v14 = vadd.f32 %v4383_v48, %v9834_v3  ;;  %7187 = vmatmul.msk.f32.vlgmr.msrb.gmra.mxu3 %vm357_vm8, %v4383_v48 }
0x17be   : > { %7210 = vmatpush.msk.msrb.mxu3 %vm333_vm1, %v10283_v19 }
0x17c0   : > { %4882 = vmatpush.msrb.mxu3 %v10284_v43 }
0x17c2   : > { %v4368_v46 = vpop.f32.mrf.mxu0 }
0x17c3   : > { %v4384_v24 = vmul.f32 0.11111111, %v4368_v46 }
0x17c5   : > { %v4398_v47 = vadd.f32 %v4384_v24, %v9841_v7  ;;  %7188 = vmatmul.msk.f32.gmra.mxu3 %vm357_vm8, %v4384_v24 }
0x17ca   : > { %v4509_v8 = vpop.f32.mrf.mxu0 }
0x17cb   : > { %v4608_v12 = vmul.f32 0.1, %v4509_v8 }
0x17cd   : > { %v4622_v13 = vadd.f32 %v4608_v12, %v9845_v33  ;;  %7199 = vmatmul.msk.f32.vlgmr.msra.gmra.mxu3 %vm357_vm8, %v4608_v12 }
0x17ce   : > { %7222 = vmatpush.msk.msra.mxu3 %vm333_vm1, %v9038_v61 }
0x17d0   : > { %4998 = vmatpush.msra.mxu3 %v9062_v50 }
0x17d2   : > { %v4512_v19 = vpop.f32.mrf.mxu0 }
0x17d3   : > { %v4609_v53 = vmul.f32 0.1, %v4512_v19 }
0x17d5   : > { %v4623_v43 = vadd.f32 %v4609_v53, %v9852_v45  ;;  %7200 = vmatmul.msk.f32.gmra.mxu3 %vm357_vm8, %v4609_v53 }
0x17da   : > { %v4653_v5 = vpop.f32.mrf.mxu0 }
0x17db   : > { %v4833_v0 = vmul.f32 0.09090909, %v4653_v5 }
0x17dd   : > { %v4847_v60 = vadd.f32 %v4833_v0, %v9856_v40  ;;  %7211 = vmatmul.msk.f32.vlgmr.msrb.gmra.mxu3 %vm357_vm8, %v4833_v0 }
0x17e2   : > { %v4656_v10 = vpop.f32.mrf.mxu0 }
0x17e3   : > { %v4834_v35 = vmul.f32 0.09090909, %v4656_v10 }
0x17e5   : > { %v4848_v41 = vadd.f32 %v4834_v35, %v9863_v2  ;;  %7212 = vmatmul.msk.f32.gmra.mxu3 %vm357_vm8, %v4834_v35 }
0x17ea   : > { %v4769_v61 = vpop.f32.mrf.mxu0 }
0x17eb   : > { %v4841_v50 = vmul.f32 0.09090909, %v4769_v61 }
0x17ed   : > { %v9910_v27 = vadd.f32 %v4841_v50, %v9867_v11  ;;  %7223 = vmatmul.msk.f32.vlgmr.msra.gmra.mxu3 %vm357_vm8, %v4841_v50 }
0x17f2   : > { %v4772_v23 = vpop.f32.mrf.mxu0 }
0x17f3   : > { %v4842_v16 = vmul.f32 0.09090909, %v4772_v23 }
0x17f5   : > { %v4856_v59 = vadd.f32 %v4842_v16, %v4625_v52  ;;  %7224 = vmatmul.msk.f32.gmra.mxu3 %vm357_vm8, %v4842_v16 }
0x17fa   : > { %v4913_v3 = vpop.f32.mrf.mxu0 }
0x17fb   : > { %v5066_v34 = vmul.f32 0.083333336, %v4913_v3 }
0x17fd   : > { %v5080_v54 = vadd.f32 %v5066_v34, %v9876_v30 }
0x1802   : > { %v4916_v36 = vpop.f32.mrf.mxu0 }
0x1803   : > { %v5067_v7 = vmul.f32 0.083333336, %v4916_v36 }
0x1805   : > { %v5081_v56 = vadd.f32 %v5067_v7, %v4850_v51 }
0x1807   : > { %7234 = vmatpush.msk.msrb.mxu3 %vm333_vm1, %v5081_v56 }
0x1809   : > { %5146 = vmatpush.msrb.mxu3 %v5080_v54 }
0x180a   : > { %v5029_v33 = vpop.f32.mrf.mxu0  ;;  %7235 = vmatmul.msk.f32.vlgmr.msrb.gmra.mxu3 %vm357_vm8, %v5080_v54 }
0x180b   : > { %v5074_v57 = vmul.f32 0.083333336, %v5029_v33 }
0x180d   : > { %v5088_v18 = vadd.f32 %v5074_v57, %v9882_v22 }
0x1812   : > { %v5032_v21 = vpop.f32.mrf.mxu0  ;;  %7236 = vmatmul.msk.f32.gmra.mxu3 %vm357_vm8, %v5081_v56 }
0x1813   : > { %v5075_v45 = vmul.f32 0.083333336, %v5032_v21 }
0x1815   : > { %v5089_v32 = vadd.f32 %v5075_v45, %v4858_v39 }
0x1817   : > { %7246 = vmatpush.msk.msra.mxu3 %vm333_vm1, %v5089_v32 }
0x1819   : > { %5270 = vmatpush.msra.mxu3 %v5088_v18 }
0x181a   : > { %7247 = vmatmul.msk.f32.vlgmr.msra.gmra.mxu3 %vm357_vm8, %v5088_v18 }
0x1822   : > { %7248 = vmatmul.msk.f32.gmra.mxu3 %vm357_vm8, %v5089_v32 }
0x1827   : > { %v5179_v40 = vpop.f32.mrf.mxu0 }
0x182f   : > { %v5182_v62 = vpop.f32.mrf.mxu0 }
0x1830   : > { %7258 = vmatpush.msk.msrb.mxu3 %vm333_vm1, %v5182_v62 }
0x1832   : > { %5394 = vmatpush.msrb.mxu3 %v5179_v40 }
0x1833   : > { %7259 = vmatmul.msk.f32.vlgmr.msrb.gmra.mxu3 %vm357_vm8, %v5179_v40 }
0x183b   : > { %7260 = vmatmul.msk.f32.gmra.mxu3 %vm357_vm8, %v5182_v62 }
0x1840   : > { %v4596_v37 = vpop.f32.mrf.mxu3 }
0x1841   : > { %v4614_v2 = vmul.f32 0.1, %v4596_v37 }
0x1843   : > { %v4628_v31 = vadd.f32 %v4614_v2, %v4397_v14  ;;  %7208 = vmatmul.msk.f32.vlgmr.msrb.gmra.mxu2 %vm357_vm8, %v4614_v2 }
0x1848   : > { %v4599_v55 = vpop.f32.mrf.mxu3 }
0x1849   : > { %v4615_v11 = vmul.f32 0.1, %v4599_v55 }
0x184b   : > { %v4629_v38 = vadd.f32 %v4615_v11, %v4398_v47  ;;  %7209 = vmatmul.msk.f32.gmra.mxu2 %vm357_vm8, %v4615_v11 }
0x1850   : > { %v4740_v4 = vpop.f32.mrf.mxu3 }
0x1851   : > { %v4839_v52 = vmul.f32 0.09090909, %v4740_v4 }
0x1853   : > { %v4853_v17 = vadd.f32 %v4839_v52, %v4622_v13  ;;  %7220 = vmatmul.msk.f32.vlgmr.msra.gmra.mxu2 %vm357_vm8, %v4839_v52 }
0x1858   : > { %v4743_v1 = vpop.f32.mrf.mxu3 }
0x1859   : > { %v4840_v30 = vmul.f32 0.09090909, %v4743_v1 }
0x185b   : > { %v4854_v15 = vadd.f32 %v4840_v30, %v4623_v43  ;;  %7221 = vmatmul.msk.f32.gmra.mxu2 %vm357_vm8, %v4840_v30 }
0x1860   : > { %v4884_v63 = vpop.f32.mrf.mxu3 }
0x1861   : > { %v5064_v25 = vmul.f32 0.083333336, %v4884_v63 }
0x1863   : > { %v5078_v49 = vadd.f32 %v5064_v25, %v4847_v60 }
0x1868   : > { %v4887_v51 = vpop.f32.mrf.mxu3 }
0x1869   : > { %v5065_v29 = vmul.f32 0.083333336, %v4887_v51 }
0x186b   : > { %v5079_v22 = vadd.f32 %v5065_v29, %v4848_v41 }
0x186d   : > { %7231 = vmatpush.msk.msrb.mxu2 %vm333_vm1, %v5079_v22 }
0x186f   : > { %5115 = vmatpush.msrb.mxu2 %v5078_v49 }
0x1870   : > { %v5000_v6 = vpop.f32.mrf.mxu3  ;;  %7232 = vmatmul.msk.f32.vlgmr.msrb.gmra.mxu2 %vm357_vm8, %v5078_v49 }
0x1871   : > { %v5072_v9 = vmul.f32 0.083333336, %v5000_v6 }
0x1873   : > { %v5086_v26 = vadd.f32 %v5072_v9, %v9910_v27 }
0x1878   : > { %v5003_v39 = vpop.f32.mrf.mxu3  ;;  %7233 = vmatmul.msk.f32.gmra.mxu2 %vm357_vm8, %v5079_v22 }
0x1879   : > { %v5073_v20 = vmul.f32 0.083333336, %v5003_v39 }
0x187b   : > { %v5087_v42 = vadd.f32 %v5073_v20, %v4856_v59 }
0x187d   : > { %7243 = vmatpush.msk.msra.mxu2 %vm333_vm1, %v5087_v42 }
0x187f   : > { %5239 = vmatpush.msra.mxu2 %v5086_v26 }
0x1880   : > { %7244 = vmatmul.msk.f32.vlgmr.msra.gmra.mxu2 %vm357_vm8, %v5086_v26 }
0x1888   : > { %7245 = vmatmul.msk.f32.gmra.mxu2 %vm357_vm8, %v5087_v42 }
0x188d   : > { %v5148_v58 = vpop.f32.mrf.mxu3 }
0x1895   : > { %v5151_v44 = vpop.f32.mrf.mxu3 }
0x1896   : > { %7255 = vmatpush.msk.msrb.mxu2 %vm333_vm1, %v5151_v44 }
0x1898   : > { %5363 = vmatpush.msrb.mxu2 %v5148_v58 }
0x1899   : > { %7256 = vmatmul.msk.f32.vlgmr.msrb.gmra.mxu2 %vm357_vm8, %v5148_v58 }
0x189d   : > { %v5272_v28 = vpop.f32.mrf.mxu3 }
0x18a1   : > { %7257 = vmatmul.msk.f32.gmra.mxu2 %vm357_vm8, %v5151_v44 }
0x18a5   : > { %v5275_v48 = vpop.f32.mrf.mxu3 }
0x18a6   : > { %7267 = vmatpush.msk.msra.mxu2 %vm333_vm1, %v5275_v48 }
0x18a8   : > { %5487 = vmatpush.msra.mxu2 %v5272_v28 }
0x18a9   : > { %7268 = vmatmul.msk.f32.vlgmr.msra.gmra.mxu2 %vm357_vm8, %v5272_v28 }
0x18b1   : > { %7269 = vmatmul.msk.f32.gmra.mxu2 %vm357_vm8, %v5275_v48 }
0x18b6   : > { %v5396_v14 = vpop.f32.mrf.mxu3 }
0x18be   : > { %v5399_v46 = vpop.f32.mrf.mxu3 }
0x18bf   : > { %7279 = vmatpush.msk.msrb.mxu2 %vm333_vm1, %v5399_v46 }
0x18c1   : > { %5611 = vmatpush.msrb.mxu2 %v5396_v14 }
0x18c2   : > { %7280 = vmatmul.msk.f32.vlgmr.msrb.gmra.mxu2 %vm357_vm8, %v5396_v14 }
0x18c6   : > { %v4827_v24 = vpop.f32.mrf.mxu2 }
0x18c7   : > { %v4845_v47 = vmul.f32 0.09090909, %v4827_v24 }
0x18c9   : > { %v4859_v8 = vadd.f32 %v4845_v47, %v4628_v31  ;;  %7229 = vmatmul.msk.f32.vlgmr.msrb.gmra.mxu1 %vm357_vm8, %v4845_v47 }
0x18ca   : > { %7281 = vmatmul.msk.f32.gmra.mxu2 %vm357_vm8, %v5399_v46 }
0x18ce   : > { %v4830_v12 = vpop.f32.mrf.mxu2 }
0x18cf   : > { %v4846_v13 = vmul.f32 0.09090909, %v4830_v12 }
0x18d1   : > { %v4860_v19 = vadd.f32 %v4846_v13, %v4629_v38  ;;  %7230 = vmatmul.msk.f32.gmra.mxu1 %vm357_vm8, %v4846_v13 }
0x18d6   : > { %v4971_v53 = vpop.f32.mrf.mxu2 }
0x18d7   : > { %v5070_v5 = vmul.f32 0.083333336, %v4971_v53 }
0x18d9   : > { %v5084_v10 = vadd.f32 %v5070_v5, %v4853_v17 }
0x18de   : > { %v4974_v43 = vpop.f32.mrf.mxu2 }
0x18df   : > { %v5071_v0 = vmul.f32 0.083333336, %v4974_v43 }
0x18e1   : > { %v5085_v60 = vadd.f32 %v5071_v0, %v4854_v15 }
0x18e3   : > { %7240 = vmatpush.msk.msra.mxu1 %vm333_vm1, %v5085_v60 }
0x18e5   : > { %5208 = vmatpush.msra.mxu1 %v5084_v10 }
0x18e6   : > { %7241 = vmatmul.msk.f32.vlgmr.msra.gmra.mxu1 %vm357_vm8, %v5084_v10 }
0x18ee   : > { %7242 = vmatmul.msk.f32.gmra.mxu1 %vm357_vm8, %v5085_v60 }
0x18f3   : > { %v5117_v35 = vpop.f32.mrf.mxu2 }
0x18fb   : > { %v5120_v41 = vpop.f32.mrf.mxu2 }
0x18fc   : > { %7252 = vmatpush.msk.msrb.mxu1 %vm333_vm1, %v5120_v41 }
0x18fe   : > { %5332 = vmatpush.msrb.mxu1 %v5117_v35 }
0x18ff   : > { %7253 = vmatmul.msk.f32.vlgmr.msrb.gmra.mxu1 %vm357_vm8, %v5117_v35 }
0x1903   : > { %v5241_v61 = vpop.f32.mrf.mxu2 }
0x1907   : > { %7254 = vmatmul.msk.f32.gmra.mxu1 %vm357_vm8, %v5120_v41 }
0x190b   : > { %v5244_v50 = vpop.f32.mrf.mxu2 }
0x190c   : > { %7264 = vmatpush.msk.msra.mxu1 %vm333_vm1, %v5244_v50 }
0x190e   : > { %5456 = vmatpush.msra.mxu1 %v5241_v61 }
0x190f   : > { %7265 = vmatmul.msk.f32.vlgmr.msra.gmra.mxu1 %vm357_vm8, %v5241_v61 }
0x1917   : > { %7266 = vmatmul.msk.f32.gmra.mxu1 %vm357_vm8, %v5244_v50 }
0x191c   : > { %v5365_v27 = vpop.f32.mrf.mxu2 }
0x1924   : > { %v5368_v23 = vpop.f32.mrf.mxu2 }
0x1925   : > { %7276 = vmatpush.msk.msrb.mxu1 %vm333_vm1, %v5368_v23 }
0x1927   : > { %5580 = vmatpush.msrb.mxu1 %v5365_v27 }
0x1928   : > { %7277 = vmatmul.msk.f32.vlgmr.msrb.gmra.mxu1 %vm357_vm8, %v5365_v27 }
0x192c   : > { %v5489_v16 = vpop.f32.mrf.mxu2 }
0x1930   : > { %7278 = vmatmul.msk.f32.gmra.mxu1 %vm357_vm8, %v5368_v23 }
0x1934   : > { %v5492_v59 = vpop.f32.mrf.mxu2 }
0x1935   : > { %7288 = vmatpush.msk.msra.mxu1 %vm333_vm1, %v5492_v59 }
0x1937   : > { %5704 = vmatpush.msra.mxu1 %v5489_v16 }
0x1938   : > { %7289 = vmatmul.msk.f32.vlgmr.msra.gmra.mxu1 %vm357_vm8, %v5489_v16 }
0x1940   : > { %7290 = vmatmul.msk.f32.gmra.mxu1 %vm357_vm8, %v5492_v59 }
0x1945   : > { %v5613_v3 = vpop.f32.mrf.mxu2 }
0x1946   : > { %v5058_v36 = vpop.f32.mrf.mxu1 }
0x1947   : > { %v5076_v56 = vmul.f32 0.083333336, %v5058_v36 }
0x1949   : > { %v5090_v21 = vadd.f32 %v5076_v56, %v4859_v8 }
0x194d   : > { %v5616_v34 = vpop.f32.mrf.mxu2 }
0x194e   : > { %v5061_v7 = vpop.f32.mrf.mxu1  ;;  %7300 = vmatpush.msk.msrb.mxu1 %vm333_vm1, %v5616_v34 }
0x194f   : > { %v5077_v54 = vmul.f32 0.083333336, %v5061_v7 }
0x1950   : > { %5828 = vmatpush.msrb.mxu1 %v5613_v3 }
0x1951   : > { %v5091_v33 = vadd.f32 %v5077_v54, %v4860_v19  ;;  %7301 = vmatmul.msk.f32.vlgmr.msrb.gmra.mxu1 %vm357_vm8, %v5613_v3 }
0x1953   : > { %7249 = vmatpush.msk.msrb.mxu0 %vm333_vm1, %v5091_v33 }
0x1955   : > { %5301 = vmatpush.msrb.mxu0 %v5090_v21 }
0x1956   : > { %7250 = vmatmul.msk.f32.vlgmr.msrb.gmra.mxu0 %vm357_vm8, %v5090_v21 }
0x1959   : > { %7302 = vmatmul.msk.f32.gmra.mxu1 %vm357_vm8, %v5616_v34 }
0x195e   : > { %7251 = vmatmul.msk.f32.gmra.mxu0 %vm357_vm8, %v5091_v33 }
0x1963   : > { %v5210_v57 = vpop.f32.mrf.mxu1 }
0x196b   : > { %v5213_v45 = vpop.f32.mrf.mxu1 }
0x196c   : > { %7261 = vmatpush.msk.msra.mxu0 %vm333_vm1, %v5213_v45 }
0x196e   : > { %5425 = vmatpush.msra.mxu0 %v5210_v57 }
0x196f   : > { %7262 = vmatmul.msk.f32.vlgmr.msra.gmra.mxu0 %vm357_vm8, %v5210_v57 }
0x1977   : > { %7263 = vmatmul.msk.f32.gmra.mxu0 %vm357_vm8, %v5213_v45 }
0x197c   : > { %v5334_v32 = vpop.f32.mrf.mxu1 }
0x1984   : > { %v5337_v18 = vpop.f32.mrf.mxu1 }
0x1985   : > { %7273 = vmatpush.msk.msrb.mxu0 %vm333_vm1, %v5337_v18 }
0x1987   : > { %5549 = vmatpush.msrb.mxu0 %v5334_v32 }
0x1988   : > { %7274 = vmatmul.msk.f32.vlgmr.msrb.gmra.mxu0 %vm357_vm8, %v5334_v32 }
0x198c   : > { %v5458_v40 = vpop.f32.mrf.mxu1 }
0x1990   : > { %7275 = vmatmul.msk.f32.gmra.mxu0 %vm357_vm8, %v5337_v18 }
0x1994   : > { %v5461_v62 = vpop.f32.mrf.mxu1 }
0x1995   : > { %7285 = vmatpush.msk.msra.mxu0 %vm333_vm1, %v5461_v62 }
0x1997   : > { %5673 = vmatpush.msra.mxu0 %v5458_v40 }
0x1998   : > { %7286 = vmatmul.msk.f32.vlgmr.msra.gmra.mxu0 %vm357_vm8, %v5458_v40 }
0x19a0   : > { %7287 = vmatmul.msk.f32.gmra.mxu0 %vm357_vm8, %v5461_v62 }
0x19a5   : > { %v5582_v37 = vpop.f32.mrf.mxu1 }
0x19ad   : > { %v5585_v2 = vpop.f32.mrf.mxu1 }
0x19ae   : > { %7297 = vmatpush.msk.msrb.mxu0 %vm333_vm1, %v5585_v2 }
0x19b0   : > { %5797 = vmatpush.msrb.mxu0 %v5582_v37 }
0x19b1   : > { %7298 = vmatmul.msk.f32.vlgmr.msrb.gmra.mxu0 %vm357_vm8, %v5582_v37 }
0x19b5   : > { %v5706_v31 = vpop.f32.mrf.mxu1 }
0x19b9   : > { %7299 = vmatmul.msk.f32.gmra.mxu0 %vm357_vm8, %v5585_v2 }
0x19bd   : > { %v5709_v55 = vpop.f32.mrf.mxu1 }
0x19be   : > { %7309 = vmatpush.msk.msra.mxu0 %vm333_vm1, %v5709_v55 }
0x19c0   : > { %5921 = vmatpush.msra.mxu0 %v5706_v31 }
0x19c1   : > { %7310 = vmatmul.msk.f32.vlgmr.msra.gmra.mxu0 %vm357_vm8, %v5706_v31 }
0x19c9   : > { %7311 = vmatmul.msk.f32.gmra.mxu0 %vm357_vm8, %v5709_v55  ;;  %v316_v55 = vld [vmem:[%s10168_s5 + $0x8] sm:$0xff] }
0x19ce   : > { %v5830_v11 = vpop.f32.mrf.mxu1 }
0x19d3   : > { %v5303_v38 = vpop.f32.mrf.mxu0 }
0x19d6   : > { %v5833_v4 = vpop.f32.mrf.mxu1 }
0x19d7   : > { %7321 = vmatpush.msk.msrb.mxu0 %vm333_vm1, %v5833_v4 }
0x19d9   : > { %6045 = vmatpush.msrb.mxu0 %v5830_v11 }
0x19da   : > { %7322 = vmatmul.msk.f32.vlgmr.msrb.gmra.mxu0 %vm357_vm8, %v5830_v11 }
0x19db   : > { %v5306_v52 = vpop.f32.mrf.mxu0 }
0x19dc   : > { %7270 = vmatpush.msk.msra.mxu3 %vm333_vm1, %v5306_v52 }
0x19de   : > { %5518 = vmatpush.msra.mxu3 %v5303_v38 }
0x19df   : > { %7271 = vmatmul.msk.f32.vlgmr.msra.gmra.mxu3 %vm357_vm8, %v5303_v38 }
0x19e2   : > { %7323 = vmatmul.msk.f32.gmra.mxu0 %vm357_vm8, %v5833_v4 }
0x19e7   : > { %7272 = vmatmul.msk.f32.gmra.mxu3 %vm357_vm8, %v5306_v52  ;;  %v315_v52 = vld [vmem:[%s10168_s5] sm:$0xff] }
0x19ec   : > { %v5427_v17 = vpop.f32.mrf.mxu0 }
0x19f4   : > { %v5430_v1 = vpop.f32.mrf.mxu0 }
0x19f5   : > { %7282 = vmatpush.msk.msrb.mxu3 %vm333_vm1, %v5430_v1 }
0x19f7   : > { %5642 = vmatpush.msrb.mxu3 %v5427_v17 }
0x19f8   : > { %7283 = vmatmul.msk.f32.vlgmr.msrb.gmra.mxu3 %vm357_vm8, %v5427_v17  ;;  %v317_v17 = vld [vmem:[%s10168_s5 + $0x10] sm:$0xff] }
0x1a00   : > { %7284 = vmatmul.msk.f32.gmra.mxu3 %vm357_vm8, %v5430_v1  ;;  %v318_v1 = vld [vmem:[%s10168_s5 + $0x18] sm:$0xff] }
0x1a05   : > { %v5551_v30 = vpop.f32.mrf.mxu0 }
0x1a0d   : > { %v5554_v15 = vpop.f32.mrf.mxu0 }
0x1a0e   : > { %7294 = vmatpush.msk.msra.mxu3 %vm333_vm1, %v5554_v15 }
0x1a10   : > { %5766 = vmatpush.msra.mxu3 %v5551_v30 }
0x1a11   : > { %7295 = vmatmul.msk.f32.vlgmr.msra.gmra.mxu3 %vm357_vm8, %v5551_v30  ;;  %v6617_v30 = vrot.slane %v317_v17, 2 }
0x1a15   : > { %v5675_v63 = vpop.f32.mrf.mxu0 }
0x1a19   : > { %7296 = vmatmul.msk.f32.gmra.mxu3 %vm357_vm8, %v5554_v15  ;;  %v6649_v15 = vrot.slane %v318_v1, 4 }
0x1a1d   : > { %v5678_v51 = vpop.f32.mrf.mxu0 }
0x1a1e   : > { %7306 = vmatpush.msk.msrb.mxu3 %vm333_vm1, %v5678_v51 }
0x1a20   : > { %5890 = vmatpush.msrb.mxu3 %v5675_v63 }
0x1a21   : > { %7307 = vmatmul.msk.f32.vlgmr.msrb.gmra.mxu3 %vm357_vm8, %v5675_v63  ;;  %v323_v63 = vld [vmem:[%s10168_s5 + $0x40] sm:$0xff] }
0x1a29   : > { %7308 = vmatmul.msk.f32.gmra.mxu3 %vm357_vm8, %v5678_v51  ;;  %v6616_v51 = vrot.slane %v316_v55, 2 }
0x1a2e   : > { %v5799_v25 = vpop.f32.mrf.mxu0 }
0x1a36   : > { %v5802_v29 = vpop.f32.mrf.mxu0 }
0x1a37   : > { %7318 = vmatpush.msk.msra.mxu3 %vm333_vm1, %v5802_v29 }
0x1a39   : > { %6014 = vmatpush.msra.mxu3 %v5799_v25 }
0x1a3a   : > { %7319 = vmatmul.msk.f32.vlgmr.msra.gmra.mxu3 %vm357_vm8, %v5799_v25  ;;  %v322_v25 = vld [vmem:[%s10168_s5 + $0x38] sm:$0xff] }
0x1a3e   : > { %v5923_v22 = vpop.f32.mrf.mxu0 }
0x1a42   : > { %7320 = vmatmul.msk.f32.gmra.mxu3 %vm357_vm8, %v5802_v29  ;;  %v6769_v29 = vrot.slane %v323_v63, 4 }
0x1a46   : > { %v5926_v49 = vpop.f32.mrf.mxu0 }
0x1a47   : > { %7330 = vmatpush.msk.msrb.mxu3 %vm333_vm1, %v5926_v49 }
0x1a49   : > { %6138 = vmatpush.msrb.mxu3 %v5923_v22 }
0x1a4a   : > { %7331 = vmatmul.msk.f32.vlgmr.msrb.gmra.mxu3 %vm357_vm8, %v5923_v22  ;;  %v6648_v22 = vrot.slane %v317_v17, 4 }
0x1a52   : > { %7332 = vmatmul.msk.f32.gmra.mxu3 %vm357_vm8, %v5926_v49  ;;  %v6738_v49 = vrot.slane %v322_v25, 2 }
0x1a57   : > { %v6047_v6 = vpop.f32.mrf.mxu0 }
0x1a5f   : > { %v6050_v39 = vpop.f32.mrf.mxu0 }
0x1a60   : > { %7342 = vmatpush.msk.msra.mxu3 %vm333_vm1, %v6050_v39 }
0x1a62   : > { %v5520_v9 = vpop.f32.mrf.mxu3  ;;  %6262 = vmatpush.msra.mxu3 %v6047_v6 }
0x1a63   : > { %7343 = vmatmul.msk.f32.vlgmr.msra.gmra.mxu3 %vm357_vm8, %v6047_v6  ;;  %v6618_v6 = vsel %vm6615_vm11, %v6616_v51, %v6617_v30 }
0x1a6a   : > { %v5523_v20 = vpop.f32.mrf.mxu3 }
0x1a6b   : > { %7291 = vmatpush.msk.msra.mxu2 %vm333_vm1, %v5523_v20  ;;  %7344 = vmatmul.msk.f32.gmra.mxu3 %vm357_vm8, %v6050_v39  ;;  %v6768_v39 = vrot.slane %v322_v25, 4 }
0x1a6d   : > { %5735 = vmatpush.msra.mxu2 %v5520_v9 }
0x1a6e   : > { %7292 = vmatmul.msk.f32.vlgmr.msra.gmra.mxu2 %vm357_vm8, %v5520_v9  ;;  %v6650_v9 = vsel %vm6647_vm0, %v6648_v22, %v6649_v15 }
0x1a76   : > { %7293 = vmatmul.msk.f32.gmra.mxu2 %vm357_vm8, %v5523_v20  ;;  %v319_v20 = vld [vmem:[%s10168_s5 + $0x20] sm:$0xff] }
0x1a7b   : > { %v5644_v42 = vpop.f32.mrf.mxu3 }
0x1a83   : > { %v5647_v26 = vpop.f32.mrf.mxu3 }
0x1a84   : > { %7303 = vmatpush.msk.msrb.mxu2 %vm333_vm1, %v5647_v26 }
0x1a86   : > { %5859 = vmatpush.msrb.mxu2 %v5644_v42 }
0x1a87   : > { %7304 = vmatmul.msk.f32.vlgmr.msrb.gmra.mxu2 %vm357_vm8, %v5644_v42  ;;  %v6770_v42 = vsel %vm6647_vm0, %v6768_v39, %v6769_v29 }
0x1a8f   : > { %7305 = vmatmul.msk.f32.gmra.mxu2 %vm357_vm8, %v5647_v26  ;;  %v6680_v26 = vrot.slane %v319_v20, 6 }
0x1a94   : > { %v5768_v58 = vpop.f32.mrf.mxu3 }
0x1a9c   : > { %v5771_v44 = vpop.f32.mrf.mxu3 }
0x1a9d   : > { %7315 = vmatpush.msk.msra.mxu2 %vm333_vm1, %v5771_v44 }
0x1a9f   : > { %5983 = vmatpush.msra.mxu2 %v5768_v58 }
0x1aa0   : > { %7316 = vmatmul.msk.f32.vlgmr.msra.gmra.mxu2 %vm357_vm8, %v5768_v58  ;;  %v6679_v58 = vrot.slane %v318_v1, 6 }
0x1aa4   : > { %v5892_v28 = vpop.f32.mrf.mxu3 }
0x1aa8   : > { %7317 = vmatmul.msk.f32.gmra.mxu2 %vm357_vm8, %v5771_v44  ;;  %v321_v44 = vld [vmem:[%s10168_s5 + $0x30] sm:$0xff] }
0x1aac   : > { %v5895_v48 = vpop.f32.mrf.mxu3 }
0x1aad   : > { %7327 = vmatpush.msk.msrb.mxu2 %vm333_vm1, %v5895_v48 }
0x1aaf   : > { %6107 = vmatpush.msrb.mxu2 %v5892_v28 }
0x1ab0   : > { %7328 = vmatmul.msk.f32.vlgmr.msrb.gmra.mxu2 %vm357_vm8, %v5892_v28  ;;  %v320_v28 = vld [vmem:[%s10168_s5 + $0x28] sm:$0xff] }
0x1ab8   : > { %7329 = vmatmul.msk.f32.gmra.mxu2 %vm357_vm8, %v5895_v48  ;;  %v6737_v48 = vrot.slane %v321_v44, 2 }
0x1abd   : > { %v6016_v14 = vpop.f32.mrf.mxu3 }
0x1ac5   : > { %v6019_v46 = vpop.f32.mrf.mxu3 }
0x1ac6   : > { %7339 = vmatpush.msk.msra.mxu2 %vm333_vm1, %v6019_v46 }
0x1ac8   : > { %6231 = vmatpush.msra.mxu2 %v6016_v14 }
0x1ac9   : > { %7340 = vmatmul.msk.f32.vlgmr.msra.gmra.mxu2 %vm357_vm8, %v6016_v14  ;;  %v6681_v14 = vsel %vm333_vm1, %v6679_v58, %v6680_v26 }
0x1acd   : > { %v6140_v24 = vpop.f32.mrf.mxu3 }
0x1ad1   : > { %7341 = vmatmul.msk.f32.gmra.mxu2 %vm357_vm8, %v6019_v46  ;;  %v6739_v46 = vsel %vm6615_vm11, %v6737_v48, %v6738_v49 }
0x1ad5   : > { %v6143_v47 = vpop.f32.mrf.mxu3 }
0x1ad6   : > { %7351 = vmatpush.msk.msrb.mxu2 %vm333_vm1, %v6143_v47 }
0x1ad8   : > { %6355 = vmatpush.msrb.mxu2 %v6140_v24 }
0x1ad9   : > { %7352 = vmatmul.msk.f32.vlgmr.msrb.gmra.mxu2 %vm357_vm8, %v6140_v24  ;;  %v324_v24 = vld [vmem:[%s10168_s5 + $0x48] sm:$0xff] }
0x1ae1   : > { %7353 = vmatmul.msk.f32.gmra.mxu2 %vm357_vm8, %v6143_v47  ;;  %v6800_v47 = vrot.slane %v324_v24, 6 }
0x1ae6   : > { %v6264_v33 = vpop.f32.mrf.mxu3 }
0x1aee   : > { %v6267_v21 = vpop.f32.mrf.mxu3 }
0x1af1   : > { %v5737_v8 = vpop.f32.mrf.mxu2 }
0x1af9   : > { %v5740_v12 = vpop.f32.mrf.mxu2 }
0x1afa   : > { %7312 = vmatpush.msk.msra.mxu1 %vm333_vm1, %v5740_v12 }
0x1afc   : > { %5952 = vmatpush.msra.mxu1 %v5737_v8 }
0x1afd   : > { %7313 = vmatmul.msk.f32.vlgmr.msra.gmra.mxu1 %vm357_vm8, %v5737_v8  ;;  %v6799_v8 = vrot.slane %v323_v63, 6 }
0x1b05   : > { %7314 = vmatmul.msk.f32.gmra.mxu1 %vm357_vm8, %v5740_v12  ;;  %v326_v12 = vld [vmem:[%s10168_s5 + $0x58] sm:$0xff] }
0x1b0a   : > { %v5861_v13 = vpop.f32.mrf.mxu2 }
0x1b12   : > { %v5864_v19 = vpop.f32.mrf.mxu2 }
0x1b13   : > { %7324 = vmatpush.msk.msrb.mxu1 %vm333_vm1, %v5864_v19 }
0x1b15   : > { %6076 = vmatpush.msrb.mxu1 %v5861_v13 }
0x1b16   : > { %7325 = vmatmul.msk.f32.vlgmr.msrb.gmra.mxu1 %vm357_vm8, %v5861_v13  ;;  %v327_v13 = vld [vmem:[%s10168_s5 + $0x60] sm:$0xf] }
0x1b1e   : > { %7326 = vmatmul.msk.f32.gmra.mxu1 %vm357_vm8, %v5864_v19 }
0x1b23   : > { %v5985_v53 = vpop.f32.mrf.mxu2 }
0x1b2b   : > { %v5988_v43 = vpop.f32.mrf.mxu2 }
0x1b2c   : > { %7336 = vmatpush.msk.msra.mxu1 %vm333_vm1, %v5988_v43 }
0x1b2e   : > { %6200 = vmatpush.msra.mxu1 %v5985_v53 }
0x1b2f   : > { %7337 = vmatmul.msk.f32.vlgmr.msra.gmra.mxu1 %vm357_vm8, %v5985_v53  ;;  %v6858_v53 = vrot.slane %v327_v13, 2 }
0x1b33   : > { %v6109_v5 = vpop.f32.mrf.mxu2 }
0x1b37   : > { %7338 = vmatmul.msk.f32.gmra.mxu1 %vm357_vm8, %v5988_v43  ;;  %v6857_v43 = vrot.slane %v326_v12, 2 }
0x1b3b   : > { %v6112_v0 = vpop.f32.mrf.mxu2 }
0x1b3c   : > { %7348 = vmatpush.msk.msrb.mxu1 %vm333_vm1, %v6112_v0 }
0x1b3e   : > { %6324 = vmatpush.msrb.mxu1 %v6109_v5 }
0x1b3f   : > { %7349 = vmatmul.msk.f32.vlgmr.msrb.gmra.mxu1 %vm357_vm8, %v6109_v5 }
0x1b47   : > { %7350 = vmatmul.msk.f32.gmra.mxu1 %vm357_vm8, %v6112_v0 }
0x1b4c   : > { %v6233_v60 = vpop.f32.mrf.mxu2 }
0x1b54   : > { %v6236_v10 = vpop.f32.mrf.mxu2 }
0x1b5c   : > { %v6357_v35 = vpop.f32.mrf.mxu2 }
0x1b64   : > { %v6360_v41 = vpop.f32.mrf.mxu2 }
0x1b65   : > { %7363 = vmatpush.msk.msra.mxu2 %vm333_vm1, %v6360_v41  ;;  %v6859_v41 = vsel %vm6615_vm11, %v6857_v43, %v6858_v53 }
0x1b67   : > { %6482 = vmatpush.msra.mxu2 %v6357_v35  ;;  %v325_v35 = vld [vmem:[%s10168_s5 + $0x50] sm:$0xff] }
0x1b69   : > { %7375 = vmatpush.msk.msrb.mxu2 %vm333_vm1, %v316_v55 }
0x1b6b   : > { %6607 = vmatpush.msrb.mxu2 %v315_v52 }
0x1b7a   : > { %v5954_v61 = vpop.f32.mrf.mxu1 }
0x1b82   : > { %v5957_v50 = vpop.f32.mrf.mxu1 }
0x1b83   : > { %7333 = vmatpush.msk.msra.mxu0 %vm333_vm1, %v5957_v50 }
0x1b85   : > { %6169 = vmatpush.msra.mxu0 %v5954_v61 }
0x1b86   : > { %7334 = vmatmul.msk.f32.vlgmr.msra.gmra.mxu0 %vm357_vm8, %v5954_v61 }
0x1b8e   : > { %7335 = vmatmul.msk.f32.gmra.mxu0 %vm357_vm8, %v5957_v50 }
0x1b93   : > { %v6078_v27 = vpop.f32.mrf.mxu1 }
0x1b9b   : > { %v6081_v23 = vpop.f32.mrf.mxu1 }
0x1b9c   : > { %7345 = vmatpush.msk.msrb.mxu0 %vm333_vm1, %v6081_v23 }
0x1b9e   : > { %6293 = vmatpush.msrb.mxu0 %v6078_v27 }
0x1b9f   : > { %7346 = vmatmul.msk.f32.vlgmr.msrb.gmra.mxu0 %vm357_vm8, %v6078_v27 }
0x1ba0   : > { %7357 = vmatpush.msk.msra.mxu0 %vm333_vm1, %v6236_v10  ;;  %v6801_v10 = vsel %vm333_vm1, %v6799_v8, %v6800_v47 }
0x1ba2   : > { %6418 = vmatpush.msra.mxu0 %v6233_v60 }
0x1ba7   : > { %7347 = vmatmul.msk.f32.gmra.mxu0 %vm357_vm8, %v6081_v23 }
0x1bac   : > { %v6202_v16 = vpop.f32.mrf.mxu1 }
0x1baf   : > { %7358 = vmatmul.msk.f32.vlgmr.msra.gmra.mxu0 %vm357_vm8, %v6202_v16 }
0x1bb4   : > { %v6205_v59 = vpop.f32.mrf.mxu1 }
0x1bb7   : > { %7359 = vmatmul.msk.f32.gmra.mxu0 %vm357_vm8, %v6205_v59 }
0x1bbc   : > { %v6326_v3 = vpop.f32.mrf.mxu1 }
0x1bbd   : > { %7364 = vmatmul.msk.f32.vlgmr.msra.gmra.mxu2 %vm357_vm8, %v6326_v3  ;;  %v328_v3 = vld [vmem:[%s10169_s6] sm:$0x1] }
0x1bbe   : > { %7381 = vmatpush.msk.msra.mxu2 %vm333_vm1, %v6680_v26 }
0x1bc0   : > { %6702 = vmatpush.msra.mxu2 %v6681_v14 }
0x1bc4   : > { %v6329_v36 = vpop.f32.mrf.mxu1 }
0x1bc5   : > { %7365 = vmatmul.msk.f32.gmra.mxu2 %vm357_vm8, %v6329_v36 }
0x1c03   : > { %v6171_v34 = vpop.f32.mrf.mxu0 }
0x1c0b   : > { %v6174_v7 = vpop.f32.mrf.mxu0 }
0x1c0c   : > { %7354 = vmatpush.msk.msrb.mxu3 %vm333_vm1, %v6174_v7 }
0x1c0e   : > { %6386 = vmatpush.msrb.mxu3 %v6171_v34 }
0x1c0f   : > { %7355 = vmatmul.msk.f32.vlgmr.msrb.gmra.mxu3 %vm357_vm8, %v6171_v34 }
0x1c17   : > { %7356 = vmatmul.msk.f32.gmra.mxu3 %vm357_vm8, %v6174_v7 }
0x1c1c   : > { %v6295_v56 = vpop.f32.mrf.mxu0 }
0x1c24   : > { %v6298_v54 = vpop.f32.mrf.mxu0 }
0x1c25   : > { %7360 = vmatpush.msk.msra.mxu1 %vm333_vm1, %v6298_v54 }
0x1c27   : > { %6450 = vmatpush.msra.mxu1 %v6295_v56 }
0x1c28   : > { %7361 = vmatmul.msk.f32.vlgmr.msra.gmra.mxu1 %vm357_vm8, %v6264_v33 }
0x1c2c   : > { %v6420_v37 = vpop.f32.mrf.mxu0 }
0x1c30   : > { %7362 = vmatmul.msk.f32.gmra.mxu1 %vm357_vm8, %v6267_v21 }
0x1c34   : > { %v6423_v2 = vpop.f32.mrf.mxu0 }
0x1c40   : > { %v6484_v32 = vpop.f32.mrf.mxu2 }
0x1c48   : > { %v6487_v18 = vpop.f32.mrf.mxu2 }
0x1c92   : > { %v6388_v57 = vpop.f32.mrf.mxu3 }
0x1c9a   : > { %v6391_v45 = vpop.f32.mrf.mxu3 }
0x1c9b   : > { %7369 = vmatpush.msk.msrb.mxu0 %vm333_vm1, %v6391_v45 }
0x1c9d   : > { %6546 = vmatpush.msrb.mxu0 %v6388_v57 }
0x1c9e   : > { %7370 = vmatmul.msk.f32.vlgmr.msrb.gmra.mxu0 %vm357_vm8, %v6484_v32 }
0x1c9f   : > { %7379 = vmatpush.msk.msra.mxu0 %vm333_vm1, %v6649_v15 }
0x1ca1   : > { %6671 = vmatpush.msra.mxu0 %v6650_v9 }
0x1ca3   : > { %7385 = vmatpush.msk.msrb.mxu0 %vm333_vm1, %v6738_v49 }
0x1ca5   : > { %v6452_v40 = vpop.f32.mrf.mxu1  ;;  %6760 = vmatpush.msrb.mxu0 %v6739_v46 }
0x1ca6   : > { %7371 = vmatmul.msk.f32.gmra.mxu0 %vm357_vm8, %v6487_v18 }
0x1cad   : > { %v6455_v62 = vpop.f32.mrf.mxu1 }
0x1cae   : > { %7366 = vmatpush.msk.msra.mxu3 %vm333_vm1, %v6455_v62 }
0x1cb0   : > { %6514 = vmatpush.msra.mxu3 %v6452_v40 }
0x1cb1   : > { %7367 = vmatmul.msk.f32.vlgmr.msra.gmra.mxu3 %vm357_vm8, %v6420_v37 }
0x1cb2   : > { %7377 = vmatpush.msk.msrb.mxu3 %vm333_vm1, %v6617_v30 }
0x1cb4   : > { %6639 = vmatpush.msrb.mxu3 %v6618_v6 }
0x1cb6   : > { %7383 = vmatpush.msk.msra.mxu3 %vm333_vm1, %v321_v44 }
0x1cb8   : > { %6729 = vmatpush.msra.mxu3 %v320_v28 }
0x1cb9   : > { %7368 = vmatmul.msk.f32.gmra.mxu3 %vm357_vm8, %v6423_v2 }
0x1d1b   : > { %v6548_v31 = vpop.f32.mrf.mxu0 }
0x1d23   : > { %v6551_v11 = vpop.f32.mrf.mxu0 }
0x1d24   : > { %7372 = vmatpush.msk.msrb.mxu1 %vm333_vm1, %v6551_v11 }
0x1d26   : > { %6578 = vmatpush.msrb.mxu1 %v6548_v31 }
0x1d28   : > { %7387 = vmatpush.msk.msra.mxu1 %vm333_vm1, %v6769_v29 }
0x1d2a   : > { %6791 = vmatpush.msra.mxu1 %v6770_v42 }
0x1d34   : > { %v6516_v38 = vpop.f32.mrf.mxu3 }
0x1d35   : > { %7373 = vmatmul.msk.f32.vlgmr.msrb.gmra.mxu1 %vm357_vm8, %v6516_v38 }
0x1d3c   : > { %v6519_v4 = vpop.f32.mrf.mxu3 }
0x1d3d   : > { %7374 = vmatmul.msk.f32.gmra.mxu1 %vm357_vm8, %v6519_v4 }
0x1db2   : > { %v6580_v19 = vpop.f32.mrf.mxu1 }
0x1db3   : > { %7376 = vmatmul.msk.f32.vlgmr.msrb.gmra.mxu2 %vm357_vm8, %v6580_v19  ;;  %v6613_v5 = vrot.slane %v6580_v19, 1  ;;  %v6645_v0 = vrot.slane %v6580_v19, 2  ;;  %v6766_v60 = vrot.slane %v6580_v19, 6  ;;  %v6677_v61 = vrot.slane %v6580_v19, 3 }
0x1db4   : > { %7389 = vmatpush.msk.msrb.mxu2 %vm333_vm1, %v6800_v47  ;;  %v6708_v50 = vrot.slane %v6580_v19, 4  ;;  %v6735_v27 = vrot.slane %v6580_v19, 5  ;;  %v6797_v16 = vrot.slane %v6580_v19, 7 }
0x1db5   : > { %7378 = vmatmul.msk.f32.vlgmr.msrb.gmra.mxu3 %vm357_vm8, %v6613_v5  ;;  %7380 = vmatmul.msk.f32.vlgmr.msra.gmra.mxu0 %vm357_vm8, %v6645_v0 }
0x1db6   : > { %7388 = vmatmul.msk.f32.vlgmr.msra.gmra.mxu1 %vm357_vm8, %v6766_v60  ;;  %6822 = vmatpush.msrb.mxu2 %v6801_v10 }
0x1db7   : > { %7391 = vmatpush.msk.msrb.mxu3 %vm333_vm1, %v326_v12  ;;  %7393 = vmatpush.msk.msra.mxu0 %vm333_vm1, %v6858_v53  ;;  %vm6886_vm1 = vcmask 73728  }
0x1db9   : > { %6849 = vmatpush.msrb.mxu3 %v325_v35  ;;  %6880 = vmatpush.msra.mxu0 %v6859_v41 }
0x1dba   : > { %v6583_v23 = vpop.f32.mrf.mxu1 }
0x1dbb   : > { %7382 = vmatmul.msk.f32.vlgmr.msra.gmra.mxu2 %vm357_vm8, %v6677_v61  ;;  %v6855_v59 = vrot.slane %v6583_v23, 1 }
0x1dbd   : > { %7384 = vmatmul.msk.f32.vlgmr.msra.gmra.mxu3 %vm357_vm8, %v6708_v50  ;;  %7386 = vmatmul.msk.f32.vlgmr.msrb.gmra.mxu0 %vm357_vm8, %v6735_v27 }
0x1dc3   : > { %7390 = vmatmul.msk.f32.vlgmr.msrb.gmra.mxu2 %vm357_vm8, %v6797_v16 }
0x1dc5   : > { %7392 = vmatmul.msk.f32.vlgmr.msrb.gmra.mxu3 %vm357_vm8, %v6583_v23  ;;  %7394 = vmatmul.msk.f32.vlgmr.msra.gmra.mxu0 %vm357_vm8, %v6855_v59 }
0x1e32   : > { %v6673_v36 = vpop.f32.mrf.mxu0 }
0x1e33   : > { %v6793_v62 = vpop.f32.mrf.mxu1 }
0x1e36   : > { %v6609_v34 = vpop.f32.mrf.mxu2 }
0x1e37   : > { %v6612_v7 = vadd.f32 %v6609_v34, %v328_v3 }
0x1e38   : > { %v6641_v56 = vpop.f32.mrf.mxu3 }
0x1e39   : > { %v6644_v54 = vadd.f32 %v6641_v56, %v6612_v7 }
0x1e3a   : > { %v6762_v45 = vpop.f32.mrf.mxu0 }
0x1e3b   : > { %v6676_v33 = vadd.f32 %v6673_v36, %v6644_v54 }
0x1e3e   : > { %v6704_v21 = vpop.f32.mrf.mxu2 }
0x1e3f   : > { %v6707_v57 = vadd.f32 %v6704_v21, %v6676_v33 }
0x1e40   : > { %v6731_v32 = vpop.f32.mrf.mxu3 }
0x1e41   : > { %v6734_v18 = vadd.f32 %v6731_v32, %v6707_v57 }
0x1e42   : > { %v6882_v38 = vpop.f32.mrf.mxu0 }
0x1e43   : > { %v6765_v40 = vadd.f32 %v6762_v45, %v6734_v18 }
0x1e45   : > { %v6796_v37 = vadd.f32 %v6793_v62, %v6765_v40 }
0x1e46   : > { %v6824_v2 = vpop.f32.mrf.mxu2 }
0x1e47   : > { %v6827_v31 = vadd.f32 %v6824_v2, %v6796_v37 }
0x1e48   : > { %v6851_v55 = vpop.f32.mrf.mxu3 }
0x1e49   : > { %v6854_v11 = vadd.f32 %v6851_v55, %v6827_v31 }
0x1e4b   : > { %v6885_v4 = vadd.f32 %v6882_v38, %v6854_v11 }
0x1e4d   : > { %6887 = vst.msk [vmem:[%s285_s17] sm:$0x1] %vm6886_vm1, %v6885_v4 }
0x1e4e   : > { %7601 = shalt.err (!%p7598_p8)
}
0x1e4f   : > { %7401 = dma.vmem_to_hbm [thread:$0]  (%p7729_p5), %s6900_s18, 16, %s6902_s19, %s6889_s20  }
0x1e50 PF: > { %p7413_p9 = scmp.ge.s32.totalorder %s7640_s27, 2  ;;  %s6913_s13 = sand.u32 1, %s7628_s24  }
0x1e51   : > { %s6914_s14 = scalar_lea.sflag [#allocation4], %s6913_s13 }
0x1e52   : > { %p7408_p10 = pnand %p7413_p9, %p7733_p6 }
0x1e54   : > { %p7409_p11 = pneg %p7408_p10 }
0x1e56   : > { %7623 = dma.done.wait (%p7409_p11), %s6914_s14, 16  }
0x1e57   : > { %7625 = vsyncadd (%p7409_p11), %s6914_s14, 4294967280  ;;  %p18_p12 = scmp.ge.s32.totalorder %s7716_s30, 4   ;;  %s10287_s24 = smov %s7632_s25 }
0x1e58   : > { %s10288_s25 = smov %s7636_s26  ;;  %s10289_s26 = smov %s7727_s10 }
0x1e59   : > { %s10290_s27 = smov %s7716_s30  ;;  %20 = sbr.rel (!%p18_p12) target bundleno = 4 (0x4), region = 88 }
0x1e5e   :  { %6919 = vsyncpa [#allocation3], 1 }
0x1e5f   :  { %6921 = vsyncpa [#allocation3 + $0x1], 1 }
0x1e60   :  { %6922 = vsyncpa [#allocation4], 1 }
0x1e61   :  { %6924 = vsyncpa [#allocation4 + $0x1], 1 }

</bundles_post_ra>
